<compile_context>
chip_gen: v5e
topology: v5e:2x2
jax: 0.10.0
libtpu: 0.0.40
codegen_flags: <defaults>
</compile_context>

<pallas_src>
import functools

import jax
import jax.numpy as jnp
from jax.experimental import pallas as pl
from jax.experimental.pallas import tpu as pltpu


# ---------------- glue: point sampling / grouping (plain JAX) ----------------

def get_dists(points1, points2):
    d = (jnp.sum(points1 ** 2, axis=-1)[..., :, None]
         + jnp.sum(points2 ** 2, axis=-1)[..., None, :])
    d = d - 2.0 * jnp.matmul(points1, jnp.swapaxes(points2, -1, -2))
    d = jnp.where(d < 0, jnp.float32(1e-7), d)
    return jnp.sqrt(d).astype(jnp.float32)


def fps(xyz, M, key):
    """Farthest point sampling (sequential data-dependent argmax)."""
    B, N, _ = xyz.shape
    batch = jnp.arange(B)
    inds0 = jax.random.randint(key, (B,), 0, N, dtype=jnp.int32)

    def body(i, carry):
        centroids, dists, inds = carry
        centroids = centroids.at[:, i].set(inds)
        cur = xyz[batch, inds]                               # (B, 3)
        cur_dist = get_dists(cur[:, None, :], xyz)[:, 0, :]  # (B, N)
        dists = jnp.minimum(dists, cur_dist)
        inds = jnp.argmax(dists, axis=1).astype(jnp.int32)
        return centroids, dists, inds

    carry0 = (jnp.zeros((B, M), jnp.int32),
              jnp.full((B, N), 1e5, jnp.float32),
              inds0)
    centroids, _, _ = jax.lax.fori_loop(0, M, body, carry0)
    return centroids                                          # (B, M)


def gather_points(points, inds):
    B = points.shape[0]
    if inds.ndim == 2:
        return points[jnp.arange(B)[:, None], inds]          # (B, M, C)
    return points[jnp.arange(B)[:, None, None], inds]        # (B, M, K, C)


def ball_query(xyz, new_xyz, radius, K):
    B, N, _ = xyz.shape
    M = new_xyz.shape[1]
    dists = get_dists(new_xyz, xyz)                          # (B, M, N)
    base = jnp.broadcast_to(jnp.arange(N, dtype=jnp.int32), (B, M, N))
    inds = jnp.where(dists > radius, jnp.int32(N), base)
    inds = jnp.sort(inds, axis=-1)[:, :, :K]
    first = inds[:, :, 0:1]
    inds = jnp.where(inds == N, first, inds)
    return inds                                              # (B, M, K)


# ---------------- quantization helpers ---------------------------------------

def _qparams(xmin, xmax):
    """Quantize_int8 scale / zero-point.  The 1e-12 guard keeps a constant
    tensor from producing 0/NaN (documented deviation from raw PyTorch)."""
    s = jnp.maximum((xmax - xmin) * jnp.float32(1.0 / 255.0), jnp.float32(1e-12))
    inv_s = (1.0 / s).astype(jnp.float32)
    z = (-(xmin * inv_s) - 128.0).astype(jnp.float32)
    return inv_s, z


def _quantize_int8_jnp(x):
    """Quantize_int8.forward (float values on the int8 grid)."""
    inv_s, z = _qparams(jnp.min(x), jnp.max(x))
    return jnp.clip(jnp.round(x * inv_s + z), -128.0, 127.0)


# ---------------- Pallas kernels ----------------------------------------------

def _make_stats_kernel(cout):
    """Pass 1: quantize tile, matmul, emit per-tile BN partial statistics."""
    def kernel(qp_ref, x_ref, w_ref, stat_ref):
        inv_s = qp_ref[0]
        z = qp_ref[1]
        xq = jnp.clip(jnp.round(x_ref[...] * inv_s + z), -128.0, 127.0)
        # int8-grid values are exact in bf16 -> native MXU matmul, f32 acc.
        y = jnp.dot(xq.astype(jnp.bfloat16), w_ref[...],
                    preferred_element_type=jnp.float32)
        s1 = jnp.sum(y, axis=0, keepdims=True)               # (1, cout)
        s2 = jnp.sum(y * y, axis=0, keepdims=True)           # (1, cout)
        row = jax.lax.broadcasted_iota(jnp.int32, (8, cout), 0)
        stat_ref[...] = jnp.where(row == 0, s1, jnp.where(row == 1, s2, 0.0))
    return kernel


def _make_apply_mid_kernel(cout):
    """Pass 2 (inner layers): quant + matmul + folded BN + ReLU; also emits
    this tile's min/max of the new activation (next layer's quant stats)."""
    def kernel(qp_ref, x_ref, w_ref, ab_ref, xn_ref, stat_ref):
        inv_s = qp_ref[0]
        z = qp_ref[1]
        xq = jnp.clip(jnp.round(x_ref[...] * inv_s + z), -128.0, 127.0)
        y = jnp.dot(xq.astype(jnp.bfloat16), w_ref[...],
                    preferred_element_type=jnp.float32)
        ab = ab_ref[...]
        xn = jnp.maximum(y * ab[0:1, :] + ab[1:2, :], 0.0)   # BN (folded) + ReLU
        xn_ref[...] = xn
        row = jax.lax.broadcasted_iota(jnp.int32, (8, cout), 0)
        stat_ref[...] = jnp.where(row == 0, jnp.min(xn),
                                  jnp.where(row == 1, jnp.max(xn), 0.0))
    return kernel


def _make_apply_last_kernel(tile_groups, K, cout, pooling):
    """Pass 2 (last layer): quant + matmul + BN + ReLU + K-neighbour pool."""
    def kernel(qp_ref, x_ref, w_ref, ab_ref, out_ref):
        inv_s = qp_ref[0]
        z = qp_ref[1]
        xq = jnp.clip(jnp.round(x_ref[...] * inv_s + z), -128.0, 127.0)
        y = jnp.dot(xq.astype(jnp.bfloat16), w_ref[...],
                    preferred_element_type=jnp.float32)
        ab = ab_ref[...]
        xn = jnp.maximum(y * ab[0:1, :] + ab[1:2, :], 0.0)
        xg = xn.reshape(tile_groups, K, cout)                 # groups stay in-tile
        out_ref[...] = (jnp.max(xg, axis=1) if pooling == "max"
                        else jnp.mean(xg, axis=1))
    return kernel


# ---------------- tiling / spec helpers ----------------------------------------

_Buffered = getattr(pl, "Buffered", None)


def _spec(block_shape, index_map, n_buffers=None):
    if n_buffers is not None and _Buffered is not None:
        try:
            return pl.BlockSpec(block_shape, index_map,
                                pipeline_mode=_Buffered(n_buffers))
        except TypeError:
            pass
    return pl.BlockSpec(block_shape, index_map)


def _pick_tile_groups(BM, K, max_rows):
    """Largest divisor of BM that keeps whole K-neighbourhoods in one block,
    satisfies the (8,128) block rules and stays under max_rows rows."""
    cands = [g for g in range(1, BM + 1)
             if BM % g == 0 and (g == BM or g % 8 == 0)]
    fitting = [g for g in cands if g * K <= max_rows]
    return max(fitting) if fitting else min(cands)


def _default_max_tile_rows():
    # 512-2048 row tiles reach ~85% of HBM roofline; v7x has 64 MiB VMEM per
    # core (vs 128 MiB on v5e/v6e), so use roughly half the rows there.
    try:
        vmem = getattr(pltpu.get_tpu_info(), "vmem_capacity_bytes", 128 * 2 ** 20)
    except Exception:
        vmem = 128 * 2 ** 20
    return 1024 if vmem >= 100 * 2 ** 20 else 512


def _vmem_limit_bytes(tile_rows, cin, cout):
    est = (2 * tile_rows * cin * 4               # activation tile, double-buffered
           + 2 * tile_rows * cout * 4            # output tile, double-buffered
           + 2 * tile_rows * max(cin, cout) * 4  # xq / y temporaries
           + 2 * cin * cout * 2                  # bf16 weight
           + 8 * 8 * cout * 4)                   # BN params + partial stats
    return int(min(64 * 2 ** 20, max(16 * 2 ** 20, 2 * est)))


def _compiler_params(vmem_bytes):
    return pltpu.CompilerParams(dimension_semantics=("parallel",),
                                vmem_limit_bytes=vmem_bytes)


# ---------------- one MSG scale: tiled two-pass backbone -----------------------

def run_scale_pallas(grouped, layers, pooling, max_tile_rows):
    B, M, K, cin0 = grouped.shape
    BM, R = B * M, B * M * K
    tile_groups = _pick_tile_groups(BM, K, max_tile_rows)
    n_tiles = BM // tile_groups
    tile_rows = tile_groups * K

    x = grouped.reshape(R, cin0).astype(jnp.float32)
    # Layer-0 activation quant stats: exact, order-independent XLA reduction.
    xmin, xmax = jnp.min(x), jnp.max(x)

    n_layers = len(layers)
    pooled = None
    for li, layer in enumerate(layers):
        wq, gamma, beta = layer["wq"], layer["gamma"], layer["beta"]
        cin, cout = wq.shape
        inv_s, z = _qparams(xmin, xmax)
        qp = jnp.stack([inv_s, z])                            # (2,) f32 -> SMEM

        vmem_bytes = _vmem_limit_bytes(tile_rows, cin, cout)
        flops = 2 * R * cin * cout
        smem_spec = pl.BlockSpec(memory_space=pltpu.MemorySpace.SMEM)
        x_spec = _spec((tile_rows, cin), lambda i: (i, 0), 2)
        w_spec = pl.BlockSpec((cin, cout), lambda i: (0, 0))  # resident weight

        # ---- pass 1: per-tile BN partial stats (sum / sum-of-squares); the
        # cross-tile reduction below keeps the statistics GLOBAL per layer. ----
        stat = pl.pallas_call(
            _make_stats_kernel(cout),
            out_shape=jax.ShapeDtypeStruct((n_tiles * 8, cout), jnp.float32),
            grid=(n_tiles,),
            in_specs=[smem_spec, x_spec, w_spec],
            out_specs=pl.BlockSpec((8, cout), lambda i: (i, 0)),
            compiler_params=_compiler_params(vmem_bytes),
            cost_estimate=pl.CostEstimate(
                flops=int(flops), transcendentals=0,
                bytes_accessed=int(x.size * 4 + wq.size * 2
                                   + n_tiles * 8 * cout * 4)),
        )(qp, x, wq)
        stat = stat.reshape(n_tiles, 8, cout)
        mean = jnp.sum(stat[:, 0, :], axis=0) / R
        var = jnp.maximum(jnp.sum(stat[:, 1, :], axis=0) / R - mean * mean, 0.0)
        a = gamma * jax.lax.rsqrt(var + 1e-5)                 # folded BN scale
        bsh = beta - mean * a                                 # folded BN shift
        row8 = jnp.arange(8, dtype=jnp.int32)[:, None]
        ab = jnp.where(row8 == 0, a[None, :],
                       jnp.where(row8 == 1, bsh[None, :], 0.0)).astype(jnp.float32)
        ab_spec = pl.BlockSpec((8, cout), lambda i: (0, 0))

        # ---- pass 2: apply (recompute the cheap matmul, no y HBM round trip) ----
        if li < n_layers - 1:
            x, qstat = pl.pallas_call(
                _make_apply_mid_kernel(cout),
                out_shape=(jax.ShapeDtypeStruct((R, cout), jnp.float32),
                           jax.ShapeDtypeStruct((n_tiles * 8, cout), jnp.float32)),
                grid=(n_tiles,),
                in_specs=[smem_spec, x_spec, w_spec, ab_spec],
                out_specs=(pl.BlockSpec((tile_rows, cout), lambda i: (i, 0)),
                           pl.BlockSpec((8, cout), lambda i: (i, 0))),
                compiler_params=_compiler_params(vmem_bytes),
                cost_estimate=pl.CostEstimate(
                    flops=int(flops), transcendentals=0,
                    bytes_accessed=int(x.size * 4 + wq.size * 2
                                       + R * cout * 4 + n_tiles * 8 * cout * 4)),
            )(qp, x, wq, ab)
            qstat = qstat.reshape(n_tiles, 8, cout)
            xmin = jnp.min(qstat[:, 0, 0])      # next layer's global quant stats
            xmax = jnp.max(qstat[:, 1, 0])
        else:
            pooled = pl.pallas_call(
                _make_apply_last_kernel(tile_groups, K, cout, pooling),
                out_shape=jax.ShapeDtypeStruct((BM, cout), jnp.float32),
                grid=(n_tiles,),
                in_specs=[smem_spec, x_spec, w_spec, ab_spec],
                out_specs=pl.BlockSpec((tile_groups, cout), lambda i: (i, 0)),
                compiler_params=_compiler_params(vmem_bytes),
                cost_estimate=pl.CostEstimate(
                    flops=int(flops), transcendentals=0,
                    bytes_accessed=int(x.size * 4 + wq.size * 2 + BM * cout * 4)),
            )(qp, x, wq, ab)

    return pooled.reshape(B, M, -1)


def run_scale_ref(grouped, raw, pooling):
    """Pure-JAX reference of one scale (PyTorch semantics), for verification."""
    B, M, K, cin = grouped.shape
    x = grouped.reshape(B * M * K, cin).astype(jnp.float32)
    for w, g, b in zip(raw["ws"], raw["gs"], raw["bs"]):
        xq = _quantize_int8_jnp(x)
        wq = _quantize_int8_jnp(w.astype(jnp.float32))
        y = jnp.dot(xq, jnp.transpose(wq), preferred_element_type=jnp.float32)
        mean = jnp.mean(y, axis=0, keepdims=True)
        var = jnp.mean(jnp.square(y - mean), axis=0, keepdims=True)
        y = (y - mean) * jax.lax.rsqrt(var + 1e-5)
        x = jnp.maximum(y * g.reshape(1, -1) + b.reshape(1, -1), 0.0)
    c_last = raw["ws"][-1].shape[0]
    xg = x.reshape(B * M, K, c_last)
    pooled = jnp.max(xg, axis=1) if pooling == "max" else jnp.mean(xg, axis=1)
    return pooled.reshape(B, M, c_last)


# ---------------- module forward -----------------------------------------------

def prepare_msg_params(params):
    """Per-model (not per-call) weight prep: quantize -> transpose -> bf16."""
    prepared = []
    for (ws, gs, bs) in params:
        layers = []
        for w, g, b in zip(ws, gs, bs):
            wq_t = jnp.transpose(_quantize_int8_jnp(w.astype(jnp.float32)))
            layers.append(dict(wq=wq_t.astype(jnp.bfloat16),
                               gamma=g.astype(jnp.float32),
                               beta=b.astype(jnp.float32)))
        prepared.append(dict(layers=layers,
                             raw=dict(ws=list(ws), gs=list(gs), bs=list(bs))))
    return prepared


def pointnet_sa_module_msg_forward(xyz, points, prepared, fps_key, *,
                                   M, radiuses, Ks, pooling="max",
                                   use_xyz=True, use_pallas=True,
                                   max_tile_rows=None):
    if max_tile_rows is None:
        max_tile_rows = _default_max_tile_rows()
    new_xyz = gather_points(xyz, fps(xyz, M, fps_key))        # (B, M, 3)
    feats = []
    for i, prep in enumerate(prepared):
        inds = ball_query(xyz, new_xyz, radiuses[i], Ks[i])   # (B, M, K)
        grouped_xyz = (gather_points(xyz, inds)
                       - new_xyz[:, :, None, :]).astype(jnp.float32)
        if points is not None:
            grouped_pts = gather_points(points, inds).astype(jnp.float32)
            grouped = (jnp.concatenate([grouped_xyz, grouped_pts], axis=-1)
                       if use_xyz else grouped_pts)
        else:
            grouped = grouped_xyz
        if use_pallas:
            feats.append(run_scale_pallas(grouped, prep["layers"], pooling,
                                          max_tile_rows))
        else:
            feats.append(run_scale_ref(grouped, prep["raw"], pooling))
    # Channel compaction / cross-scale concat done in XLA (cheap: BM rows).
    return new_xyz, jnp.concatenate(feats, axis=-1)


if __name__ == "__main__":
    # Small deterministic configuration consistent with the module.
    B, N, C_feat = 2, 32, 13
    M = 8
    radiuses = (1.0, 2.0)
    Ks = (8, 16)
    in_channels = 3 + C_feat            # use_xyz=True
    mlps = [[16, 32], [32, 64]]

    key = jax.random.PRNGKey(0)
    k_xyz, k_pts, k_fps, k_w = jax.random.split(key, 4)
    xyz = jax.random.normal(k_xyz, (B, N, 3), dtype=jnp.float32)
    points = jax.random.normal(k_pts, (B, N, C_feat), dtype=jnp.float32)

    # QuantizeConv2d weights (Cout, Cin), bias=False; BatchNorm2d default init.
    params = []
    wkeys = jax.random.split(k_w, sum(len(m) for m in mlps))
    ki = 0
    for mlp in mlps:
        ws, gs, bs = [], [], []
        cin = in_channels
        for cout in mlp:
            ws.append(0.1 * jax.random.normal(wkeys[ki], (cout, cin), jnp.float32))
            ki += 1
            gs.append(jnp.ones((cout,), jnp.float32))
            bs.append(jnp.zeros((cout,), jnp.float32))
            cin = cout
        params.append((ws, gs, bs))

    # Weight quantize/transpose/bf16-cast hoisted out of the jitted forward.
    prepared = prepare_msg_params(params)

    # max_tile_rows=64 forces a multi-tile grid at this toy size so the
    # cross-tile two-pass statistics path is exercised (production: 512-2048).
    fwd_pallas = jax.jit(functools.partial(
        pointnet_sa_module_msg_forward, M=M, radiuses=radiuses, Ks=Ks,
        pooling="max", use_pallas=True, max_tile_rows=64))
    fwd_ref = jax.jit(functools.partial(
        pointnet_sa_module_msg_forward, M=M, radiuses=radiuses, Ks=Ks,
        pooling="max", use_pallas=False))

    new_xyz, new_feats = fwd_pallas(xyz, points, prepared, k_fps)
    jax.block_until_ready((new_xyz, new_feats))

    _, ref_feats = fwd_ref(xyz, points, prepared, k_fps)
    jax.block_until_ready(ref_feats)

    assert new_xyz.shape == (B, M, 3)
    assert new_feats.shape == (B, M, sum(m[-1] for m in mlps))

    diff = jnp.abs(new_feats - ref_feats)
    err_max = float(jnp.max(diff))
    err_mean = float(jnp.mean(diff))
    # Quantized nets are not Lipschitz in upstream rounding: a last-ulp
    # difference in the BN-variance accumulation order between the tiled kernel
    # and the monolithic XLA reference can flip a round() by one level
    # (~5e-3 effect after normalization).  The check therefore tolerates a few
    # isolated flips while still catching real bugs (which give O(1) errors).
    assert err_max < 5e-2 and err_mean < 5e-3, (err_max, err_mean)

    print("KERNEL_OK")
</pallas_src>

<mosaic_0001>
module attributes {stable_mosaic.version = 11 : i64} {
  func.func @kernel(%arg0: i32, %arg1: memref<2xf32, #tpu.memory_space<smem>>, %arg2: memref<64x16xf32, #tpu.memory_space<vmem>>, %arg3: memref<16x16xbf16, #tpu.memory_space<vmem>>, %arg4: memref<8x16xf32, #tpu.memory_space<vmem>>) attributes {dimension_semantics = [#tpu.dimension_semantics<parallel>], iteration_bounds = array<i64: 2>, scalar_prefetch = 0 : i64, scratch_operands = 0 : i64, tpu.core_type = #tpu.core_type<tc>, window_params = [{transform_indices = @transform_0, window_bounds = array<i64: 2>}, {pipeline_mode = #tpu.pipeline_mode<double_buffered>, transform_indices = @transform_1, window_bounds = array<i64: 64, 16>}, {pipeline_mode = #tpu.pipeline_mode<synchronous>, transform_indices = @transform_2, window_bounds = array<i64: 16, 16>}, {transform_indices = @transform_3, window_bounds = array<i64: 8, 16>}]} {
    %c0 = arith.constant 0 : index
    %0 = memref.load %arg1[%c0] : memref<2xf32, #tpu.memory_space<smem>>
    %c1 = arith.constant 1 : index
    %1 = memref.load %arg1[%c1] : memref<2xf32, #tpu.memory_space<smem>>
    %c0_0 = arith.constant 0 : index
    %c0_1 = arith.constant 0 : index
    %2 = vector.load %arg2[%c0_0, %c0_1] : memref<64x16xf32, #tpu.memory_space<vmem>>, vector<64x16xf32>
    %3 = vector.broadcast %0 : f32 to vector<64x16xf32>
    %4 = arith.mulf %2, %3 : vector<64x16xf32>
    %5 = vector.broadcast %1 : f32 to vector<64x16xf32>
    %6 = arith.addf %4, %5 : vector<64x16xf32>
    %7 = math.roundeven %6 : vector<64x16xf32>
    %cst = arith.constant -1.280000e+02 : f32
    %cst_2 = arith.constant 1.270000e+02 : f32
    %8 = vector.broadcast %cst : f32 to vector<64x16xf32>
    %9 = arith.maximumf %8, %7 : vector<64x16xf32>
    %10 = vector.broadcast %cst_2 : f32 to vector<64x16xf32>
    %11 = arith.minimumf %10, %9 : vector<64x16xf32>
    %12 = arith.truncf %11 : vector<64x16xf32> to vector<64x16xbf16>
    %c0_3 = arith.constant 0 : index
    %c0_4 = arith.constant 0 : index
    %13 = vector.load %arg3[%c0_3, %c0_4] : memref<16x16xbf16, #tpu.memory_space<vmem>>, vector<16x16xbf16>
    %cst_5 = arith.constant dense<0.000000e+00> : vector<64x16xf32>
    %14 = tpu.matmul %12, %13, %cst_5 {dimension_numbers = #tpu.dot_dimension_numbers<[1], [0], [0], [1], [0, 0, 1, 1], [], []>} : vector<64x16xbf16>, vector<16x16xbf16>, vector<64x16xf32> -> vector<64x16xf32>
    %cst_6 = arith.constant dense<0.000000e+00> : vector<16xf32>
    %15 = vector.multi_reduction <add>, %14, %cst_6 [0] : vector<64x16xf32> to vector<16xf32>
    %16 = vector.shape_cast %15 : vector<16xf32> to vector<1x16xf32>
    %17 = arith.mulf %14, %14 : vector<64x16xf32>
    %cst_7 = arith.constant dense<0.000000e+00> : vector<16xf32>
    %18 = vector.multi_reduction <add>, %17, %cst_7 [0] : vector<64x16xf32> to vector<16xf32>
    %19 = vector.shape_cast %18 : vector<16xf32> to vector<1x16xf32>
    %20 = tpu.iota {dimensions = array<i32: 0>} : vector<8x16xi32>
    %c0_i32 = arith.constant 0 : i32
    %21 = vector.broadcast %c0_i32 : i32 to vector<8x16xi32>
    %22 = arith.cmpi eq, %20, %21 : vector<8x16xi32>
    %c1_i32 = arith.constant 1 : i32
    %23 = vector.broadcast %c1_i32 : i32 to vector<8x16xi32>
    %24 = arith.cmpi eq, %20, %23 : vector<8x16xi32>
    %cst_8 = arith.constant 0.000000e+00 : f32
    %25 = vector.shape_cast %19 : vector<1x16xf32> to vector<1x16xf32>
    %26 = vector.broadcast %25 : vector<1x16xf32> to vector<8x16xf32>
    %27 = vector.broadcast %cst_8 : f32 to vector<8x16xf32>
    %28 = arith.select %24, %26, %27 : vector<8x16xi1>, vector<8x16xf32>
    %29 = vector.shape_cast %16 : vector<1x16xf32> to vector<1x16xf32>
    %30 = vector.broadcast %29 : vector<1x16xf32> to vector<8x16xf32>
    %31 = arith.select %22, %30, %28 : vector<8x16xi1>, vector<8x16xf32>
    %c0_9 = arith.constant 0 : index
    %c0_10 = arith.constant 0 : index
    %32 = vector.load %arg4[%c0_9, %c0_10] : memref<8x16xf32, #tpu.memory_space<vmem>>, vector<8x16xf32>
    tpu.vector_store %arg4[%c0_9, %c0_10], %31 {strides = array<i32>} : memref<8x16xf32, #tpu.memory_space<vmem>>, vector<8x16xf32>,
    return
  }
  func.func @transform_0(%arg0: i32) -> i32 {
    %c0_i32 = arith.constant 0 : i32
    %c0_i32_0 = arith.constant 0 : i32
    return %c0_i32 : i32
  }
  func.func @transform_1(%arg0: i32) -> (i32, i32) {
    %c0_i32 = arith.constant 0 : i32
    %c0_i32_0 = arith.constant 0 : i32
    return %arg0, %c0_i32 : i32, i32
  }
  func.func @transform_2(%arg0: i32) -> (i32, i32) {
    %c0_i32 = arith.constant 0 : i32
    %c0_i32_0 = arith.constant 0 : i32
    %c0_i32_1 = arith.constant 0 : i32
    return %c0_i32, %c0_i32_0 : i32, i32
  }
  func.func @transform_3(%arg0: i32) -> (i32, i32) {
    %c0_i32 = arith.constant 0 : i32
    %c0_i32_0 = arith.constant 0 : i32
    return %arg0, %c0_i32 : i32, i32
  }
}

module attributes {stable_mosaic.version = 11 : i64} {
  func.func @kernel(%arg0: i32, %arg1: memref<2xf32, #tpu.memory_space<smem>>, %arg2: memref<64x16xf32, #tpu.memory_space<vmem>>, %arg3: memref<16x16xbf16, #tpu.memory_space<vmem>>, %arg4: memref<8x16xf32, #tpu.memory_space<vmem>>, %arg5: memref<64x16xf32, #tpu.memory_space<vmem>>, %arg6: memref<8x16xf32, #tpu.memory_space<vmem>>) attributes {dimension_semantics = [#tpu.dimension_semantics<parallel>], iteration_bounds = array<i64: 2>, scalar_prefetch = 0 : i64, scratch_operands = 0 : i64, tpu.core_type = #tpu.core_type<tc>, window_params = [{transform_indices = @transform_0, window_bounds = array<i64: 2>}, {pipeline_mode = #tpu.pipeline_mode<double_buffered>, transform_indices = @transform_1, window_bounds = array<i64: 64, 16>}, {pipeline_mode = #tpu.pipeline_mode<synchronous>, transform_indices = @transform_2, window_bounds = array<i64: 16, 16>}, {pipeline_mode = #tpu.pipeline_mode<synchronous>, transform_indices = @transform_3, window_bounds = array<i64: 8, 16>}, {transform_indices = @transform_4, window_bounds = array<i64: 64, 16>}, {transform_indices = @transform_5, window_bounds = array<i64: 8, 16>}]} {
    %c0 = arith.constant 0 : index
    %0 = memref.load %arg1[%c0] : memref<2xf32, #tpu.memory_space<smem>>
    %c1 = arith.constant 1 : index
    %1 = memref.load %arg1[%c1] : memref<2xf32, #tpu.memory_space<smem>>
    %c0_0 = arith.constant 0 : index
    %c0_1 = arith.constant 0 : index
    %2 = vector.load %arg2[%c0_0, %c0_1] : memref<64x16xf32, #tpu.memory_space<vmem>>, vector<64x16xf32>
    %3 = vector.broadcast %0 : f32 to vector<64x16xf32>
    %4 = arith.mulf %2, %3 : vector<64x16xf32>
    %5 = vector.broadcast %1 : f32 to vector<64x16xf32>
    %6 = arith.addf %4, %5 : vector<64x16xf32>
    %7 = math.roundeven %6 : vector<64x16xf32>
    %cst = arith.constant -1.280000e+02 : f32
    %cst_2 = arith.constant 1.270000e+02 : f32
    %8 = vector.broadcast %cst : f32 to vector<64x16xf32>
    %9 = arith.maximumf %8, %7 : vector<64x16xf32>
    %10 = vector.broadcast %cst_2 : f32 to vector<64x16xf32>
    %11 = arith.minimumf %10, %9 : vector<64x16xf32>
    %12 = arith.truncf %11 : vector<64x16xf32> to vector<64x16xbf16>
    %c0_3 = arith.constant 0 : index
    %c0_4 = arith.constant 0 : index
    %13 = vector.load %arg3[%c0_3, %c0_4] : memref<16x16xbf16, #tpu.memory_space<vmem>>, vector<16x16xbf16>
    %cst_5 = arith.constant dense<0.000000e+00> : vector<64x16xf32>
    %14 = tpu.matmul %12, %13, %cst_5 {dimension_numbers = #tpu.dot_dimension_numbers<[1], [0], [0], [1], [0, 0, 1, 1], [], []>} : vector<64x16xbf16>, vector<16x16xbf16>, vector<64x16xf32> -> vector<64x16xf32>
    %c0_6 = arith.constant 0 : index
    %c0_7 = arith.constant 0 : index
    %15 = vector.load %arg4[%c0_6, %c0_7] : memref<8x16xf32, #tpu.memory_space<vmem>>, vector<8x16xf32>
    %16 = vector.extract_strided_slice %15 {offsets = [0, 0], sizes = [1, 16], strides = [1, 1]} : vector<8x16xf32> to vector<1x16xf32>
    %17 = vector.broadcast %16 : vector<1x16xf32> to vector<64x16xf32>
    %18 = arith.mulf %14, %17 : vector<64x16xf32>
    %19 = vector.extract_strided_slice %15 {offsets = [1, 0], sizes = [1, 16], strides = [1, 1]} : vector<8x16xf32> to vector<1x16xf32>
    %20 = vector.broadcast %19 : vector<1x16xf32> to vector<64x16xf32>
    %21 = arith.addf %18, %20 : vector<64x16xf32>
    %cst_8 = arith.constant 0.000000e+00 : f32
    %22 = vector.broadcast %cst_8 : f32 to vector<64x16xf32>
    %23 = arith.maximumf %21, %22 : vector<64x16xf32>
    %c0_9 = arith.constant 0 : index
    %c0_10 = arith.constant 0 : index
    %24 = vector.load %arg5[%c0_9, %c0_10] : memref<64x16xf32, #tpu.memory_space<vmem>>, vector<64x16xf32>
    tpu.vector_store %arg5[%c0_9, %c0_10], %23 {strides = array<i32>} : memref<64x16xf32, #tpu.memory_space<vmem>>, vector<64x16xf32>,
    %25 = tpu.iota {dimensions = array<i32: 0>} : vector<8x16xi32>
    %c0_i32 = arith.constant 0 : i32
    %26 = vector.broadcast %c0_i32 : i32 to vector<8x16xi32>
    %27 = arith.cmpi eq, %25, %26 : vector<8x16xi32>
    %28 = vector.shape_cast %23 : vector<64x16xf32> to vector<1x64x16xf32>
    %cst_11 = arith.constant dense<0x7F800000> : vector<1xf32>
    %29 = vector.multi_reduction <minimumf>, %28, %cst_11 [1, 2] : vector<1x64x16xf32> to vector<1xf32>
    %30 = vector.shape_cast %29 : vector<1xf32> to vector<1x1x1xf32>
    %31 = vector.extract %30[0, 0, 0] : f32 from vector<1x1x1xf32>
    %c1_i32 = arith.constant 1 : i32
    %32 = vector.broadcast %c1_i32 : i32 to vector<8x16xi32>
    %33 = arith.cmpi eq, %25, %32 : vector<8x16xi32>
    %34 = vector.shape_cast %23 : vector<64x16xf32> to vector<1x64x16xf32>
    %cst_12 = arith.constant dense<0xFF800000> : vector<1xf32>
    %35 = vector.multi_reduction <maximumf>, %34, %cst_12 [1, 2] : vector<1x64x16xf32> to vector<1xf32>
    %36 = vector.shape_cast %35 : vector<1xf32> to vector<1x1x1xf32>
    %37 = vector.extract %36[0, 0, 0] : f32 from vector<1x1x1xf32>
    %cst_13 = arith.constant 0.000000e+00 : f32
    %38 = vector.broadcast %37 : f32 to vector<8x16xf32>
    %39 = vector.broadcast %cst_13 : f32 to vector<8x16xf32>
    %40 = arith.select %33, %38, %39 : vector<8x16xi1>, vector<8x16xf32>
    %41 = vector.broadcast %31 : f32 to vector<8x16xf32>
    %42 = arith.select %27, %41, %40 : vector<8x16xi1>, vector<8x16xf32>
    %c0_14 = arith.constant 0 : index
    %c0_15 = arith.constant 0 : index
    %43 = vector.load %arg6[%c0_14, %c0_15] : memref<8x16xf32, #tpu.memory_space<vmem>>, vector<8x16xf32>
    tpu.vector_store %arg6[%c0_14, %c0_15], %42 {strides = array<i32>} : memref<8x16xf32, #tpu.memory_space<vmem>>, vector<8x16xf32>,
    return
  }
  func.func @transform_0(%arg0: i32) -> i32 {
    %c0_i32 = arith.constant 0 : i32
    %c0_i32_0 = arith.constant 0 : i32
    return %c0_i32 : i32
  }
  func.func @transform_1(%arg0: i32) -> (i32, i32) {
    %c0_i32 = arith.constant 0 : i32
    %c0_i32_0 = arith.constant 0 : i32
    return %arg0, %c0_i32 : i32, i32
  }
  func.func @transform_2(%arg0: i32) -> (i32, i32) {
    %c0_i32 = arith.constant 0 : i32
    %c0_i32_0 = arith.constant 0 : i32
    %c0_i32_1 = arith.constant 0 : i32
    return %c0_i32, %c0_i32_0 : i32, i32
  }
  func.func @transform_3(%arg0: i32) -> (i32, i32) {
    %c0_i32 = arith.constant 0 : i32
    %c0_i32_0 = arith.constant 0 : i32
    %c0_i32_1 = arith.constant 0 : i32
    return %c0_i32, %c0_i32_0 : i32, i32
  }
  func.func @transform_4(%arg0: i32) -> (i32, i32) {
    %c0_i32 = arith.constant 0 : i32
    %c0_i32_0 = arith.constant 0 : i32
    return %arg0, %c0_i32 : i32, i32
  }
  func.func @transform_5(%arg0: i32) -> (i32, i32) {
    %c0_i32 = arith.constant 0 : i32
    %c0_i32_0 = arith.constant 0 : i32
    return %arg0, %c0_i32 : i32, i32
  }
}

module attributes {stable_mosaic.version = 11 : i64} {
  func.func @kernel(%arg0: i32, %arg1: memref<2xf32, #tpu.memory_space<smem>>, %arg2: memref<64x16xf32, #tpu.memory_space<vmem>>, %arg3: memref<16x32xbf16, #tpu.memory_space<vmem>>, %arg4: memref<8x32xf32, #tpu.memory_space<vmem>>) attributes {dimension_semantics = [#tpu.dimension_semantics<parallel>], iteration_bounds = array<i64: 2>, scalar_prefetch = 0 : i64, scratch_operands = 0 : i64, tpu.core_type = #tpu.core_type<tc>, window_params = [{transform_indices = @transform_0, window_bounds = array<i64: 2>}, {pipeline_mode = #tpu.pipeline_mode<double_buffered>, transform_indices = @transform_1, window_bounds = array<i64: 64, 16>}, {pipeline_mode = #tpu.pipeline_mode<synchronous>, transform_indices = @transform_2, window_bounds = array<i64: 16, 32>}, {transform_indices = @transform_3, window_bounds = array<i64: 8, 32>}]} {
    %c0 = arith.constant 0 : index
    %0 = memref.load %arg1[%c0] : memref<2xf32, #tpu.memory_space<smem>>
    %c1 = arith.constant 1 : index
    %1 = memref.load %arg1[%c1] : memref<2xf32, #tpu.memory_space<smem>>
    %c0_0 = arith.constant 0 : index
    %c0_1 = arith.constant 0 : index
    %2 = vector.load %arg2[%c0_0, %c0_1] : memref<64x16xf32, #tpu.memory_space<vmem>>, vector<64x16xf32>
    %3 = vector.broadcast %0 : f32 to vector<64x16xf32>
    %4 = arith.mulf %2, %3 : vector<64x16xf32>
    %5 = vector.broadcast %1 : f32 to vector<64x16xf32>
    %6 = arith.addf %4, %5 : vector<64x16xf32>
    %7 = math.roundeven %6 : vector<64x16xf32>
    %cst = arith.constant -1.280000e+02 : f32
    %cst_2 = arith.constant 1.270000e+02 : f32
    %8 = vector.broadcast %cst : f32 to vector<64x16xf32>
    %9 = arith.maximumf %8, %7 : vector<64x16xf32>
    %10 = vector.broadcast %cst_2 : f32 to vector<64x16xf32>
    %11 = arith.minimumf %10, %9 : vector<64x16xf32>
    %12 = arith.truncf %11 : vector<64x16xf32> to vector<64x16xbf16>
    %c0_3 = arith.constant 0 : index
    %c0_4 = arith.constant 0 : index
    %13 = vector.load %arg3[%c0_3, %c0_4] : memref<16x32xbf16, #tpu.memory_space<vmem>>, vector<16x32xbf16>
    %cst_5 = arith.constant dense<0.000000e+00> : vector<64x32xf32>
    %14 = tpu.matmul %12, %13, %cst_5 {dimension_numbers = #tpu.dot_dimension_numbers<[1], [0], [0], [1], [0, 0, 1, 1], [], []>} : vector<64x16xbf16>, vector<16x32xbf16>, vector<64x32xf32> -> vector<64x32xf32>
    %cst_6 = arith.constant dense<0.000000e+00> : vector<32xf32>
    %15 = vector.multi_reduction <add>, %14, %cst_6 [0] : vector<64x32xf32> to vector<32xf32>
    %16 = vector.shape_cast %15 : vector<32xf32> to vector<1x32xf32>
    %17 = arith.mulf %14, %14 : vector<64x32xf32>
    %cst_7 = arith.constant dense<0.000000e+00> : vector<32xf32>
    %18 = vector.multi_reduction <add>, %17, %cst_7 [0] : vector<64x32xf32> to vector<32xf32>
    %19 = vector.shape_cast %18 : vector<32xf32> to vector<1x32xf32>
    %20 = tpu.iota {dimensions = array<i32: 0>} : vector<8x32xi32>
    %c0_i32 = arith.constant 0 : i32
    %21 = vector.broadcast %c0_i32 : i32 to vector<8x32xi32>
    %22 = arith.cmpi eq, %20, %21 : vector<8x32xi32>
    %c1_i32 = arith.constant 1 : i32
    %23 = vector.broadcast %c1_i32 : i32 to vector<8x32xi32>
    %24 = arith.cmpi eq, %20, %23 : vector<8x32xi32>
    %cst_8 = arith.constant 0.000000e+00 : f32
    %25 = vector.shape_cast %19 : vector<1x32xf32> to vector<1x32xf32>
    %26 = vector.broadcast %25 : vector<1x32xf32> to vector<8x32xf32>
    %27 = vector.broadcast %cst_8 : f32 to vector<8x32xf32>
    %28 = arith.select %24, %26, %27 : vector<8x32xi1>, vector<8x32xf32>
    %29 = vector.shape_cast %16 : vector<1x32xf32> to vector<1x32xf32>
    %30 = vector.broadcast %29 : vector<1x32xf32> to vector<8x32xf32>
    %31 = arith.select %22, %30, %28 : vector<8x32xi1>, vector<8x32xf32>
    %c0_9 = arith.constant 0 : index
    %c0_10 = arith.constant 0 : index
    %32 = vector.load %arg4[%c0_9, %c0_10] : memref<8x32xf32, #tpu.memory_space<vmem>>, vector<8x32xf32>
    tpu.vector_store %arg4[%c0_9, %c0_10], %31 {strides = array<i32>} : memref<8x32xf32, #tpu.memory_space<vmem>>, vector<8x32xf32>,
    return
  }
  func.func @transform_0(%arg0: i32) -> i32 {
    %c0_i32 = arith.constant 0 : i32
    %c0_i32_0 = arith.constant 0 : i32
    return %c0_i32 : i32
  }
  func.func @transform_1(%arg0: i32) -> (i32, i32) {
    %c0_i32 = arith.constant 0 : i32
    %c0_i32_0 = arith.constant 0 : i32
    return %arg0, %c0_i32 : i32, i32
  }
  func.func @transform_2(%arg0: i32) -> (i32, i32) {
    %c0_i32 = arith.constant 0 : i32
    %c0_i32_0 = arith.constant 0 : i32
    %c0_i32_1 = arith.constant 0 : i32
    return %c0_i32, %c0_i32_0 : i32, i32
  }
  func.func @transform_3(%arg0: i32) -> (i32, i32) {
    %c0_i32 = arith.constant 0 : i32
    %c0_i32_0 = arith.constant 0 : i32
    return %arg0, %c0_i32 : i32, i32
  }
}

module attributes {stable_mosaic.version = 11 : i64} {
  func.func @kernel(%arg0: i32, %arg1: memref<2xf32, #tpu.memory_space<smem>>, %arg2: memref<128x16xf32, #tpu.memory_space<vmem>>, %arg3: memref<16x32xbf16, #tpu.memory_space<vmem>>, %arg4: memref<8x32xf32, #tpu.memory_space<vmem>>) attributes {dimension_semantics = [#tpu.dimension_semantics<parallel>], iteration_bounds = array<i64: 2>, scalar_prefetch = 0 : i64, scratch_operands = 0 : i64, tpu.core_type = #tpu.core_type<tc>, window_params = [{transform_indices = @transform_0, window_bounds = array<i64: 2>}, {pipeline_mode = #tpu.pipeline_mode<double_buffered>, transform_indices = @transform_1, window_bounds = array<i64: 128, 16>}, {pipeline_mode = #tpu.pipeline_mode<synchronous>, transform_indices = @transform_2, window_bounds = array<i64: 16, 32>}, {transform_indices = @transform_3, window_bounds = array<i64: 8, 32>}]} {
    %c0 = arith.constant 0 : index
    %0 = memref.load %arg1[%c0] : memref<2xf32, #tpu.memory_space<smem>>
    %c1 = arith.constant 1 : index
    %1 = memref.load %arg1[%c1] : memref<2xf32, #tpu.memory_space<smem>>
    %c0_0 = arith.constant 0 : index
    %c0_1 = arith.constant 0 : index
    %2 = vector.load %arg2[%c0_0, %c0_1] : memref<128x16xf32, #tpu.memory_space<vmem>>, vector<128x16xf32>
    %3 = vector.broadcast %0 : f32 to vector<128x16xf32>
    %4 = arith.mulf %2, %3 : vector<128x16xf32>
    %5 = vector.broadcast %1 : f32 to vector<128x16xf32>
    %6 = arith.addf %4, %5 : vector<128x16xf32>
    %7 = math.roundeven %6 : vector<128x16xf32>
    %cst = arith.constant -1.280000e+02 : f32
    %cst_2 = arith.constant 1.270000e+02 : f32
    %8 = vector.broadcast %cst : f32 to vector<128x16xf32>
    %9 = arith.maximumf %8, %7 : vector<128x16xf32>
    %10 = vector.broadcast %cst_2 : f32 to vector<128x16xf32>
    %11 = arith.minimumf %10, %9 : vector<128x16xf32>
    %12 = arith.truncf %11 : vector<128x16xf32> to vector<128x16xbf16>
    %c0_3 = arith.constant 0 : index
    %c0_4 = arith.constant 0 : index
    %13 = vector.load %arg3[%c0_3, %c0_4] : memref<16x32xbf16, #tpu.memory_space<vmem>>, vector<16x32xbf16>
    %cst_5 = arith.constant dense<0.000000e+00> : vector<128x32xf32>
    %14 = tpu.matmul %12, %13, %cst_5 {dimension_numbers = #tpu.dot_dimension_numbers<[1], [0], [0], [1], [0, 0, 1, 1], [], []>} : vector<128x16xbf16>, vector<16x32xbf16>, vector<128x32xf32> -> vector<128x32xf32>
    %cst_6 = arith.constant dense<0.000000e+00> : vector<32xf32>
    %15 = vector.multi_reduction <add>, %14, %cst_6 [0] : vector<128x32xf32> to vector<32xf32>
    %16 = vector.shape_cast %15 : vector<32xf32> to vector<1x32xf32>
    %17 = arith.mulf %14, %14 : vector<128x32xf32>
    %cst_7 = arith.constant dense<0.000000e+00> : vector<32xf32>
    %18 = vector.multi_reduction <add>, %17, %cst_7 [0] : vector<128x32xf32> to vector<32xf32>
    %19 = vector.shape_cast %18 : vector<32xf32> to vector<1x32xf32>
    %20 = tpu.iota {dimensions = array<i32: 0>} : vector<8x32xi32>
    %c0_i32 = arith.constant 0 : i32
    %21 = vector.broadcast %c0_i32 : i32 to vector<8x32xi32>
    %22 = arith.cmpi eq, %20, %21 : vector<8x32xi32>
    %c1_i32 = arith.constant 1 : i32
    %23 = vector.broadcast %c1_i32 : i32 to vector<8x32xi32>
    %24 = arith.cmpi eq, %20, %23 : vector<8x32xi32>
    %cst_8 = arith.constant 0.000000e+00 : f32
    %25 = vector.shape_cast %19 : vector<1x32xf32> to vector<1x32xf32>
    %26 = vector.broadcast %25 : vector<1x32xf32> to vector<8x32xf32>
    %27 = vector.broadcast %cst_8 : f32 to vector<8x32xf32>
    %28 = arith.select %24, %26, %27 : vector<8x32xi1>, vector<8x32xf32>
    %29 = vector.shape_cast %16 : vector<1x32xf32> to vector<1x32xf32>
    %30 = vector.broadcast %29 : vector<1x32xf32> to vector<8x32xf32>
    %31 = arith.select %22, %30, %28 : vector<8x32xi1>, vector<8x32xf32>
    %c0_9 = arith.constant 0 : index
    %c0_10 = arith.constant 0 : index
    %32 = vector.load %arg4[%c0_9, %c0_10] : memref<8x32xf32, #tpu.memory_space<vmem>>, vector<8x32xf32>
    tpu.vector_store %arg4[%c0_9, %c0_10], %31 {strides = array<i32>} : memref<8x32xf32, #tpu.memory_space<vmem>>, vector<8x32xf32>,
    return
  }
  func.func @transform_0(%arg0: i32) -> i32 {
    %c0_i32 = arith.constant 0 : i32
    %c0_i32_0 = arith.constant 0 : i32
    return %c0_i32 : i32
  }
  func.func @transform_1(%arg0: i32) -> (i32, i32) {
    %c0_i32 = arith.constant 0 : i32
    %c0_i32_0 = arith.constant 0 : i32
    return %arg0, %c0_i32 : i32, i32
  }
  func.func @transform_2(%arg0: i32) -> (i32, i32) {
    %c0_i32 = arith.constant 0 : i32
    %c0_i32_0 = arith.constant 0 : i32
    %c0_i32_1 = arith.constant 0 : i32
    return %c0_i32, %c0_i32_0 : i32, i32
  }
  func.func @transform_3(%arg0: i32) -> (i32, i32) {
    %c0_i32 = arith.constant 0 : i32
    %c0_i32_0 = arith.constant 0 : i32
    return %arg0, %c0_i32 : i32, i32
  }
}

module attributes {stable_mosaic.version = 11 : i64} {
  func.func @kernel(%arg0: i32, %arg1: memref<2xf32, #tpu.memory_space<smem>>, %arg2: memref<64x16xf32, #tpu.memory_space<vmem>>, %arg3: memref<16x32xbf16, #tpu.memory_space<vmem>>, %arg4: memref<8x32xf32, #tpu.memory_space<vmem>>, %arg5: memref<8x32xf32, #tpu.memory_space<vmem>>) attributes {dimension_semantics = [#tpu.dimension_semantics<parallel>], iteration_bounds = array<i64: 2>, scalar_prefetch = 0 : i64, scratch_operands = 0 : i64, tpu.core_type = #tpu.core_type<tc>, window_params = [{transform_indices = @transform_0, window_bounds = array<i64: 2>}, {pipeline_mode = #tpu.pipeline_mode<double_buffered>, transform_indices = @transform_1, window_bounds = array<i64: 64, 16>}, {pipeline_mode = #tpu.pipeline_mode<synchronous>, transform_indices = @transform_2, window_bounds = array<i64: 16, 32>}, {pipeline_mode = #tpu.pipeline_mode<synchronous>, transform_indices = @transform_3, window_bounds = array<i64: 8, 32>}, {transform_indices = @transform_4, window_bounds = array<i64: 8, 32>}]} {
    %c0 = arith.constant 0 : index
    %0 = memref.load %arg1[%c0] : memref<2xf32, #tpu.memory_space<smem>>
    %c1 = arith.constant 1 : index
    %1 = memref.load %arg1[%c1] : memref<2xf32, #tpu.memory_space<smem>>
    %c0_0 = arith.constant 0 : index
    %c0_1 = arith.constant 0 : index
    %2 = vector.load %arg2[%c0_0, %c0_1] : memref<64x16xf32, #tpu.memory_space<vmem>>, vector<64x16xf32>
    %3 = vector.broadcast %0 : f32 to vector<64x16xf32>
    %4 = arith.mulf %2, %3 : vector<64x16xf32>
    %5 = vector.broadcast %1 : f32 to vector<64x16xf32>
    %6 = arith.addf %4, %5 : vector<64x16xf32>
    %7 = math.roundeven %6 : vector<64x16xf32>
    %cst = arith.constant -1.280000e+02 : f32
    %cst_2 = arith.constant 1.270000e+02 : f32
    %8 = vector.broadcast %cst : f32 to vector<64x16xf32>
    %9 = arith.maximumf %8, %7 : vector<64x16xf32>
    %10 = vector.broadcast %cst_2 : f32 to vector<64x16xf32>
    %11 = arith.minimumf %10, %9 : vector<64x16xf32>
    %12 = arith.truncf %11 : vector<64x16xf32> to vector<64x16xbf16>
    %c0_3 = arith.constant 0 : index
    %c0_4 = arith.constant 0 : index
    %13 = vector.load %arg3[%c0_3, %c0_4] : memref<16x32xbf16, #tpu.memory_space<vmem>>, vector<16x32xbf16>
    %cst_5 = arith.constant dense<0.000000e+00> : vector<64x32xf32>
    %14 = tpu.matmul %12, %13, %cst_5 {dimension_numbers = #tpu.dot_dimension_numbers<[1], [0], [0], [1], [0, 0, 1, 1], [], []>} : vector<64x16xbf16>, vector<16x32xbf16>, vector<64x32xf32> -> vector<64x32xf32>
    %c0_6 = arith.constant 0 : index
    %c0_7 = arith.constant 0 : index
    %15 = vector.load %arg4[%c0_6, %c0_7] : memref<8x32xf32, #tpu.memory_space<vmem>>, vector<8x32xf32>
    %16 = vector.extract_strided_slice %15 {offsets = [0, 0], sizes = [1, 32], strides = [1, 1]} : vector<8x32xf32> to vector<1x32xf32>
    %17 = vector.broadcast %16 : vector<1x32xf32> to vector<64x32xf32>
    %18 = arith.mulf %14, %17 : vector<64x32xf32>
    %19 = vector.extract_strided_slice %15 {offsets = [1, 0], sizes = [1, 32], strides = [1, 1]} : vector<8x32xf32> to vector<1x32xf32>
    %20 = vector.broadcast %19 : vector<1x32xf32> to vector<64x32xf32>
    %21 = arith.addf %18, %20 : vector<64x32xf32>
    %cst_8 = arith.constant 0.000000e+00 : f32
    %22 = vector.broadcast %cst_8 : f32 to vector<64x32xf32>
    %23 = arith.maximumf %21, %22 : vector<64x32xf32>
    %24 = vector.shape_cast %23 : vector<64x32xf32> to vector<8x8x32xf32>
    %cst_9 = arith.constant dense<0xFF800000> : vector<8x32xf32>
    %25 = vector.multi_reduction <maximumf>, %24, %cst_9 [1] : vector<8x8x32xf32> to vector<8x32xf32>
    %c0_10 = arith.constant 0 : index
    %c0_11 = arith.constant 0 : index
    %26 = vector.load %arg5[%c0_10, %c0_11] : memref<8x32xf32, #tpu.memory_space<vmem>>, vector<8x32xf32>
    tpu.vector_store %arg5[%c0_10, %c0_11], %25 {strides = array<i32>} : memref<8x32xf32, #tpu.memory_space<vmem>>, vector<8x32xf32>,
    return
  }
  func.func @transform_0(%arg0: i32) -> i32 {
    %c0_i32 = arith.constant 0 : i32
    %c0_i32_0 = arith.constant 0 : i32
    return %c0_i32 : i32
  }
  func.func @transform_1(%arg0: i32) -> (i32, i32) {
    %c0_i32 = arith.constant 0 : i32
    %c0_i32_0 = arith.constant 0 : i32
    return %arg0, %c0_i32 : i32, i32
  }
  func.func @transform_2(%arg0: i32) -> (i32, i32) {
    %c0_i32 = arith.constant 0 : i32
    %c0_i32_0 = arith.constant 0 : i32
    %c0_i32_1 = arith.constant 0 : i32
    return %c0_i32, %c0_i32_0 : i32, i32
  }
  func.func @transform_3(%arg0: i32) -> (i32, i32) {
    %c0_i32 = arith.constant 0 : i32
    %c0_i32_0 = arith.constant 0 : i32
    %c0_i32_1 = arith.constant 0 : i32
    return %c0_i32, %c0_i32_0 : i32, i32
  }
  func.func @transform_4(%arg0: i32) -> (i32, i32) {
    %c0_i32 = arith.constant 0 : i32
    %c0_i32_0 = arith.constant 0 : i32
    return %arg0, %c0_i32 : i32, i32
  }
}

module attributes {stable_mosaic.version = 11 : i64} {
  func.func @kernel(%arg0: i32, %arg1: memref<2xf32, #tpu.memory_space<smem>>, %arg2: memref<128x16xf32, #tpu.memory_space<vmem>>, %arg3: memref<16x32xbf16, #tpu.memory_space<vmem>>, %arg4: memref<8x32xf32, #tpu.memory_space<vmem>>, %arg5: memref<128x32xf32, #tpu.memory_space<vmem>>, %arg6: memref<8x32xf32, #tpu.memory_space<vmem>>) attributes {dimension_semantics = [#tpu.dimension_semantics<parallel>], iteration_bounds = array<i64: 2>, scalar_prefetch = 0 : i64, scratch_operands = 0 : i64, tpu.core_type = #tpu.core_type<tc>, window_params = [{transform_indices = @transform_0, window_bounds = array<i64: 2>}, {pipeline_mode = #tpu.pipeline_mode<double_buffered>, transform_indices = @transform_1, window_bounds = array<i64: 128, 16>}, {pipeline_mode = #tpu.pipeline_mode<synchronous>, transform_indices = @transform_2, window_bounds = array<i64: 16, 32>}, {pipeline_mode = #tpu.pipeline_mode<synchronous>, transform_indices = @transform_3, window_bounds = array<i64: 8, 32>}, {transform_indices = @transform_4, window_bounds = array<i64: 128, 32>}, {transform_indices = @transform_5, window_bounds = array<i64: 8, 32>}]} {
    %c0 = arith.constant 0 : index
    %0 = memref.load %arg1[%c0] : memref<2xf32, #tpu.memory_space<smem>>
    %c1 = arith.constant 1 : index
    %1 = memref.load %arg1[%c1] : memref<2xf32, #tpu.memory_space<smem>>
    %c0_0 = arith.constant 0 : index
    %c0_1 = arith.constant 0 : index
    %2 = vector.load %arg2[%c0_0, %c0_1] : memref<128x16xf32, #tpu.memory_space<vmem>>, vector<128x16xf32>
    %3 = vector.broadcast %0 : f32 to vector<128x16xf32>
    %4 = arith.mulf %2, %3 : vector<128x16xf32>
    %5 = vector.broadcast %1 : f32 to vector<128x16xf32>
    %6 = arith.addf %4, %5 : vector<128x16xf32>
    %7 = math.roundeven %6 : vector<128x16xf32>
    %cst = arith.constant -1.280000e+02 : f32
    %cst_2 = arith.constant 1.270000e+02 : f32
    %8 = vector.broadcast %cst : f32 to vector<128x16xf32>
    %9 = arith.maximumf %8, %7 : vector<128x16xf32>
    %10 = vector.broadcast %cst_2 : f32 to vector<128x16xf32>
    %11 = arith.minimumf %10, %9 : vector<128x16xf32>
    %12 = arith.truncf %11 : vector<128x16xf32> to vector<128x16xbf16>
    %c0_3 = arith.constant 0 : index
    %c0_4 = arith.constant 0 : index
    %13 = vector.load %arg3[%c0_3, %c0_4] : memref<16x32xbf16, #tpu.memory_space<vmem>>, vector<16x32xbf16>
    %cst_5 = arith.constant dense<0.000000e+00> : vector<128x32xf32>
    %14 = tpu.matmul %12, %13, %cst_5 {dimension_numbers = #tpu.dot_dimension_numbers<[1], [0], [0], [1], [0, 0, 1, 1], [], []>} : vector<128x16xbf16>, vector<16x32xbf16>, vector<128x32xf32> -> vector<128x32xf32>
    %c0_6 = arith.constant 0 : index
    %c0_7 = arith.constant 0 : index
    %15 = vector.load %arg4[%c0_6, %c0_7] : memref<8x32xf32, #tpu.memory_space<vmem>>, vector<8x32xf32>
    %16 = vector.extract_strided_slice %15 {offsets = [0, 0], sizes = [1, 32], strides = [1, 1]} : vector<8x32xf32> to vector<1x32xf32>
    %17 = vector.broadcast %16 : vector<1x32xf32> to vector<128x32xf32>
    %18 = arith.mulf %14, %17 : vector<128x32xf32>
    %19 = vector.extract_strided_slice %15 {offsets = [1, 0], sizes = [1, 32], strides = [1, 1]} : vector<8x32xf32> to vector<1x32xf32>
    %20 = vector.broadcast %19 : vector<1x32xf32> to vector<128x32xf32>
    %21 = arith.addf %18, %20 : vector<128x32xf32>
    %cst_8 = arith.constant 0.000000e+00 : f32
    %22 = vector.broadcast %cst_8 : f32 to vector<128x32xf32>
    %23 = arith.maximumf %21, %22 : vector<128x32xf32>
    %c0_9 = arith.constant 0 : index
    %c0_10 = arith.constant 0 : index
    %24 = vector.load %arg5[%c0_9, %c0_10] : memref<128x32xf32, #tpu.memory_space<vmem>>, vector<128x32xf32>
    tpu.vector_store %arg5[%c0_9, %c0_10], %23 {strides = array<i32>} : memref<128x32xf32, #tpu.memory_space<vmem>>, vector<128x32xf32>,
    %25 = tpu.iota {dimensions = array<i32: 0>} : vector<8x32xi32>
    %c0_i32 = arith.constant 0 : i32
    %26 = vector.broadcast %c0_i32 : i32 to vector<8x32xi32>
    %27 = arith.cmpi eq, %25, %26 : vector<8x32xi32>
    %28 = vector.shape_cast %23 : vector<128x32xf32> to vector<1x128x32xf32>
    %cst_11 = arith.constant dense<0x7F800000> : vector<1xf32>
    %29 = vector.multi_reduction <minimumf>, %28, %cst_11 [1, 2] : vector<1x128x32xf32> to vector<1xf32>
    %30 = vector.shape_cast %29 : vector<1xf32> to vector<1x1x1xf32>
    %31 = vector.extract %30[0, 0, 0] : f32 from vector<1x1x1xf32>
    %c1_i32 = arith.constant 1 : i32
    %32 = vector.broadcast %c1_i32 : i32 to vector<8x32xi32>
    %33 = arith.cmpi eq, %25, %32 : vector<8x32xi32>
    %34 = vector.shape_cast %23 : vector<128x32xf32> to vector<1x128x32xf32>
    %cst_12 = arith.constant dense<0xFF800000> : vector<1xf32>
    %35 = vector.multi_reduction <maximumf>, %34, %cst_12 [1, 2] : vector<1x128x32xf32> to vector<1xf32>
    %36 = vector.shape_cast %35 : vector<1xf32> to vector<1x1x1xf32>
    %37 = vector.extract %36[0, 0, 0] : f32 from vector<1x1x1xf32>
    %cst_13 = arith.constant 0.000000e+00 : f32
    %38 = vector.broadcast %37 : f32 to vector<8x32xf32>
    %39 = vector.broadcast %cst_13 : f32 to vector<8x32xf32>
    %40 = arith.select %33, %38, %39 : vector<8x32xi1>, vector<8x32xf32>
    %41 = vector.broadcast %31 : f32 to vector<8x32xf32>
    %42 = arith.select %27, %41, %40 : vector<8x32xi1>, vector<8x32xf32>
    %c0_14 = arith.constant 0 : index
    %c0_15 = arith.constant 0 : index
    %43 = vector.load %arg6[%c0_14, %c0_15] : memref<8x32xf32, #tpu.memory_space<vmem>>, vector<8x32xf32>
    tpu.vector_store %arg6[%c0_14, %c0_15], %42 {strides = array<i32>} : memref<8x32xf32, #tpu.memory_space<vmem>>, vector<8x32xf32>,
    return
  }
  func.func @transform_0(%arg0: i32) -> i32 {
    %c0_i32 = arith.constant 0 : i32
    %c0_i32_0 = arith.constant 0 : i32
    return %c0_i32 : i32
  }
  func.func @transform_1(%arg0: i32) -> (i32, i32) {
    %c0_i32 = arith.constant 0 : i32
    %c0_i32_0 = arith.constant 0 : i32
    return %arg0, %c0_i32 : i32, i32
  }
  func.func @transform_2(%arg0: i32) -> (i32, i32) {
    %c0_i32 = arith.constant 0 : i32
    %c0_i32_0 = arith.constant 0 : i32
    %c0_i32_1 = arith.constant 0 : i32
    return %c0_i32, %c0_i32_0 : i32, i32
  }
  func.func @transform_3(%arg0: i32) -> (i32, i32) {
    %c0_i32 = arith.constant 0 : i32
    %c0_i32_0 = arith.constant 0 : i32
    %c0_i32_1 = arith.constant 0 : i32
    return %c0_i32, %c0_i32_0 : i32, i32
  }
  func.func @transform_4(%arg0: i32) -> (i32, i32) {
    %c0_i32 = arith.constant 0 : i32
    %c0_i32_0 = arith.constant 0 : i32
    return %arg0, %c0_i32 : i32, i32
  }
  func.func @transform_5(%arg0: i32) -> (i32, i32) {
    %c0_i32 = arith.constant 0 : i32
    %c0_i32_0 = arith.constant 0 : i32
    return %arg0, %c0_i32 : i32, i32
  }
}

module attributes {stable_mosaic.version = 11 : i64} {
  func.func @kernel(%arg0: i32, %arg1: memref<2xf32, #tpu.memory_space<smem>>, %arg2: memref<128x32xf32, #tpu.memory_space<vmem>>, %arg3: memref<32x64xbf16, #tpu.memory_space<vmem>>, %arg4: memref<8x64xf32, #tpu.memory_space<vmem>>) attributes {dimension_semantics = [#tpu.dimension_semantics<parallel>], iteration_bounds = array<i64: 2>, scalar_prefetch = 0 : i64, scratch_operands = 0 : i64, tpu.core_type = #tpu.core_type<tc>, window_params = [{transform_indices = @transform_0, window_bounds = array<i64: 2>}, {pipeline_mode = #tpu.pipeline_mode<double_buffered>, transform_indices = @transform_1, window_bounds = array<i64: 128, 32>}, {pipeline_mode = #tpu.pipeline_mode<synchronous>, transform_indices = @transform_2, window_bounds = array<i64: 32, 64>}, {transform_indices = @transform_3, window_bounds = array<i64: 8, 64>}]} {
    %c0 = arith.constant 0 : index
    %0 = memref.load %arg1[%c0] : memref<2xf32, #tpu.memory_space<smem>>
    %c1 = arith.constant 1 : index
    %1 = memref.load %arg1[%c1] : memref<2xf32, #tpu.memory_space<smem>>
    %c0_0 = arith.constant 0 : index
    %c0_1 = arith.constant 0 : index
    %2 = vector.load %arg2[%c0_0, %c0_1] : memref<128x32xf32, #tpu.memory_space<vmem>>, vector<128x32xf32>
    %3 = vector.broadcast %0 : f32 to vector<128x32xf32>
    %4 = arith.mulf %2, %3 : vector<128x32xf32>
    %5 = vector.broadcast %1 : f32 to vector<128x32xf32>
    %6 = arith.addf %4, %5 : vector<128x32xf32>
    %7 = math.roundeven %6 : vector<128x32xf32>
    %cst = arith.constant -1.280000e+02 : f32
    %cst_2 = arith.constant 1.270000e+02 : f32
    %8 = vector.broadcast %cst : f32 to vector<128x32xf32>
    %9 = arith.maximumf %8, %7 : vector<128x32xf32>
    %10 = vector.broadcast %cst_2 : f32 to vector<128x32xf32>
    %11 = arith.minimumf %10, %9 : vector<128x32xf32>
    %12 = arith.truncf %11 : vector<128x32xf32> to vector<128x32xbf16>
    %c0_3 = arith.constant 0 : index
    %c0_4 = arith.constant 0 : index
    %13 = vector.load %arg3[%c0_3, %c0_4] : memref<32x64xbf16, #tpu.memory_space<vmem>>, vector<32x64xbf16>
    %cst_5 = arith.constant dense<0.000000e+00> : vector<128x64xf32>
    %14 = tpu.matmul %12, %13, %cst_5 {dimension_numbers = #tpu.dot_dimension_numbers<[1], [0], [0], [1], [0, 0, 1, 1], [], []>} : vector<128x32xbf16>, vector<32x64xbf16>, vector<128x64xf32> -> vector<128x64xf32>
    %cst_6 = arith.constant dense<0.000000e+00> : vector<64xf32>
    %15 = vector.multi_reduction <add>, %14, %cst_6 [0] : vector<128x64xf32> to vector<64xf32>
    %16 = vector.shape_cast %15 : vector<64xf32> to vector<1x64xf32>
    %17 = arith.mulf %14, %14 : vector<128x64xf32>
    %cst_7 = arith.constant dense<0.000000e+00> : vector<64xf32>
    %18 = vector.multi_reduction <add>, %17, %cst_7 [0] : vector<128x64xf32> to vector<64xf32>
    %19 = vector.shape_cast %18 : vector<64xf32> to vector<1x64xf32>
    %20 = tpu.iota {dimensions = array<i32: 0>} : vector<8x64xi32>
    %c0_i32 = arith.constant 0 : i32
    %21 = vector.broadcast %c0_i32 : i32 to vector<8x64xi32>
    %22 = arith.cmpi eq, %20, %21 : vector<8x64xi32>
    %c1_i32 = arith.constant 1 : i32
    %23 = vector.broadcast %c1_i32 : i32 to vector<8x64xi32>
    %24 = arith.cmpi eq, %20, %23 : vector<8x64xi32>
    %cst_8 = arith.constant 0.000000e+00 : f32
    %25 = vector.shape_cast %19 : vector<1x64xf32> to vector<1x64xf32>
    %26 = vector.broadcast %25 : vector<1x64xf32> to vector<8x64xf32>
    %27 = vector.broadcast %cst_8 : f32 to vector<8x64xf32>
    %28 = arith.select %24, %26, %27 : vector<8x64xi1>, vector<8x64xf32>
    %29 = vector.shape_cast %16 : vector<1x64xf32> to vector<1x64xf32>
    %30 = vector.broadcast %29 : vector<1x64xf32> to vector<8x64xf32>
    %31 = arith.select %22, %30, %28 : vector<8x64xi1>, vector<8x64xf32>
    %c0_9 = arith.constant 0 : index
    %c0_10 = arith.constant 0 : index
    %32 = vector.load %arg4[%c0_9, %c0_10] : memref<8x64xf32, #tpu.memory_space<vmem>>, vector<8x64xf32>
    tpu.vector_store %arg4[%c0_9, %c0_10], %31 {strides = array<i32>} : memref<8x64xf32, #tpu.memory_space<vmem>>, vector<8x64xf32>,
    return
  }
  func.func @transform_0(%arg0: i32) -> i32 {
    %c0_i32 = arith.constant 0 : i32
    %c0_i32_0 = arith.constant 0 : i32
    return %c0_i32 : i32
  }
  func.func @transform_1(%arg0: i32) -> (i32, i32) {
    %c0_i32 = arith.constant 0 : i32
    %c0_i32_0 = arith.constant 0 : i32
    return %arg0, %c0_i32 : i32, i32
  }
  func.func @transform_2(%arg0: i32) -> (i32, i32) {
    %c0_i32 = arith.constant 0 : i32
    %c0_i32_0 = arith.constant 0 : i32
    %c0_i32_1 = arith.constant 0 : i32
    return %c0_i32, %c0_i32_0 : i32, i32
  }
  func.func @transform_3(%arg0: i32) -> (i32, i32) {
    %c0_i32 = arith.constant 0 : i32
    %c0_i32_0 = arith.constant 0 : i32
    return %arg0, %c0_i32 : i32, i32
  }
}

module attributes {stable_mosaic.version = 11 : i64} {
  func.func @kernel(%arg0: i32, %arg1: memref<2xf32, #tpu.memory_space<smem>>, %arg2: memref<128x32xf32, #tpu.memory_space<vmem>>, %arg3: memref<32x64xbf16, #tpu.memory_space<vmem>>, %arg4: memref<8x64xf32, #tpu.memory_space<vmem>>, %arg5: memref<8x64xf32, #tpu.memory_space<vmem>>) attributes {dimension_semantics = [#tpu.dimension_semantics<parallel>], iteration_bounds = array<i64: 2>, scalar_prefetch = 0 : i64, scratch_operands = 0 : i64, tpu.core_type = #tpu.core_type<tc>, window_params = [{transform_indices = @transform_0, window_bounds = array<i64: 2>}, {pipeline_mode = #tpu.pipeline_mode<double_buffered>, transform_indices = @transform_1, window_bounds = array<i64: 128, 32>}, {pipeline_mode = #tpu.pipeline_mode<synchronous>, transform_indices = @transform_2, window_bounds = array<i64: 32, 64>}, {pipeline_mode = #tpu.pipeline_mode<synchronous>, transform_indices = @transform_3, window_bounds = array<i64: 8, 64>}, {transform_indices = @transform_4, window_bounds = array<i64: 8, 64>}]} {
    %c0 = arith.constant 0 : index
    %0 = memref.load %arg1[%c0] : memref<2xf32, #tpu.memory_space<smem>>
    %c1 = arith.constant 1 : index
    %1 = memref.load %arg1[%c1] : memref<2xf32, #tpu.memory_space<smem>>
    %c0_0 = arith.constant 0 : index
    %c0_1 = arith.constant 0 : index
    %2 = vector.load %arg2[%c0_0, %c0_1] : memref<128x32xf32, #tpu.memory_space<vmem>>, vector<128x32xf32>
    %3 = vector.broadcast %0 : f32 to vector<128x32xf32>
    %4 = arith.mulf %2, %3 : vector<128x32xf32>
    %5 = vector.broadcast %1 : f32 to vector<128x32xf32>
    %6 = arith.addf %4, %5 : vector<128x32xf32>
    %7 = math.roundeven %6 : vector<128x32xf32>
    %cst = arith.constant -1.280000e+02 : f32
    %cst_2 = arith.constant 1.270000e+02 : f32
    %8 = vector.broadcast %cst : f32 to vector<128x32xf32>
    %9 = arith.maximumf %8, %7 : vector<128x32xf32>
    %10 = vector.broadcast %cst_2 : f32 to vector<128x32xf32>
    %11 = arith.minimumf %10, %9 : vector<128x32xf32>
    %12 = arith.truncf %11 : vector<128x32xf32> to vector<128x32xbf16>
    %c0_3 = arith.constant 0 : index
    %c0_4 = arith.constant 0 : index
    %13 = vector.load %arg3[%c0_3, %c0_4] : memref<32x64xbf16, #tpu.memory_space<vmem>>, vector<32x64xbf16>
    %cst_5 = arith.constant dense<0.000000e+00> : vector<128x64xf32>
    %14 = tpu.matmul %12, %13, %cst_5 {dimension_numbers = #tpu.dot_dimension_numbers<[1], [0], [0], [1], [0, 0, 1, 1], [], []>} : vector<128x32xbf16>, vector<32x64xbf16>, vector<128x64xf32> -> vector<128x64xf32>
    %c0_6 = arith.constant 0 : index
    %c0_7 = arith.constant 0 : index
    %15 = vector.load %arg4[%c0_6, %c0_7] : memref<8x64xf32, #tpu.memory_space<vmem>>, vector<8x64xf32>
    %16 = vector.extract_strided_slice %15 {offsets = [0, 0], sizes = [1, 64], strides = [1, 1]} : vector<8x64xf32> to vector<1x64xf32>
    %17 = vector.broadcast %16 : vector<1x64xf32> to vector<128x64xf32>
    %18 = arith.mulf %14, %17 : vector<128x64xf32>
    %19 = vector.extract_strided_slice %15 {offsets = [1, 0], sizes = [1, 64], strides = [1, 1]} : vector<8x64xf32> to vector<1x64xf32>
    %20 = vector.broadcast %19 : vector<1x64xf32> to vector<128x64xf32>
    %21 = arith.addf %18, %20 : vector<128x64xf32>
    %cst_8 = arith.constant 0.000000e+00 : f32
    %22 = vector.broadcast %cst_8 : f32 to vector<128x64xf32>
    %23 = arith.maximumf %21, %22 : vector<128x64xf32>
    %24 = vector.shape_cast %23 : vector<128x64xf32> to vector<8x16x64xf32>
    %cst_9 = arith.constant dense<0xFF800000> : vector<8x64xf32>
    %25 = vector.multi_reduction <maximumf>, %24, %cst_9 [1] : vector<8x16x64xf32> to vector<8x64xf32>
    %c0_10 = arith.constant 0 : index
    %c0_11 = arith.constant 0 : index
    %26 = vector.load %arg5[%c0_10, %c0_11] : memref<8x64xf32, #tpu.memory_space<vmem>>, vector<8x64xf32>
    tpu.vector_store %arg5[%c0_10, %c0_11], %25 {strides = array<i32>} : memref<8x64xf32, #tpu.memory_space<vmem>>, vector<8x64xf32>,
    return
  }
  func.func @transform_0(%arg0: i32) -> i32 {
    %c0_i32 = arith.constant 0 : i32
    %c0_i32_0 = arith.constant 0 : i32
    return %c0_i32 : i32
  }
  func.func @transform_1(%arg0: i32) -> (i32, i32) {
    %c0_i32 = arith.constant 0 : i32
    %c0_i32_0 = arith.constant 0 : i32
    return %arg0, %c0_i32 : i32, i32
  }
  func.func @transform_2(%arg0: i32) -> (i32, i32) {
    %c0_i32 = arith.constant 0 : i32
    %c0_i32_0 = arith.constant 0 : i32
    %c0_i32_1 = arith.constant 0 : i32
    return %c0_i32, %c0_i32_0 : i32, i32
  }
  func.func @transform_3(%arg0: i32) -> (i32, i32) {
    %c0_i32 = arith.constant 0 : i32
    %c0_i32_0 = arith.constant 0 : i32
    %c0_i32_1 = arith.constant 0 : i32
    return %c0_i32, %c0_i32_0 : i32, i32
  }
  func.func @transform_4(%arg0: i32) -> (i32, i32) {
    %c0_i32 = arith.constant 0 : i32
    %c0_i32_0 = arith.constant 0 : i32
    return %arg0, %c0_i32 : i32, i32
  }
}

</mosaic_0001>

<bundles_post_ra>
// kernel: custom-call.12
= control target key start
LH: loop header
LB: loop body
LE: loop exit
PB: predicated region body
PF: predicated region fallthrough
CT: control target
= control target key end

     0   :  { %s6_s0 = inlined_call_operand.vmem [shape: f32[2,32], index: 0, kind: output, shape index: {}]  }

// kernel: pointnet_sa_module_msg_forward.9
= control target key start
LH: loop header
LB: loop body
LE: loop exit
PB: predicated region body
PF: predicated region fallthrough
CT: control target
= control target key end

     0   :  { %11 = vsyncpa [#allocation3], 0  ;;  %s723_s18 = smov 0   ;;  %s850_s0 = inlined_call_operand.vmem [shape: f32[2], index: 0, kind: input, shape index: {}]   ;;  %s851_s1 = inlined_call_operand.vmem [shape: f32[128,16], index: 1, kind: input, shape index: {}]   ;;  %s852_s2 = inlined_call_operand.vmem [shape: bf16[16,16], index: 2, kind: input, shape index: {}]   ;;  %s853_s3 = inlined_call_operand.vmem [shape: f32[8,16], index: 3, kind: input, shape index: {}]   ;;  %s854_s4 = inlined_call_operand.vmem [shape: f32[128,16], index: 4, kind: output, shape index: {0}]   ;;  %s855_s5 = inlined_call_operand.vmem [shape: f32[16,16], index: 5, kind: output, shape index: {1}]  }
   0x1 LB: > { %s729_s19 = sadd.s32 4294967295, %s690_s18   ;;  %p553_p0 = scmp.ge.s32.totalorder %s690_s18, 1  ;;  %s690_s18 = sphi %s723_s18, %s17_s18  }
   0x2   : > { %p163_p1 = scmp.lt.s32.totalorder %s690_s18, 3  ;;  %s175_s22 = sshll.u32 %s850_s0, 4  ;;  %s176_s22 = int_to_ptr.vmem [resolvable:$true] %s175_s22 }
   0x3   : > { %p654_p3 = scmp.eq.s32.totalorder %s729_s19, 0  ;;  %s692_s23 = smov [#allocation2]  }
   0x4   : > { %p164_p2 = pnand %p553_p0, %p163_p1 }
   0x6   : > { %p650_p4 = pneg %p164_p2  ;;  %203 = sbr.rel (%p164_p2) target bundleno = 398 (0x18e), region = 36 }
   0x8   : > { %p651_p5 = pnand %p654_p3, %p650_p4 }
   0xa   : > { %653 = dma.vmem_to_smem (!%p651_p5), %s176_s22, 16, %s692_s23, [#allocation3]  }
   0xb   : > { %685 = dma.done.wait (%p654_p3), [#allocation3], 16  }
   0xc   : > { %687 = vsyncadd (%p654_p3), [#allocation3], 4294967280 }
   0xd   : > { %210 = sfence }
   0xe   : > { %v574_v0 = vld [vmem:[%s852_s2] sm:$0xff]  ;;  %s558_s26 = sshll.u32 %s729_s19, 3  ;;  %s254_s27 = sld [smem:[#allocation2]]  ;;  %vm318_vm5 = vcmask 130048  }
   0xf   : > { %p238_p6 = scmp.lt.s32.totalorder %s558_s26, 15  ;;  %s563_s28 = sld [smem:[#allocation2 + $0x1]]  ;;  %338 = vmatpush.bf16.msra.mxu0 %v574_v0  ;;  %575 = vmatpush.bf16.msra.mxu1 %v574_v0 }
  0x10   : > { %576 = vmatpush.bf16.msra.mxu2 %v574_v0  ;;  %577 = vmatpush.bf16.msra.mxu3 %v574_v0  ;;  %p249_p7 = scmp.lt.s32.totalorder %s729_s19, 1 }
  0x11   : > { %s867_s26 = smov (!%p238_p6, %s558_s26), 15 }
  0x12   : > { %s559_s29 = sshll.u32 %s867_s26, 3  ;;  %s869_s19 = smov (!%p249_p7, %s729_s19), 1 }
  0x13   : > { %s241_s7 = scalar_lea.vmem %s851_s1, %s559_s29  ;;  %s807_s12 = scalar_lea.vmem %s854_s4, %s559_s29 }
  0x14   : > { %v264_v1 = vstv %s254_s27  ;;  %v256_v2 = vld [vmem:[%s241_s7] sm:$0xff]  ;;  %v257_v3 = vld [vmem:[%s241_s7 + $0x8] sm:$0xff]  ;;  %v258_v5 = vld [vmem:[%s241_s7 + $0x10] sm:$0xff]  ;;  %s562_s13 = sshll.u32 %s869_s19, 3 }
  0x15   : > { %v749_v4 = vstv %s563_s28  ;;  %v265_v6 = vmul.f32 %v264_v1, %v256_v2  ;;  %v266_v7 = vmul.f32 %v264_v1, %v257_v3  ;;  %v259_v8 = vld [vmem:[%s241_s7 + $0x18] sm:$0xff]  ;;  %v267_v9 = vmul.f32 %v264_v1, %v258_v5  ;;  %v260_v10 = vld [vmem:[%s241_s7 + $0x20] sm:$0xff]  ;;  %v261_v11 = vld [vmem:[%s241_s7 + $0x28] sm:$0xff]  ;;  %s252_s20 = scalar_lea.vmem %s855_s5, %s562_s13 }
  0x16   : > { %v268_v12 = vmul.f32 %v264_v1, %v259_v8  ;;  %v269_v13 = vmul.f32 %v264_v1, %v260_v10  ;;  %v270_v14 = vmul.f32 %v264_v1, %v261_v11  ;;  %v262_v15 = vld [vmem:[%s241_s7 + $0x30] sm:$0xff]  ;;  %v263_v16 = vld [vmem:[%s241_s7 + $0x38] sm:$0xff] }
  0x17   : > { %v274_v17 = vadd.f32 %v749_v4, %v265_v6  ;;  %v275_v18 = vadd.f32 %v749_v4, %v266_v7  ;;  %v276_v19 = vadd.f32 %v749_v4, %v267_v9  ;;  %v271_v23 = vmul.f32 %v264_v1, %v262_v15 }
  0x18   : > { %v277_v20 = vadd.f32 %v749_v4, %v268_v12  ;;  %v278_v21 = vadd.f32 %v749_v4, %v269_v13  ;;  %v757_v22 = vadd.f32 %v749_v4, %v270_v14  ;;  %v272_v27 = vmul.f32 %v264_v1, %v263_v16 }
  0x19   : > { %v578_v24 = vand.u32 2147483647, %v274_v17  ;;  %v580_v25 = vcvt.f32.s32 %v274_v17  ;;  %v586_v26 = vand.u32 2147483647, %v275_v18  ;;  %v583_v28 = vand.u32 2147483648, %v274_v17 }
  0x1a   : > { %v588_v29 = vcvt.f32.s32 %v275_v18  ;;  %v594_v30 = vand.u32 2147483647, %v276_v19  ;;  %v596_v31 = vcvt.f32.s32 %v276_v19  ;;  %v591_v35 = vand.u32 2147483648, %v275_v18 }
  0x1b   : > { %vm759_vm0 = vcmp.lt.f32.partialorder %v578_v24, 8388608.0  ;;  %v581_v33 = vcvt.s32.f32 %v580_v25  ;;  %vm763_vm1 = vcmp.lt.f32.partialorder %v586_v26, 8388608.0  ;;  %v599_v38 = vand.u32 2147483648, %v276_v19 }
  0x1c   : > { %v589_v36 = vcvt.s32.f32 %v588_v29  ;;  %v597_v37 = vcvt.s32.f32 %v596_v31  ;;  %v602_v39 = vand.u32 2147483647, %v277_v20  ;;  %vm767_vm2 = vcmp.lt.f32.partialorder %v594_v30, 8388608.0 }
  0x1d   : > { %v582_v40 = vand.u32 2147483647, %v581_v33  ;;  %v604_v42 = vcvt.f32.s32 %v277_v20  ;;  %v610_v43 = vand.u32 2147483647, %v278_v21  ;;  %v607_v46 = vand.u32 2147483648, %v277_v20 }
  0x1e   : > { %v590_v44 = vand.u32 2147483647, %v589_v36  ;;  %v598_v45 = vand.u32 2147483647, %v597_v37  ;;  %v612_v47 = vcvt.f32.s32 %v278_v21  ;;  %vm771_vm3 = vcmp.lt.f32.partialorder %v602_v39, 8388608.0 }
  0x1f   : > { %v584_v48 = vor.u32 %v583_v28, %v582_v40  ;;  %v605_v50 = vcvt.s32.f32 %v604_v42  ;;  %vm775_vm4 = vcmp.lt.f32.partialorder %v610_v43, 8388608.0  ;;  %v615_v55 = vand.u32 2147483648, %v278_v21 }
  0x20   : > { %v592_v52 = vor.u32 %v591_v35, %v590_v44  ;;  %v600_v53 = vor.u32 %v599_v38, %v598_v45  ;;  %v613_v54 = vcvt.s32.f32 %v612_v47  ;;  %v618_v58 = vand.u32 2147483647, %v757_v22  ;;  %v360_v44 = vld [vmem:[%s853_s3] sm:$0xff] }
  0x21   : > { %v585_v56 = vsel %vm759_vm0, %v584_v48, %v274_v17  ;;  %v606_v57 = vand.u32 2147483647, %v605_v50  ;;  %v620_v59 = vcvt.f32.s32 %v757_v22  ;;  %v623_v3 = vand.u32 2147483648, %v757_v22 }
  0x22   : > { %v593_v60 = vsel %vm763_vm1, %v592_v52, %v275_v18  ;;  %v290_v61 = vmax.f32 %v585_v56, -128.0  ;;  %v601_v62 = vsel %vm767_vm2, %v600_v53, %v276_v19  ;;  %v614_v63 = vand.u32 2147483647, %v613_v54 }
  0x23   : > { %v291_v0 = vmax.f32 %v593_v60, -128.0  ;;  %v608_v1 = vor.u32 %v607_v46, %v606_v57  ;;  %v292_v2 = vmax.f32 %v601_v62, -128.0  ;;  %v621_v7 = vcvt.s32.f32 %v620_v59 }
  0x24   : > { %v298_v5 = vmin.f32 %v290_v61, 127.0  ;;  %v616_v6 = vor.u32 %v615_v55, %v614_v63  ;;  %v280_v8 = vadd.f32 %v749_v4, %v271_v23  ;;  %v281_v11 = vadd.f32 %v749_v4, %v272_v27 }
  0x25   : > { %v299_v9 = vmin.f32 %v291_v0, 127.0  ;;  %v609_v10 = vsel %vm771_vm3, %v608_v1, %v277_v20  ;;  %v300_v13 = vmin.f32 %v292_v2, 127.0  ;;  %v622_v15 = vand.u32 2147483647, %v621_v7 }
  0x26   : > { %v293_v12 = vmax.f32 %v609_v10, -128.0  ;;  %v617_v14 = vsel %vm775_vm4, %v616_v6, %v278_v21  ;;  %vm619_vm6 = vcmp.lt.f32.partialorder %v618_v58, 8388608.0  ;;  %v628_v18 = vcvt.f32.s32 %v280_v8 }
  0x27   : > { %v306_v16 = vpack.c.bf16 %v299_v9, %v298_v5  ;;  %v294_v17 = vmax.f32 %v617_v14, -128.0  ;;  %v624_v24 = vor.u32 %v623_v3, %v622_v15  ;;  %v626_v23 = vand.u32 2147483647, %v280_v8 }
  0x28   : > { %v301_v19 = vmin.f32 %v293_v12, 127.0  ;;  %v629_v25 = vcvt.s32.f32 %v628_v18  ;;  %v631_v26 = vand.u32 2147483648, %v280_v8  ;;  %v636_v20 = vcvt.f32.s32 %v281_v11 }
  0x29   : > { %568 = vmatmul.msk.bf16.vlgmr.msra.gmra.mxu0 %vm318_vm5, %v306_v16  ;;  %v625_v4 = vsel %vm619_vm6, %v624_v24, %v757_v22  ;;  %v302_v27 = vmin.f32 %v294_v17, 127.0  ;;  %v634_v29 = vand.u32 2147483647, %v281_v11  ;;  %v639_v32 = vand.u32 2147483648, %v281_v11 }
  0x2a   : > { %v307_v28 = vpack.c.bf16 %v301_v19, %v300_v13  ;;  %v295_v30 = vmax.f32 %v625_v4, -128.0  ;;  %v630_v21 = vand.u32 2147483647, %v629_v25  ;;  %v637_v31 = vcvt.s32.f32 %v636_v20 }
  0x2b   : > { %vm627_vm7 = vcmp.lt.f32.partialorder %v626_v23, 8388608.0  ;;  %vm635_vm8 = vcmp.lt.f32.partialorder %v634_v29, 8388608.0  ;;  %v361_v45 = vperm.slane %v360_v44, 0  ;;  %v370_v46 = vperm.slane %v360_v44, 1 }
  0x2c   : > { %569 = vmatmul.msk.bf16.vlgmr.msra.gmra.mxu1 %vm318_vm5, %v307_v28  ;;  %v303_v33 = vmin.f32 %v295_v30, 127.0  ;;  %v632_v34 = vor.u32 %v631_v26, %v630_v21  ;;  %v638_v35 = vand.u32 2147483647, %v637_v31 }
  0x2e   : > { %v308_v36 = vpack.c.bf16 %v303_v33, %v302_v27  ;;  %v633_v37 = vsel %vm627_vm7, %v632_v34, %v280_v8  ;;  %v640_v38 = vor.u32 %v639_v32, %v638_v35 }
  0x2f   : > { %v296_v39 = vmax.f32 %v633_v37, -128.0 }
  0x30   : > { %570 = vmatmul.msk.bf16.vlgmr.msra.gmra.mxu2 %vm318_vm5, %v308_v36  ;;  %v641_v22 = vsel %vm635_vm8, %v640_v38, %v281_v11 }
  0x31   : > { %v297_v40 = vmax.f32 %v641_v22, -128.0  ;;  %v304_v41 = vmin.f32 %v296_v39, 127.0 }
  0x33   : > { %v305_v42 = vmin.f32 %v297_v40, 127.0 }
  0x35   : > { %v309_v43 = vpack.c.bf16 %v305_v42, %v304_v41 }
  0x37   : > { %571 = vmatmul.msk.bf16.vlgmr.msra.gmra.mxu3 %vm318_vm5, %v309_v43 }
  0xa6   : > { %v340_v47 = vpop.f32.mrf.mxu0 }
  0xa7   : > { %v362_v48 = vmul.f32 %v361_v45, %v340_v47 }
  0xa9   : > { %v371_v49 = vadd.f32 %v370_v46, %v362_v48  ;;  %v345_v50 = vpop.f32.mrf.mxu1 }
  0xaa   : > { %v364_v51 = vmul.f32 %v361_v45, %v345_v50 }
  0xab   : > { %v379_v52 = vmax.f32 %v371_v49, 0.0 }
  0xac   : > { %v373_v53 = vadd.f32 %v370_v46, %v364_v51 }
  0xad   : > { %387 = vst.msk [vmem:[%s807_s12] sm:$0xff] %vm318_vm5, %v379_v52  ;;  %v398_v16 = vsel %vm318_vm5, %v379_v52, inf  ;;  %v423_v32 = vsel %vm318_vm5, %v379_v52, -inf }
  0xae   : > { %v381_v54 = vmax.f32 %v373_v53, 0.0  ;;  %v342_v55 = vpop.f32.mrf.mxu0 }
  0xaf   : > { %v363_v56 = vmul.f32 %v361_v45, %v342_v55 }
  0xb0   : > { %389 = vst.msk [vmem:[%s807_s12 + $0x10] sm:$0xff] %vm318_vm5, %v381_v54  ;;  %v400_v23 = vsel %vm318_vm5, %v381_v54, inf  ;;  %v425_v33 = vsel %vm318_vm5, %v381_v54, -inf }
  0xb1   : > { %v372_v57 = vadd.f32 %v370_v46, %v363_v56  ;;  %v347_v58 = vpop.f32.mrf.mxu1 }
  0xb2   : > { %v365_v59 = vmul.f32 %v361_v45, %v347_v58 }
  0xb3   : > { %v380_v60 = vmax.f32 %v372_v57, 0.0  ;;  %v350_v61 = vpop.f32.mrf.mxu2 }
  0xb4   : > { %v374_v62 = vadd.f32 %v370_v46, %v365_v59  ;;  %v366_v63 = vmul.f32 %v361_v45, %v350_v61  ;;  %v395_v59 = vlaneseq }
  0xb5   : > { %388 = vst.msk [vmem:[%s807_s12 + $0x8] sm:$0xff] %vm318_vm5, %v380_v60  ;;  %v399_v17 = vsel %vm318_vm5, %v380_v60, inf  ;;  %v424_v34 = vsel %vm318_vm5, %v380_v60, -inf }
  0xb6   : > { %v382_v0 = vmax.f32 %v374_v62, 0.0  ;;  %v375_v1 = vadd.f32 %v370_v46, %v366_v63  ;;  %v396_v60 = vshrl.u32 %v395_v59, 7 }
  0xb8   : > { %390 = vst.msk [vmem:[%s807_s12 + $0x18] sm:$0xff] %vm318_vm5, %v382_v0  ;;  %v383_v2 = vmax.f32 %v375_v1, 0.0  ;;  %v401_v20 = vsel %vm318_vm5, %v382_v0, inf  ;;  %v426_v35 = vsel %vm318_vm5, %v382_v0, -inf  ;;  %vm422_vm9 = vcmp.eq.s32.totalorder %v396_v60, 1 }
  0xb9   : > { %vm397_vm10 = vcmp.eq.s32.totalorder %v396_v60, 0 }
  0xba   : > { %391 = vst.msk [vmem:[%s807_s12 + $0x20] sm:$0xff] %vm318_vm5, %v383_v2  ;;  %v355_v3 = vpop.f32.mrf.mxu3  ;;  %v402_v18 = vsel %vm318_vm5, %v383_v2, inf  ;;  %v427_v36 = vsel %vm318_vm5, %v383_v2, -inf }
  0xbb   : > { %v368_v5 = vmul.f32 %v361_v45, %v355_v3  ;;  %v352_v6 = vpop.f32.mrf.mxu2  ;;  %v403_v26 = vmin.f32 %v398_v16, %v402_v18  ;;  %v428_v40 = vmax.f32 %v423_v32, %v427_v36 }
  0xbc   : > { %v367_v7 = vmul.f32 %v361_v45, %v352_v6 }
  0xbd   : > { %v377_v8 = vadd.f32 %v370_v46, %v368_v5 }
  0xbe   : > { %v376_v9 = vadd.f32 %v370_v46, %v367_v7 }
  0xbf   : > { %v385_v10 = vmax.f32 %v377_v8, 0.0 }
  0xc0   : > { %v384_v11 = vmax.f32 %v376_v9, 0.0 }
  0xc1   : > { %393 = vst.msk [vmem:[%s807_s12 + $0x30] sm:$0xff] %vm318_vm5, %v385_v10  ;;  %v406_v25 = vsel %vm318_vm5, %v385_v10, inf  ;;  %v431_v37 = vsel %vm318_vm5, %v385_v10, -inf }
  0xc2   : > { %392 = vst.msk [vmem:[%s807_s12 + $0x28] sm:$0xff] %vm318_vm5, %v384_v11  ;;  %v357_v12 = vpop.f32.mrf.mxu3  ;;  %v404_v14 = vsel %vm318_vm5, %v384_v11, inf  ;;  %v407_v4 = vmin.f32 %v400_v23, %v406_v25  ;;  %v429_v30 = vsel %vm318_vm5, %v384_v11, -inf  ;;  %v432_v41 = vmax.f32 %v425_v33, %v431_v37 }
  0xc3   : > { %v369_v13 = vmul.f32 %v361_v45, %v357_v12  ;;  %v405_v19 = vmin.f32 %v399_v17, %v404_v14  ;;  %v430_v39 = vmax.f32 %v424_v34, %v429_v30 }
  0xc5   : > { %v378_v15 = vadd.f32 %v370_v46, %v369_v13  ;;  %v410_v29 = vmin.f32 %v403_v26, %v405_v19  ;;  %v435_v42 = vmax.f32 %v428_v40, %v430_v39 }
  0xc7   : > { %v386_v24 = vmax.f32 %v378_v15, 0.0 }
  0xc9   : > { %394 = vst.msk [vmem:[%s807_s12 + $0x38] sm:$0xff] %vm318_vm5, %v386_v24  ;;  %v408_v28 = vsel %vm318_vm5, %v386_v24, inf  ;;  %v433_v21 = vsel %vm318_vm5, %v386_v24, -inf }
  0xca   : > { %v409_v27 = vmin.f32 %v401_v20, %v408_v28  ;;  %v434_v22 = vmax.f32 %v426_v35, %v433_v21 }
  0xcc   : > { %v411_v31 = vmin.f32 %v407_v4, %v409_v27  ;;  %v436_v43 = vmax.f32 %v432_v41, %v434_v22 }
  0xce   : > { %v412_v38 = vmin.f32 %v410_v29, %v411_v31  ;;  %v437_v44 = vmax.f32 %v435_v42, %v436_v43 }
  0xd0   : > { %413 = vmin.xlane.f32.xlu0 %v412_v38 }
  0xd8   : > { %438 = vmax.xlane.f32.xlu0 %v437_v44 }
 0x143   : > { %v414_v45 = vpop.xlane.xlu0 %413 }
 0x144   : > { %v415_v46 = vrot.slane %v414_v45, 4 }
 0x146   : > { %v416_v47 = vmin.f32 %v414_v45, %v415_v46 }
 0x148   : > { %v417_v48 = vrot.slane %v416_v47, 2 }
 0x14a   : > { %v418_v49 = vmin.f32 %v416_v47, %v417_v48 }
 0x14b   : > { %v439_v50 = vpop.xlane.xlu0 %438 }
 0x14c   : > { %v440_v51 = vrot.slane %v439_v50, 4  ;;  %v419_v52 = vrot.slane %v418_v49, 1 }
 0x14e   : > { %v441_v53 = vmax.f32 %v439_v50, %v440_v51  ;;  %v420_v54 = vmin.f32 %v418_v49, %v419_v52 }
 0x150   : > { %v442_v55 = vrot.slane %v441_v53, 2  ;;  %642 = vpush %v420_v54 }
 0x152   : > { %v443_v56 = vmax.f32 %v441_v53, %v442_v55 }
 0x154   : > { %v444_v57 = vrot.slane %v443_v56, 1 }
 0x156   : > { %v445_v58 = vmax.f32 %v443_v56, %v444_v57 }
 0x158   : > { %644 = vpush %v445_v58 }
 0x181   : > { %s643_s14 = spop %642 }
 0x182   : > { %v449_v62 = vstv %s643_s14 }
 0x189   : > { %s645_s15 = spop %644 }
 0x18a   : > { %v447_v61 = vstv %s645_s15 }
 0x18b   : > { %v448_v63 = vsel %vm422_vm9, %v447_v61, 0.0 }
 0x18c   : > { %v450_v0 = vsel %vm397_vm10, %v449_v62, %v448_v63 }
 0x18d   : > { %451 = vst.msk [vmem:[%s252_s20] sm:$0xff] %vm318_vm5, %v450_v0 }
 0x18e PF: > { %s17_s18 = sadd.s32 1, %s690_s18  }
 0x18f   : > { %p14_p8 = scmp.ge.s32.totalorder %s17_s18, 4  }
 0x191   :  { %16 = sbr.rel (!%p14_p8) target bundleno = 1 (0x1), region = 83 }
 0x196   :  { %488 = vsyncpa [#allocation3], 1 }
 0x197   :  { %490 = vsyncpa [#allocation3 + $0x1], 1 }

// kernel: pointnet_sa_module_msg_forward.8
= control target key start
LH: loop header
LB: loop body
LE: loop exit
PB: predicated region body
PF: predicated region fallthrough
CT: control target
= control target key end

     0   :  { %8 = vsyncpa [#allocation3], 0  ;;  %s570_s12 = smov 0   ;;  %s666_s0 = inlined_call_operand.vmem [shape: f32[2], index: 0, kind: input, shape index: {}]   ;;  %s667_s1 = inlined_call_operand.vmem [shape: f32[128,16], index: 1, kind: input, shape index: {}]   ;;  %s668_s2 = inlined_call_operand.vmem [shape: bf16[16,16], index: 2, kind: input, shape index: {}]   ;;  %s669_s3 = inlined_call_operand.vmem [shape: f32[16,16], index: 3, kind: output, shape index: {}]  }
   0x1 LB: > { %s576_s13 = sadd.s32 4294967295, %s547_s12   ;;  %p416_p0 = scmp.ge.s32.totalorder %s547_s12, 1  ;;  %s547_s12 = sphi %s570_s12, %s14_s12  }
   0x2   : > { %p113_p1 = scmp.lt.s32.totalorder %s547_s12, 3  ;;  %s125_s16 = sshll.u32 %s666_s0, 4  ;;  %s126_s16 = int_to_ptr.vmem [resolvable:$true] %s125_s16 }
   0x3   : > { %p511_p3 = scmp.eq.s32.totalorder %s576_s13, 0  ;;  %s549_s17 = smov [#allocation2]  }
   0x4   : > { %p114_p2 = pnand %p416_p0, %p113_p1 }
   0x6   : > { %p507_p4 = pneg %p114_p2  ;;  %150 = sbr.rel (%p114_p2) target bundleno = 215 (0xd7), region = 32 }
   0x8   : > { %p508_p5 = pnand %p511_p3, %p507_p4 }
   0xa   : > { %510 = dma.vmem_to_smem (!%p508_p5), %s126_s16, 16, %s549_s17, [#allocation3]  }
   0xb   : > { %542 = dma.done.wait (%p511_p3), [#allocation3], 16  }
   0xc   : > { %544 = vsyncadd (%p511_p3), [#allocation3], 4294967280 }
   0xd   : > { %157 = sfence }
   0xe   : > { %v435_v0 = vld [vmem:[%s668_s2] sm:$0xff]  ;;  %s421_s20 = sshll.u32 %s576_s13, 3  ;;  %s186_s21 = sld [smem:[#allocation2]]  ;;  %vm250_vm5 = vcmask 130048  }
   0xf   : > { %p176_p6 = scmp.lt.s32.totalorder %s421_s20, 15  ;;  %s424_s22 = sld [smem:[#allocation2 + $0x1]]  ;;  %270 = vmatpush.bf16.msra.mxu0 %v435_v0  ;;  %436 = vmatpush.bf16.msra.mxu1 %v435_v0 }
  0x10   : > { %437 = vmatpush.bf16.msra.mxu2 %v435_v0  ;;  %438 = vmatpush.bf16.msra.mxu3 %v435_v0  ;;  %p181_p7 = scmp.lt.s32.totalorder %s576_s13, 1 }
  0x11   : > { %s681_s20 = smov (!%p176_p6, %s421_s20), 15 }
  0x12   : > { %s422_s23 = sshll.u32 %s681_s20, 3  ;;  %s683_s13 = smov (!%p181_p7, %s576_s13), 1 }
  0x13   : > { %s179_s26 = scalar_lea.vmem %s667_s1, %s422_s23  ;;  %s423_s27 = sshll.u32 %s683_s13, 3 }
  0x14   : > { %v196_v1 = vstv %s186_s21  ;;  %v188_v2 = vld [vmem:[%s179_s26] sm:$0xff]  ;;  %v189_v3 = vld [vmem:[%s179_s26 + $0x8] sm:$0xff]  ;;  %v190_v5 = vld [vmem:[%s179_s26 + $0x10] sm:$0xff]  ;;  %s184_s30 = scalar_lea.vmem %s669_s3, %s423_s27 }
  0x15   : > { %v591_v4 = vstv %s424_s22  ;;  %v197_v6 = vmul.f32 %v196_v1, %v188_v2  ;;  %v198_v7 = vmul.f32 %v196_v1, %v189_v3  ;;  %v191_v8 = vld [vmem:[%s179_s26 + $0x18] sm:$0xff]  ;;  %v199_v9 = vmul.f32 %v196_v1, %v190_v5  ;;  %v192_v10 = vld [vmem:[%s179_s26 + $0x20] sm:$0xff]  ;;  %v193_v11 = vld [vmem:[%s179_s26 + $0x28] sm:$0xff] }
  0x16   : > { %v200_v12 = vmul.f32 %v196_v1, %v191_v8  ;;  %v201_v13 = vmul.f32 %v196_v1, %v192_v10  ;;  %v202_v14 = vmul.f32 %v196_v1, %v193_v11  ;;  %v194_v15 = vld [vmem:[%s179_s26 + $0x30] sm:$0xff]  ;;  %v195_v16 = vld [vmem:[%s179_s26 + $0x38] sm:$0xff] }
  0x17   : > { %v206_v17 = vadd.f32 %v591_v4, %v197_v6  ;;  %v207_v18 = vadd.f32 %v591_v4, %v198_v7  ;;  %v208_v19 = vadd.f32 %v591_v4, %v199_v9  ;;  %v203_v23 = vmul.f32 %v196_v1, %v194_v15 }
  0x18   : > { %v209_v20 = vadd.f32 %v591_v4, %v200_v12  ;;  %v210_v21 = vadd.f32 %v591_v4, %v201_v13  ;;  %v599_v22 = vadd.f32 %v591_v4, %v202_v14  ;;  %v204_v27 = vmul.f32 %v196_v1, %v195_v16 }
  0x19   : > { %v439_v24 = vand.u32 2147483647, %v206_v17  ;;  %v441_v25 = vcvt.f32.s32 %v206_v17  ;;  %v447_v26 = vand.u32 2147483647, %v207_v18  ;;  %v444_v28 = vand.u32 2147483648, %v206_v17 }
  0x1a   : > { %v449_v29 = vcvt.f32.s32 %v207_v18  ;;  %v455_v30 = vand.u32 2147483647, %v208_v19  ;;  %v457_v31 = vcvt.f32.s32 %v208_v19  ;;  %v452_v35 = vand.u32 2147483648, %v207_v18 }
  0x1b   : > { %vm601_vm0 = vcmp.lt.f32.partialorder %v439_v24, 8388608.0  ;;  %v442_v33 = vcvt.s32.f32 %v441_v25  ;;  %vm605_vm1 = vcmp.lt.f32.partialorder %v447_v26, 8388608.0  ;;  %v460_v38 = vand.u32 2147483648, %v208_v19 }
  0x1c   : > { %v450_v36 = vcvt.s32.f32 %v449_v29  ;;  %v458_v37 = vcvt.s32.f32 %v457_v31  ;;  %v463_v39 = vand.u32 2147483647, %v209_v20  ;;  %vm609_vm2 = vcmp.lt.f32.partialorder %v455_v30, 8388608.0 }
  0x1d   : > { %v443_v40 = vand.u32 2147483647, %v442_v33  ;;  %v465_v42 = vcvt.f32.s32 %v209_v20  ;;  %v471_v43 = vand.u32 2147483647, %v210_v21  ;;  %v468_v46 = vand.u32 2147483648, %v209_v20 }
  0x1e   : > { %v451_v44 = vand.u32 2147483647, %v450_v36  ;;  %v459_v45 = vand.u32 2147483647, %v458_v37  ;;  %v473_v47 = vcvt.f32.s32 %v210_v21  ;;  %vm613_vm3 = vcmp.lt.f32.partialorder %v463_v39, 8388608.0 }
  0x1f   : > { %v445_v48 = vor.u32 %v444_v28, %v443_v40  ;;  %v466_v50 = vcvt.s32.f32 %v465_v42  ;;  %vm617_vm4 = vcmp.lt.f32.partialorder %v471_v43, 8388608.0  ;;  %v476_v55 = vand.u32 2147483648, %v210_v21 }
  0x20   : > { %v453_v52 = vor.u32 %v452_v35, %v451_v44  ;;  %v461_v53 = vor.u32 %v460_v38, %v459_v45  ;;  %v474_v54 = vcvt.s32.f32 %v473_v47  ;;  %v479_v58 = vand.u32 2147483647, %v599_v22 }
  0x21   : > { %v446_v56 = vsel %vm601_vm0, %v445_v48, %v206_v17  ;;  %v467_v57 = vand.u32 2147483647, %v466_v50  ;;  %v481_v59 = vcvt.f32.s32 %v599_v22  ;;  %v484_v3 = vand.u32 2147483648, %v599_v22 }
  0x22   : > { %v454_v60 = vsel %vm605_vm1, %v453_v52, %v207_v18  ;;  %v222_v61 = vmax.f32 %v446_v56, -128.0  ;;  %v462_v62 = vsel %vm609_vm2, %v461_v53, %v208_v19  ;;  %v475_v63 = vand.u32 2147483647, %v474_v54 }
  0x23   : > { %v223_v0 = vmax.f32 %v454_v60, -128.0  ;;  %v469_v1 = vor.u32 %v468_v46, %v467_v57  ;;  %v224_v2 = vmax.f32 %v462_v62, -128.0  ;;  %v482_v7 = vcvt.s32.f32 %v481_v59 }
  0x24   : > { %v230_v5 = vmin.f32 %v222_v61, 127.0  ;;  %v477_v6 = vor.u32 %v476_v55, %v475_v63  ;;  %v212_v8 = vadd.f32 %v591_v4, %v203_v23  ;;  %v213_v11 = vadd.f32 %v591_v4, %v204_v27 }
  0x25   : > { %v231_v9 = vmin.f32 %v223_v0, 127.0  ;;  %v470_v10 = vsel %vm613_vm3, %v469_v1, %v209_v20  ;;  %v232_v13 = vmin.f32 %v224_v2, 127.0  ;;  %v483_v15 = vand.u32 2147483647, %v482_v7 }
  0x26   : > { %v225_v12 = vmax.f32 %v470_v10, -128.0  ;;  %v478_v14 = vsel %vm617_vm4, %v477_v6, %v210_v21  ;;  %vm480_vm6 = vcmp.lt.f32.partialorder %v479_v58, 8388608.0  ;;  %v489_v18 = vcvt.f32.s32 %v212_v8 }
  0x27   : > { %v238_v16 = vpack.c.bf16 %v231_v9, %v230_v5  ;;  %v226_v17 = vmax.f32 %v478_v14, -128.0  ;;  %v485_v24 = vor.u32 %v484_v3, %v483_v15  ;;  %v487_v23 = vand.u32 2147483647, %v212_v8 }
  0x28   : > { %v233_v19 = vmin.f32 %v225_v12, 127.0  ;;  %v490_v25 = vcvt.s32.f32 %v489_v18  ;;  %v492_v26 = vand.u32 2147483648, %v212_v8  ;;  %v497_v20 = vcvt.f32.s32 %v213_v11 }
  0x29   : > { %429 = vmatmul.msk.bf16.vlgmr.msra.gmra.mxu0 %vm250_vm5, %v238_v16  ;;  %v486_v4 = vsel %vm480_vm6, %v485_v24, %v599_v22  ;;  %v234_v27 = vmin.f32 %v226_v17, 127.0  ;;  %v495_v29 = vand.u32 2147483647, %v213_v11  ;;  %v500_v32 = vand.u32 2147483648, %v213_v11 }
  0x2a   : > { %v239_v28 = vpack.c.bf16 %v233_v19, %v232_v13  ;;  %v227_v30 = vmax.f32 %v486_v4, -128.0  ;;  %v491_v21 = vand.u32 2147483647, %v490_v25  ;;  %v498_v31 = vcvt.s32.f32 %v497_v20 }
  0x2b   : > { %vm488_vm7 = vcmp.lt.f32.partialorder %v487_v23, 8388608.0  ;;  %vm496_vm8 = vcmp.lt.f32.partialorder %v495_v29, 8388608.0 }
  0x2c   : > { %430 = vmatmul.msk.bf16.vlgmr.msra.gmra.mxu1 %vm250_vm5, %v239_v28  ;;  %v235_v33 = vmin.f32 %v227_v30, 127.0  ;;  %v493_v34 = vor.u32 %v492_v26, %v491_v21  ;;  %v499_v35 = vand.u32 2147483647, %v498_v31  ;;  %v342_v21 = vlaneseq }
  0x2e   : > { %v240_v36 = vpack.c.bf16 %v235_v33, %v234_v27  ;;  %v494_v37 = vsel %vm488_vm7, %v493_v34, %v212_v8  ;;  %v501_v38 = vor.u32 %v500_v32, %v499_v35  ;;  %v343_v35 = vshrl.u32 %v342_v21, 7 }
  0x2f   : > { %v228_v39 = vmax.f32 %v494_v37, -128.0 }
  0x30   : > { %431 = vmatmul.msk.bf16.vlgmr.msra.gmra.mxu2 %vm250_vm5, %v240_v36  ;;  %v502_v22 = vsel %vm496_vm8, %v501_v38, %v213_v11  ;;  %vm345_vm9 = vcmp.eq.s32.totalorder %v343_v35, 1  ;;  %vm344_vm10 = vcmp.eq.s32.totalorder %v343_v35, 0 }
  0x31   : > { %v229_v40 = vmax.f32 %v502_v22, -128.0  ;;  %v236_v41 = vmin.f32 %v228_v39, 127.0 }
  0x33   : > { %v237_v42 = vmin.f32 %v229_v40, 127.0 }
  0x35   : > { %v241_v43 = vpack.c.bf16 %v237_v42, %v236_v41 }
  0x37   : > { %432 = vmatmul.msk.bf16.vlgmr.msra.gmra.mxu3 %vm250_vm5, %v241_v43 }
  0xa6   : > { %v272_v44 = vpop.f32.mrf.mxu0 }
  0xa7   : > { %v313_v46 = vmul.f32 %v272_v44, %v272_v44  ;;  %v292_v48 = vsel %vm250_vm5, %v272_v44, 0.0 }
  0xa9   : > { %v277_v45 = vpop.f32.mrf.mxu1  ;;  %v321_v53 = vsel %vm250_vm5, %v313_v46, 0.0 }
  0xaa   : > { %v315_v49 = vmul.f32 %v277_v45, %v277_v45  ;;  %v295_v54 = vsel %vm250_vm5, %v277_v45, 0.0 }
  0xac   : > { %v324_v59 = vsel %vm250_vm5, %v315_v49, 0.0 }
  0xae   : > { %v274_v47 = vpop.f32.mrf.mxu0 }
  0xaf   : > { %v293_v50 = vsel %vm250_vm5, %v274_v47, 0.0  ;;  %v314_v51 = vmul.f32 %v274_v47, %v274_v47 }
  0xb0   : > { %v294_v52 = vadd.f32 %v293_v50, %v292_v48 }
  0xb1   : > { %v322_v55 = vsel %vm250_vm5, %v314_v51, 0.0  ;;  %v279_v56 = vpop.f32.mrf.mxu1 }
  0xb2   : > { %v323_v57 = vadd.f32 %v322_v55, %v321_v53  ;;  %v296_v58 = vadd.f32 %v295_v54, %v294_v52  ;;  %v316_v60 = vmul.f32 %v279_v56, %v279_v56  ;;  %v297_v63 = vsel %vm250_vm5, %v279_v56, 0.0 }
  0xb3   : > { %v282_v61 = vpop.f32.mrf.mxu2 }
  0xb4   : > { %v325_v62 = vadd.f32 %v324_v59, %v323_v57  ;;  %v298_v0 = vadd.f32 %v297_v63, %v296_v58  ;;  %v317_v1 = vmul.f32 %v282_v61, %v282_v61  ;;  %v326_v2 = vsel %vm250_vm5, %v316_v60, 0.0 }
  0xb5   : > { %v299_v5 = vsel %vm250_vm5, %v282_v61, 0.0 }
  0xb6   : > { %v327_v3 = vadd.f32 %v326_v2, %v325_v62  ;;  %v300_v6 = vadd.f32 %v299_v5, %v298_v0  ;;  %v328_v7 = vsel %vm250_vm5, %v317_v1, 0.0 }
  0xb8   : > { %v329_v10 = vadd.f32 %v328_v7, %v327_v3 }
  0xba   : > { %v287_v8 = vpop.f32.mrf.mxu3 }
  0xbb   : > { %v284_v9 = vpop.f32.mrf.mxu2  ;;  %v319_v13 = vmul.f32 %v287_v8, %v287_v8  ;;  %v303_v16 = vsel %vm250_vm5, %v287_v8, 0.0 }
  0xbc   : > { %v301_v11 = vsel %vm250_vm5, %v284_v9, 0.0  ;;  %v318_v12 = vmul.f32 %v284_v9, %v284_v9 }
  0xbd   : > { %v302_v14 = vadd.f32 %v301_v11, %v300_v6  ;;  %v332_v19 = vsel %vm250_vm5, %v319_v13, 0.0 }
  0xbe   : > { %v330_v15 = vsel %vm250_vm5, %v318_v12, 0.0 }
  0xbf   : > { %v331_v17 = vadd.f32 %v330_v15, %v329_v10  ;;  %v304_v18 = vadd.f32 %v303_v16, %v302_v14 }
  0xc1   : > { %v333_v23 = vadd.f32 %v332_v19, %v331_v17 }
  0xc2   : > { %v289_v24 = vpop.f32.mrf.mxu3 }
  0xc3   : > { %v305_v25 = vsel %vm250_vm5, %v289_v24, 0.0  ;;  %v320_v26 = vmul.f32 %v289_v24, %v289_v24 }
  0xc4   : > { %v306_v20 = vadd.f32 %v305_v25, %v304_v18 }
  0xc5   : > { %v334_v28 = vsel %vm250_vm5, %v320_v26, 0.0 }
  0xc6   : > { %v307_v4 = vrot.slane %v306_v20, 4  ;;  %v335_v27 = vadd.f32 %v334_v28, %v333_v23 }
  0xc8   : > { %v308_v29 = vadd.f32 %v307_v4, %v306_v20  ;;  %v336_v30 = vrot.slane %v335_v27, 4 }
  0xca   : > { %v309_v31 = vrot.slane %v308_v29, 2  ;;  %v337_v32 = vadd.f32 %v336_v30, %v335_v27 }
  0xcc   : > { %v310_v33 = vadd.f32 %v309_v31, %v308_v29  ;;  %v338_v34 = vrot.slane %v337_v32, 2 }
  0xce   : > { %v339_v36 = vadd.f32 %v338_v34, %v337_v32  ;;  %v311_v37 = vrot.slane %v310_v33, 1 }
  0xd0   : > { %v340_v38 = vrot.slane %v339_v36, 1  ;;  %v312_v22 = vadd.f32 %v311_v37, %v310_v33 }
  0xd2   : > { %v341_v39 = vadd.f32 %v340_v38, %v339_v36 }
  0xd4   : > { %v346_v40 = vsel %vm345_vm9, %v341_v39, 0.0 }
  0xd5   : > { %v347_v41 = vsel %vm344_vm10, %v312_v22, %v346_v40 }
  0xd6   : > { %348 = vst.msk [vmem:[%s184_s30] sm:$0xff] %vm250_vm5, %v347_v41 }
  0xd7 PF: > { %s14_s12 = sadd.s32 1, %s547_s12  }
  0xd8   : > { %p11_p8 = scmp.ge.s32.totalorder %s14_s12, 4  }
  0xda   :  { %13 = sbr.rel (!%p11_p8) target bundleno = 1 (0x1), region = 67 }
  0xdf   :  { %368 = vsyncpa [#allocation3], 1 }
  0xe0   :  { %370 = vsyncpa [#allocation3 + $0x1], 1 }

// kernel: pointnet_sa_module_msg_forward.10
= control target key start
LH: loop header
LB: loop body
LE: loop exit
PB: predicated region body
PF: predicated region fallthrough
CT: control target
= control target key end

     0   :  { %8 = vsyncpa [#allocation3], 0  ;;  %s571_s12 = smov 0   ;;  %s667_s0 = inlined_call_operand.vmem [shape: f32[2], index: 0, kind: input, shape index: {}]   ;;  %s668_s1 = inlined_call_operand.vmem [shape: f32[128,16], index: 1, kind: input, shape index: {}]   ;;  %s669_s2 = inlined_call_operand.vmem [shape: bf16[16,32], index: 2, kind: input, shape index: {}]   ;;  %s670_s3 = inlined_call_operand.vmem [shape: f32[16,32], index: 3, kind: output, shape index: {}]  }
   0x1 LB: > { %s577_s13 = sadd.s32 4294967295, %s548_s12   ;;  %p417_p0 = scmp.ge.s32.totalorder %s548_s12, 1  ;;  %s548_s12 = sphi %s571_s12, %s14_s12  }
   0x2   : > { %p113_p1 = scmp.lt.s32.totalorder %s548_s12, 3  ;;  %s125_s16 = sshll.u32 %s667_s0, 4  ;;  %s126_s16 = int_to_ptr.vmem [resolvable:$true] %s125_s16 }
   0x3   : > { %p512_p3 = scmp.eq.s32.totalorder %s577_s13, 0  ;;  %s550_s17 = smov [#allocation2]  }
   0x4   : > { %p114_p2 = pnand %p417_p0, %p113_p1 }
   0x6   : > { %p508_p4 = pneg %p114_p2  ;;  %150 = sbr.rel (%p114_p2) target bundleno = 215 (0xd7), region = 32 }
   0x8   : > { %p509_p5 = pnand %p512_p3, %p508_p4 }
   0xa   : > { %511 = dma.vmem_to_smem (!%p509_p5), %s126_s16, 16, %s550_s17, [#allocation3]  }
   0xb   : > { %543 = dma.done.wait (%p512_p3), [#allocation3], 16  }
   0xc   : > { %545 = vsyncadd (%p512_p3), [#allocation3], 4294967280 }
   0xd   : > { %157 = sfence }
   0xe   : > { %v436_v0 = vld [vmem:[%s669_s2] sm:$0xff]  ;;  %s422_s20 = sshll.u32 %s577_s13, 3  ;;  %s186_s21 = sld [smem:[#allocation2]]  ;;  %vm250_vm5 = vcmask 130048   ;;  %vm292_vm9 = vcmask 261120  }
   0xf   : > { %p176_p6 = scmp.lt.s32.totalorder %s422_s20, 15  ;;  %s425_s22 = sld [smem:[#allocation2 + $0x1]]  ;;  %270 = vmatpush.bf16.msra.mxu0 %v436_v0  ;;  %437 = vmatpush.bf16.msra.mxu1 %v436_v0 }
  0x10   : > { %438 = vmatpush.bf16.msra.mxu2 %v436_v0  ;;  %439 = vmatpush.bf16.msra.mxu3 %v436_v0  ;;  %p181_p7 = scmp.lt.s32.totalorder %s577_s13, 1 }
  0x11   : > { %s682_s20 = smov (!%p176_p6, %s422_s20), 15 }
  0x12   : > { %s423_s23 = sshll.u32 %s682_s20, 3  ;;  %s684_s13 = smov (!%p181_p7, %s577_s13), 1 }
  0x13   : > { %s179_s26 = scalar_lea.vmem %s668_s1, %s423_s23  ;;  %s424_s27 = sshll.u32 %s684_s13, 3 }
  0x14   : > { %v196_v1 = vstv %s186_s21  ;;  %v188_v2 = vld [vmem:[%s179_s26] sm:$0xff]  ;;  %v189_v3 = vld [vmem:[%s179_s26 + $0x8] sm:$0xff]  ;;  %v190_v5 = vld [vmem:[%s179_s26 + $0x10] sm:$0xff]  ;;  %s184_s30 = scalar_lea.vmem %s670_s3, %s424_s27 }
  0x15   : > { %v592_v4 = vstv %s425_s22  ;;  %v197_v6 = vmul.f32 %v196_v1, %v188_v2  ;;  %v198_v7 = vmul.f32 %v196_v1, %v189_v3  ;;  %v191_v8 = vld [vmem:[%s179_s26 + $0x18] sm:$0xff]  ;;  %v199_v9 = vmul.f32 %v196_v1, %v190_v5  ;;  %v192_v10 = vld [vmem:[%s179_s26 + $0x20] sm:$0xff]  ;;  %v193_v11 = vld [vmem:[%s179_s26 + $0x28] sm:$0xff] }
  0x16   : > { %v200_v12 = vmul.f32 %v196_v1, %v191_v8  ;;  %v201_v13 = vmul.f32 %v196_v1, %v192_v10  ;;  %v202_v14 = vmul.f32 %v196_v1, %v193_v11  ;;  %v194_v15 = vld [vmem:[%s179_s26 + $0x30] sm:$0xff]  ;;  %v195_v16 = vld [vmem:[%s179_s26 + $0x38] sm:$0xff] }
  0x17   : > { %v206_v17 = vadd.f32 %v592_v4, %v197_v6  ;;  %v207_v18 = vadd.f32 %v592_v4, %v198_v7  ;;  %v208_v19 = vadd.f32 %v592_v4, %v199_v9  ;;  %v203_v23 = vmul.f32 %v196_v1, %v194_v15 }
  0x18   : > { %v209_v20 = vadd.f32 %v592_v4, %v200_v12  ;;  %v210_v21 = vadd.f32 %v592_v4, %v201_v13  ;;  %v600_v22 = vadd.f32 %v592_v4, %v202_v14  ;;  %v204_v27 = vmul.f32 %v196_v1, %v195_v16 }
  0x19   : > { %v440_v24 = vand.u32 2147483647, %v206_v17  ;;  %v442_v25 = vcvt.f32.s32 %v206_v17  ;;  %v448_v26 = vand.u32 2147483647, %v207_v18  ;;  %v445_v28 = vand.u32 2147483648, %v206_v17 }
  0x1a   : > { %v450_v29 = vcvt.f32.s32 %v207_v18  ;;  %v456_v30 = vand.u32 2147483647, %v208_v19  ;;  %v458_v31 = vcvt.f32.s32 %v208_v19  ;;  %v453_v35 = vand.u32 2147483648, %v207_v18 }
  0x1b   : > { %vm602_vm0 = vcmp.lt.f32.partialorder %v440_v24, 8388608.0  ;;  %v443_v33 = vcvt.s32.f32 %v442_v25  ;;  %vm606_vm1 = vcmp.lt.f32.partialorder %v448_v26, 8388608.0  ;;  %v461_v38 = vand.u32 2147483648, %v208_v19 }
  0x1c   : > { %v451_v36 = vcvt.s32.f32 %v450_v29  ;;  %v459_v37 = vcvt.s32.f32 %v458_v31  ;;  %v464_v39 = vand.u32 2147483647, %v209_v20  ;;  %vm610_vm2 = vcmp.lt.f32.partialorder %v456_v30, 8388608.0 }
  0x1d   : > { %v444_v40 = vand.u32 2147483647, %v443_v33  ;;  %v466_v42 = vcvt.f32.s32 %v209_v20  ;;  %v472_v43 = vand.u32 2147483647, %v210_v21  ;;  %v469_v46 = vand.u32 2147483648, %v209_v20 }
  0x1e   : > { %v452_v44 = vand.u32 2147483647, %v451_v36  ;;  %v460_v45 = vand.u32 2147483647, %v459_v37  ;;  %v474_v47 = vcvt.f32.s32 %v210_v21  ;;  %vm614_vm3 = vcmp.lt.f32.partialorder %v464_v39, 8388608.0 }
  0x1f   : > { %v446_v48 = vor.u32 %v445_v28, %v444_v40  ;;  %v467_v50 = vcvt.s32.f32 %v466_v42  ;;  %vm618_vm4 = vcmp.lt.f32.partialorder %v472_v43, 8388608.0  ;;  %v477_v55 = vand.u32 2147483648, %v210_v21 }
  0x20   : > { %v454_v52 = vor.u32 %v453_v35, %v452_v44  ;;  %v462_v53 = vor.u32 %v461_v38, %v460_v45  ;;  %v475_v54 = vcvt.s32.f32 %v474_v47  ;;  %v480_v58 = vand.u32 2147483647, %v600_v22 }
  0x21   : > { %v447_v56 = vsel %vm602_vm0, %v446_v48, %v206_v17  ;;  %v468_v57 = vand.u32 2147483647, %v467_v50  ;;  %v482_v59 = vcvt.f32.s32 %v600_v22  ;;  %v485_v3 = vand.u32 2147483648, %v600_v22 }
  0x22   : > { %v455_v60 = vsel %vm606_vm1, %v454_v52, %v207_v18  ;;  %v222_v61 = vmax.f32 %v447_v56, -128.0  ;;  %v463_v62 = vsel %vm610_vm2, %v462_v53, %v208_v19  ;;  %v476_v63 = vand.u32 2147483647, %v475_v54 }
  0x23   : > { %v223_v0 = vmax.f32 %v455_v60, -128.0  ;;  %v470_v1 = vor.u32 %v469_v46, %v468_v57  ;;  %v224_v2 = vmax.f32 %v463_v62, -128.0  ;;  %v483_v7 = vcvt.s32.f32 %v482_v59 }
  0x24   : > { %v230_v5 = vmin.f32 %v222_v61, 127.0  ;;  %v478_v6 = vor.u32 %v477_v55, %v476_v63  ;;  %v212_v8 = vadd.f32 %v592_v4, %v203_v23  ;;  %v213_v11 = vadd.f32 %v592_v4, %v204_v27 }
  0x25   : > { %v231_v9 = vmin.f32 %v223_v0, 127.0  ;;  %v471_v10 = vsel %vm614_vm3, %v470_v1, %v209_v20  ;;  %v232_v13 = vmin.f32 %v224_v2, 127.0  ;;  %v484_v15 = vand.u32 2147483647, %v483_v7 }
  0x26   : > { %v225_v12 = vmax.f32 %v471_v10, -128.0  ;;  %v479_v14 = vsel %vm618_vm4, %v478_v6, %v210_v21  ;;  %vm481_vm6 = vcmp.lt.f32.partialorder %v480_v58, 8388608.0  ;;  %v490_v18 = vcvt.f32.s32 %v212_v8 }
  0x27   : > { %v238_v16 = vpack.c.bf16 %v231_v9, %v230_v5  ;;  %v226_v17 = vmax.f32 %v479_v14, -128.0  ;;  %v486_v24 = vor.u32 %v485_v3, %v484_v15  ;;  %v488_v23 = vand.u32 2147483647, %v212_v8 }
  0x28   : > { %v233_v19 = vmin.f32 %v225_v12, 127.0  ;;  %v491_v25 = vcvt.s32.f32 %v490_v18  ;;  %v493_v26 = vand.u32 2147483648, %v212_v8  ;;  %v498_v20 = vcvt.f32.s32 %v213_v11 }
  0x29   : > { %430 = vmatmul.msk.bf16.vlgmr.msra.gmra.mxu0 %vm250_vm5, %v238_v16  ;;  %v487_v4 = vsel %vm481_vm6, %v486_v24, %v600_v22  ;;  %v234_v27 = vmin.f32 %v226_v17, 127.0  ;;  %v496_v29 = vand.u32 2147483647, %v213_v11  ;;  %v501_v32 = vand.u32 2147483648, %v213_v11 }
  0x2a   : > { %v239_v28 = vpack.c.bf16 %v233_v19, %v232_v13  ;;  %v227_v30 = vmax.f32 %v487_v4, -128.0  ;;  %v492_v21 = vand.u32 2147483647, %v491_v25  ;;  %v499_v31 = vcvt.s32.f32 %v498_v20 }
  0x2b   : > { %vm489_vm7 = vcmp.lt.f32.partialorder %v488_v23, 8388608.0  ;;  %vm497_vm8 = vcmp.lt.f32.partialorder %v496_v29, 8388608.0 }
  0x2c   : > { %431 = vmatmul.msk.bf16.vlgmr.msra.gmra.mxu1 %vm250_vm5, %v239_v28  ;;  %v235_v33 = vmin.f32 %v227_v30, 127.0  ;;  %v494_v34 = vor.u32 %v493_v26, %v492_v21  ;;  %v500_v35 = vand.u32 2147483647, %v499_v31  ;;  %v343_v21 = vlaneseq }
  0x2e   : > { %v240_v36 = vpack.c.bf16 %v235_v33, %v234_v27  ;;  %v495_v37 = vsel %vm489_vm7, %v494_v34, %v212_v8  ;;  %v502_v38 = vor.u32 %v501_v32, %v500_v35  ;;  %v344_v35 = vshrl.u32 %v343_v21, 7 }
  0x2f   : > { %v228_v39 = vmax.f32 %v495_v37, -128.0 }
  0x30   : > { %432 = vmatmul.msk.bf16.vlgmr.msra.gmra.mxu2 %vm250_vm5, %v240_v36  ;;  %v503_v22 = vsel %vm497_vm8, %v502_v38, %v213_v11  ;;  %vm346_vm10 = vcmp.eq.s32.totalorder %v344_v35, 1  ;;  %vm345_vm11 = vcmp.eq.s32.totalorder %v344_v35, 0 }
  0x31   : > { %v229_v40 = vmax.f32 %v503_v22, -128.0  ;;  %v236_v41 = vmin.f32 %v228_v39, 127.0 }
  0x33   : > { %v237_v42 = vmin.f32 %v229_v40, 127.0 }
  0x35   : > { %v241_v43 = vpack.c.bf16 %v237_v42, %v236_v41 }
  0x37   : > { %433 = vmatmul.msk.bf16.vlgmr.msra.gmra.mxu3 %vm250_vm5, %v241_v43 }
  0xa6   : > { %v272_v44 = vpop.f32.mrf.mxu0 }
  0xa7   : > { %v314_v46 = vmul.f32 %v272_v44, %v272_v44  ;;  %v293_v48 = vsel %vm292_vm9, %v272_v44, 0.0 }
  0xa9   : > { %v277_v45 = vpop.f32.mrf.mxu1  ;;  %v322_v53 = vsel %vm292_vm9, %v314_v46, 0.0 }
  0xaa   : > { %v316_v49 = vmul.f32 %v277_v45, %v277_v45  ;;  %v296_v54 = vsel %vm292_vm9, %v277_v45, 0.0 }
  0xac   : > { %v325_v59 = vsel %vm292_vm9, %v316_v49, 0.0 }
  0xae   : > { %v274_v47 = vpop.f32.mrf.mxu0 }
  0xaf   : > { %v294_v50 = vsel %vm292_vm9, %v274_v47, 0.0  ;;  %v315_v51 = vmul.f32 %v274_v47, %v274_v47 }
  0xb0   : > { %v295_v52 = vadd.f32 %v294_v50, %v293_v48 }
  0xb1   : > { %v323_v55 = vsel %vm292_vm9, %v315_v51, 0.0  ;;  %v279_v56 = vpop.f32.mrf.mxu1 }
  0xb2   : > { %v324_v57 = vadd.f32 %v323_v55, %v322_v53  ;;  %v297_v58 = vadd.f32 %v296_v54, %v295_v52  ;;  %v317_v60 = vmul.f32 %v279_v56, %v279_v56  ;;  %v298_v63 = vsel %vm292_vm9, %v279_v56, 0.0 }
  0xb3   : > { %v282_v61 = vpop.f32.mrf.mxu2 }
  0xb4   : > { %v326_v62 = vadd.f32 %v325_v59, %v324_v57  ;;  %v299_v0 = vadd.f32 %v298_v63, %v297_v58  ;;  %v318_v1 = vmul.f32 %v282_v61, %v282_v61  ;;  %v327_v2 = vsel %vm292_vm9, %v317_v60, 0.0 }
  0xb5   : > { %v300_v5 = vsel %vm292_vm9, %v282_v61, 0.0 }
  0xb6   : > { %v328_v3 = vadd.f32 %v327_v2, %v326_v62  ;;  %v301_v6 = vadd.f32 %v300_v5, %v299_v0  ;;  %v329_v7 = vsel %vm292_vm9, %v318_v1, 0.0 }
  0xb8   : > { %v330_v10 = vadd.f32 %v329_v7, %v328_v3 }
  0xba   : > { %v287_v8 = vpop.f32.mrf.mxu3 }
  0xbb   : > { %v284_v9 = vpop.f32.mrf.mxu2  ;;  %v320_v13 = vmul.f32 %v287_v8, %v287_v8  ;;  %v304_v16 = vsel %vm292_vm9, %v287_v8, 0.0 }
  0xbc   : > { %v302_v11 = vsel %vm292_vm9, %v284_v9, 0.0  ;;  %v319_v12 = vmul.f32 %v284_v9, %v284_v9 }
  0xbd   : > { %v303_v14 = vadd.f32 %v302_v11, %v301_v6  ;;  %v333_v19 = vsel %vm292_vm9, %v320_v13, 0.0 }
  0xbe   : > { %v331_v15 = vsel %vm292_vm9, %v319_v12, 0.0 }
  0xbf   : > { %v332_v17 = vadd.f32 %v331_v15, %v330_v10  ;;  %v305_v18 = vadd.f32 %v304_v16, %v303_v14 }
  0xc1   : > { %v334_v23 = vadd.f32 %v333_v19, %v332_v17 }
  0xc2   : > { %v289_v24 = vpop.f32.mrf.mxu3 }
  0xc3   : > { %v306_v25 = vsel %vm292_vm9, %v289_v24, 0.0  ;;  %v321_v26 = vmul.f32 %v289_v24, %v289_v24 }
  0xc4   : > { %v307_v20 = vadd.f32 %v306_v25, %v305_v18 }
  0xc5   : > { %v335_v28 = vsel %vm292_vm9, %v321_v26, 0.0 }
  0xc6   : > { %v308_v4 = vrot.slane %v307_v20, 4  ;;  %v336_v27 = vadd.f32 %v335_v28, %v334_v23 }
  0xc8   : > { %v309_v29 = vadd.f32 %v308_v4, %v307_v20  ;;  %v337_v30 = vrot.slane %v336_v27, 4 }
  0xca   : > { %v310_v31 = vrot.slane %v309_v29, 2  ;;  %v338_v32 = vadd.f32 %v337_v30, %v336_v27 }
  0xcc   : > { %v311_v33 = vadd.f32 %v310_v31, %v309_v29  ;;  %v339_v34 = vrot.slane %v338_v32, 2 }
  0xce   : > { %v340_v36 = vadd.f32 %v339_v34, %v338_v32  ;;  %v312_v37 = vrot.slane %v311_v33, 1 }
  0xd0   : > { %v341_v38 = vrot.slane %v340_v36, 1  ;;  %v313_v22 = vadd.f32 %v312_v37, %v311_v33 }
  0xd2   : > { %v342_v39 = vadd.f32 %v341_v38, %v340_v36 }
  0xd4   : > { %v347_v40 = vsel %vm346_vm10, %v342_v39, 0.0 }
  0xd5   : > { %v348_v41 = vsel %vm345_vm11, %v313_v22, %v347_v40 }
  0xd6   : > { %349 = vst.msk [vmem:[%s184_s30] sm:$0xff] %vm292_vm9, %v348_v41 }
  0xd7 PF: > { %s14_s12 = sadd.s32 1, %s548_s12  }
  0xd8   : > { %p11_p8 = scmp.ge.s32.totalorder %s14_s12, 4  }
  0xda   :  { %13 = sbr.rel (!%p11_p8) target bundleno = 1 (0x1), region = 67 }
  0xdf   :  { %369 = vsyncpa [#allocation3], 1 }
  0xe0   :  { %371 = vsyncpa [#allocation3 + $0x1], 1 }

// kernel: pointnet_sa_module_msg_forward.12
= control target key start
LH: loop header
LB: loop body
LE: loop exit
PB: predicated region body
PF: predicated region fallthrough
CT: control target
= control target key end

     0   :  { %8 = vsyncpa [#allocation3], 0  ;;  %s763_s12 = smov 0   ;;  %s971_s0 = inlined_call_operand.vmem [shape: f32[2], index: 0, kind: input, shape index: {}]   ;;  %s972_s1 = inlined_call_operand.vmem [shape: f32[256,16], index: 1, kind: input, shape index: {}]   ;;  %s973_s2 = inlined_call_operand.vmem [shape: bf16[16,32], index: 2, kind: input, shape index: {}]   ;;  %s974_s3 = inlined_call_operand.vmem [shape: f32[16,32], index: 3, kind: output, shape index: {}]  }
   0x1 LB: > { %s769_s13 = sadd.s32 4294967295, %s740_s12   ;;  %p541_p0 = scmp.ge.s32.totalorder %s740_s12, 1  ;;  %s740_s12 = sphi %s763_s12, %s14_s12  }
   0x2   : > { %p113_p1 = scmp.lt.s32.totalorder %s740_s12, 3  ;;  %s125_s16 = sshll.u32 %s971_s0, 4  ;;  %s126_s16 = int_to_ptr.vmem [resolvable:$true] %s125_s16 }
   0x3   : > { %p704_p3 = scmp.eq.s32.totalorder %s769_s13, 0  ;;  %s742_s17 = smov [#allocation2]  }
   0x4   : > { %p114_p2 = pnand %p541_p0, %p113_p1 }
   0x6   : > { %p700_p4 = pneg %p114_p2  ;;  %150 = sbr.rel (%p114_p2) target bundleno = 243 (0xf3), region = 32 }
   0x8   : > { %p701_p5 = pnand %p704_p3, %p700_p4 }
   0xa   : > { %703 = dma.vmem_to_smem (!%p701_p5), %s126_s16, 16, %s742_s17, [#allocation3]  }
   0xb   : > { %735 = dma.done.wait (%p704_p3), [#allocation3], 16  }
   0xc   : > { %737 = vsyncadd (%p704_p3), [#allocation3], 4294967280 }
   0xd   : > { %157 = sfence }
   0xe   : > { %v564_v0 = vld [vmem:[%s973_s2] sm:$0xff]  ;;  %s546_s20 = sshll.u32 %s769_s13, 4  ;;  %s186_s21 = sld [smem:[#allocation2]]  ;;  %vm302_vm3 = vcmask 130048  }
   0xf   : > { %p176_p6 = scmp.lt.s32.totalorder %s546_s20, 31  ;;  %s549_s22 = sld [smem:[#allocation2 + $0x1]]  ;;  %334 = vmatpush.bf16.msra.mxu0 %v564_v0  ;;  %565 = vmatpush.bf16.msra.mxu1 %v564_v0 }
  0x10   : > { %566 = vmatpush.bf16.msra.mxu2 %v564_v0  ;;  %567 = vmatpush.bf16.msra.mxu3 %v564_v0  ;;  %p181_p7 = scmp.lt.s32.totalorder %s769_s13, 1 }
  0x11   : > { %s1002_s20 = smov (!%p176_p6, %s546_s20), 31 }
  0x12   : > { %s547_s23 = sshll.u32 %s1002_s20, 3  ;;  %s1004_s13 = smov (!%p181_p7, %s769_s13), 1 }
  0x13   : > { %s784_s26 = scalar_lea.vmem %s972_s1, %s547_s23  ;;  %s548_s27 = sshll.u32 %s1004_s13, 3 }
  0x14   : > { %v786_v1 = vstv %s186_s21  ;;  %v188_v2 = vld [vmem:[%s784_s26] sm:$0xff]  ;;  %v189_v3 = vld [vmem:[%s784_s26 + $0x8] sm:$0xff]  ;;  %v195_v34 = vld [vmem:[%s784_s26 + $0x38] sm:$0xff]  ;;  %s184_s30 = scalar_lea.vmem %s974_s3, %s548_s27 }
  0x15   : > { %v790_v4 = vstv %s549_s22  ;;  %v192_v5 = vld [vmem:[%s784_s26 + $0x20] sm:$0xff]  ;;  %v205_v6 = vmul.f32 %v786_v1, %v188_v2  ;;  %v206_v7 = vmul.f32 %v786_v1, %v189_v3  ;;  %v193_v8 = vld [vmem:[%s784_s26 + $0x28] sm:$0xff] }
  0x16   : > { %v209_v9 = vmul.f32 %v786_v1, %v192_v5  ;;  %v196_v10 = vld [vmem:[%s784_s26 + $0x40] sm:$0xff]  ;;  %v197_v11 = vld [vmem:[%s784_s26 + $0x48] sm:$0xff]  ;;  %v210_v12 = vmul.f32 %v786_v1, %v193_v8 }
  0x17   : > { %v213_v13 = vmul.f32 %v786_v1, %v196_v10  ;;  %v214_v14 = vmul.f32 %v786_v1, %v197_v11  ;;  %v200_v15 = vld [vmem:[%s784_s26 + $0x60] sm:$0xff]  ;;  %v201_v16 = vld [vmem:[%s784_s26 + $0x68] sm:$0xff]  ;;  %v222_v17 = vadd.f32 %v790_v4, %v205_v6  ;;  %v223_v18 = vadd.f32 %v790_v4, %v206_v7 }
  0x18   : > { %v226_v19 = vadd.f32 %v790_v4, %v209_v9  ;;  %v227_v20 = vadd.f32 %v790_v4, %v210_v12  ;;  %v217_v23 = vmul.f32 %v786_v1, %v200_v15  ;;  %v218_v27 = vmul.f32 %v786_v1, %v201_v16 }
  0x19   : > { %v230_v21 = vadd.f32 %v790_v4, %v213_v13  ;;  %v810_v22 = vadd.f32 %v790_v4, %v214_v14  ;;  %v568_v24 = vand.u32 2147483647, %v222_v17  ;;  %v570_v25 = vcvt.f32.s32 %v222_v17 }
  0x1a   : > { %v576_v26 = vand.u32 2147483647, %v223_v18  ;;  %v573_v28 = vand.u32 2147483648, %v222_v17  ;;  %v578_v29 = vcvt.f32.s32 %v223_v18  ;;  %v600_v30 = vand.u32 2147483647, %v226_v19 }
  0x1b   : > { %v602_v31 = vcvt.f32.s32 %v226_v19  ;;  %vm814_vm0 = vcmp.lt.f32.partialorder %v568_v24, 8388608.0  ;;  %v571_v33 = vcvt.s32.f32 %v570_v25  ;;  %v581_v35 = vand.u32 2147483648, %v223_v18 }
  0x1c   : > { %vm818_vm1 = vcmp.lt.f32.partialorder %v576_v26, 8388608.0  ;;  %v579_v36 = vcvt.s32.f32 %v578_v29  ;;  %v605_v38 = vand.u32 2147483648, %v226_v19  ;;  %v608_v39 = vand.u32 2147483647, %v227_v20  ;;  %v191_v29 = vld [vmem:[%s784_s26 + $0x18] sm:$0xff] }
  0x1d   : > { %v603_v37 = vcvt.s32.f32 %v602_v31  ;;  %v572_v40 = vand.u32 2147483647, %v571_v33  ;;  %vm822_vm2 = vcmp.lt.f32.partialorder %v600_v30, 8388608.0  ;;  %v610_v42 = vcvt.f32.s32 %v227_v20  ;;  %v194_v33 = vld [vmem:[%s784_s26 + $0x30] sm:$0xff] }
  0x1e   : > { %v632_v43 = vand.u32 2147483647, %v230_v21  ;;  %v580_v44 = vand.u32 2147483647, %v579_v36  ;;  %v613_v46 = vand.u32 2147483648, %v227_v20  ;;  %v634_v47 = vcvt.f32.s32 %v230_v21 }
  0x1f   : > { %v604_v45 = vand.u32 2147483647, %v603_v37  ;;  %v574_v48 = vor.u32 %v573_v28, %v572_v40  ;;  %vm826_vm4 = vcmp.lt.f32.partialorder %v608_v39, 8388608.0  ;;  %v611_v50 = vcvt.s32.f32 %v610_v42 }
  0x20   : > { %vm830_vm5 = vcmp.lt.f32.partialorder %v632_v43, 8388608.0  ;;  %v582_v52 = vor.u32 %v581_v35, %v580_v44  ;;  %v635_v54 = vcvt.s32.f32 %v634_v47  ;;  %v637_v55 = vand.u32 2147483648, %v230_v21  ;;  %v198_v43 = vld [vmem:[%s784_s26 + $0x50] sm:$0xff] }
  0x21   : > { %v606_v53 = vor.u32 %v605_v38, %v604_v45  ;;  %v575_v56 = vsel %vm814_vm0, %v574_v48, %v222_v17  ;;  %v612_v57 = vand.u32 2147483647, %v611_v50  ;;  %v640_v58 = vand.u32 2147483647, %v810_v22 }
  0x22   : > { %v642_v59 = vcvt.f32.s32 %v810_v22  ;;  %v583_v60 = vsel %vm818_vm1, %v582_v52, %v223_v18  ;;  %v254_v61 = vmax.f32 %v575_v56, -128.0  ;;  %v636_v63 = vand.u32 2147483647, %v635_v54 }
  0x23   : > { %v607_v62 = vsel %vm822_vm2, %v606_v53, %v226_v19  ;;  %v255_v0 = vmax.f32 %v583_v60, -128.0  ;;  %v614_v2 = vor.u32 %v613_v46, %v612_v57  ;;  %v645_v5 = vand.u32 2147483648, %v810_v22 }
  0x24   : > { %v258_v3 = vmax.f32 %v607_v62, -128.0  ;;  %v270_v6 = vmin.f32 %v254_v61, 127.0  ;;  %v638_v7 = vor.u32 %v637_v55, %v636_v63  ;;  %v643_v8 = vcvt.s32.f32 %v642_v59 }
  0x25   : > { %v234_v9 = vadd.f32 %v790_v4, %v217_v23  ;;  %v271_v10 = vmin.f32 %v255_v0, 127.0  ;;  %v615_v11 = vsel %vm826_vm4, %v614_v2, %v227_v20  ;;  %v235_v13 = vadd.f32 %v790_v4, %v218_v27  ;;  %v190_v20 = vld [vmem:[%s784_s26 + $0x10] sm:$0xff] }
  0x26   : > { %v274_v12 = vmin.f32 %v258_v3, 127.0  ;;  %v259_v14 = vmax.f32 %v615_v11, -128.0  ;;  %v639_v15 = vsel %vm830_vm5, %v638_v7, %v230_v21  ;;  %v644_v16 = vand.u32 2147483647, %v643_v8 }
  0x27   : > { %v664_v17 = vand.u32 2147483647, %v234_v9  ;;  %v286_v18 = vpack.c.bf16 %v271_v10, %v270_v6  ;;  %vm849_vm6 = vcmp.lt.f32.partialorder %v640_v58, 8388608.0  ;;  %v262_v23 = vmax.f32 %v639_v15, -128.0 }
  0x28   : > { %v666_v24 = vcvt.f32.s32 %v234_v9  ;;  %v275_v25 = vmin.f32 %v259_v14, 127.0  ;;  %v646_v26 = vor.u32 %v645_v5, %v644_v16  ;;  %v669_v28 = vand.u32 2147483648, %v234_v9 }
  0x29   : > { %v672_v27 = vand.u32 2147483647, %v235_v13  ;;  %554 = vmatmul.msk.bf16.vlgmr.msra.gmra.mxu0 %vm302_vm3, %v286_v18  ;;  %v278_v21 = vmin.f32 %v262_v23, 127.0  ;;  %vm856_vm7 = vcmp.lt.f32.partialorder %v664_v17, 8388608.0  ;;  %v674_v32 = vcvt.f32.s32 %v235_v13  ;;  %v199_v17 = vld [vmem:[%s784_s26 + $0x58] sm:$0xff] }
  0x2a   : > { %v667_v31 = vcvt.s32.f32 %v666_v24  ;;  %v288_v35 = vpack.c.bf16 %v275_v25, %v274_v12  ;;  %v647_v36 = vsel %vm849_vm6, %v646_v26, %v810_v22  ;;  %v677_v37 = vand.u32 2147483648, %v235_v13 }
  0x2b   : > { %v207_v38 = vmul.f32 %v786_v1, %v190_v20  ;;  %v263_v39 = vmax.f32 %v647_v36, -128.0  ;;  %v675_v41 = vcvt.s32.f32 %v674_v32  ;;  %v208_v42 = vmul.f32 %v786_v1, %v191_v29  ;;  %v202_v20 = vld [vmem:[%s784_s26 + $0x70] sm:$0xff]  ;;  %v203_v32 = vld [vmem:[%s784_s26 + $0x78] sm:$0xff] }
  0x2c   : > { %v668_v40 = vand.u32 2147483647, %v667_v31  ;;  %556 = vmatmul.msk.bf16.vlgmr.msra.gmra.mxu1 %vm302_vm3, %v288_v35  ;;  %vm869_vm8 = vcmp.lt.f32.partialorder %v672_v27, 8388608.0  ;;  %v211_v46 = vmul.f32 %v786_v1, %v194_v33  ;;  %v212_v22 = vmul.f32 %v786_v1, %v195_v34 }
  0x2d   : > { %v224_v45 = vadd.f32 %v790_v4, %v207_v38  ;;  %v279_v47 = vmin.f32 %v263_v39, 127.0  ;;  %v676_v49 = vand.u32 2147483647, %v675_v41  ;;  %v225_v50 = vadd.f32 %v790_v4, %v208_v42 }
  0x2e   : > { %v670_v48 = vor.u32 %v669_v28, %v668_v40  ;;  %v228_v53 = vadd.f32 %v790_v4, %v211_v46  ;;  %v215_v54 = vmul.f32 %v786_v1, %v198_v43  ;;  %v229_v3 = vadd.f32 %v790_v4, %v212_v22 }
  0x2f   : > { %v584_v51 = vand.u32 2147483647, %v224_v45  ;;  %v586_v52 = vcvt.f32.s32 %v224_v45  ;;  %v290_v55 = vpack.c.bf16 %v279_v47, %v278_v21  ;;  %v678_v57 = vor.u32 %v677_v37, %v676_v49 }
  0x30   : > { %v671_v56 = vsel %vm856_vm7, %v670_v48, %v234_v9  ;;  %v592_v58 = vand.u32 2147483647, %v225_v50  ;;  %v589_v61 = vand.u32 2147483648, %v224_v45  ;;  %v594_v62 = vcvt.f32.s32 %v225_v50 }
  0x31   : > { %v266_v59 = vmax.f32 %v671_v56, -128.0  ;;  %v587_v60 = vcvt.s32.f32 %v586_v52  ;;  %558 = vmatmul.msk.bf16.vlgmr.msra.gmra.mxu2 %vm302_vm3, %v290_v55  ;;  %v679_v63 = vsel %vm869_vm8, %v678_v57, %v235_v13  ;;  %vm884_vm9 = vcmp.lt.f32.partialorder %v584_v51, 8388608.0 }
  0x32   : > { %v597_v2 = vand.u32 2147483648, %v225_v50  ;;  %v267_v5 = vmax.f32 %v679_v63, -128.0  ;;  %v595_v8 = vcvt.s32.f32 %v594_v62  ;;  %vm889_vm10 = vcmp.lt.f32.partialorder %v592_v58, 8388608.0 }
  0x33   : > { %v282_v6 = vmin.f32 %v266_v59, 127.0  ;;  %v588_v7 = vand.u32 2147483647, %v587_v60  ;;  %v616_v10 = vand.u32 2147483647, %v228_v53  ;;  %v618_v11 = vcvt.f32.s32 %v228_v53 }
  0x34   : > { %v624_v12 = vand.u32 2147483647, %v229_v3  ;;  %v283_v13 = vmin.f32 %v267_v5, 127.0  ;;  %v596_v15 = vand.u32 2147483647, %v595_v8  ;;  %v626_v16 = vcvt.f32.s32 %v229_v3 }
  0x35   : > { %v590_v14 = vor.u32 %v589_v61, %v588_v7  ;;  %vm894_vm11 = vcmp.lt.f32.partialorder %v616_v10, 8388608.0  ;;  %v619_v19 = vcvt.s32.f32 %v618_v11  ;;  %v621_v23 = vand.u32 2147483648, %v228_v53 }
  0x36   : > { %v629_v24 = vand.u32 2147483648, %v229_v3  ;;  %v292_v25 = vpack.c.bf16 %v283_v13, %v282_v6  ;;  %v598_v28 = vor.u32 %v597_v2, %v596_v15  ;;  %v627_v27 = vcvt.s32.f32 %v626_v16 }
  0x37   : > { %v591_v26 = vsel %vm884_vm9, %v590_v14, %v224_v45  ;;  %v620_v21 = vand.u32 2147483647, %v619_v19  ;;  %v216_v30 = vmul.f32 %v786_v1, %v199_v17  ;;  %v232_v31 = vadd.f32 %v790_v4, %v215_v54 }
  0x38   : > { %v256_v29 = vmax.f32 %v591_v26, -128.0  ;;  %560 = vmatmul.msk.bf16.vlgmr.msra.gmra.mxu3 %vm302_vm3, %v292_v25  ;;  %v599_v33 = vsel %vm889_vm10, %v598_v28, %v225_v50  ;;  %vm907_vm12 = vcmp.lt.f32.partialorder %v624_v12, 8388608.0  ;;  %v628_v35 = vand.u32 2147483647, %v627_v27 }
  0x39   : > { %v219_v36 = vmul.f32 %v786_v1, %v202_v20  ;;  %v257_v37 = vmax.f32 %v599_v33, -128.0  ;;  %v622_v39 = vor.u32 %v621_v23, %v620_v21  ;;  %v233_v40 = vadd.f32 %v790_v4, %v216_v30 }
  0x3a   : > { %v272_v38 = vmin.f32 %v256_v29, 127.0  ;;  %v630_v41 = vor.u32 %v629_v24, %v628_v35  ;;  %v648_v42 = vand.u32 2147483647, %v232_v31  ;;  %v650_v43 = vcvt.f32.s32 %v232_v31 }
  0x3b   : > { %v220_v44 = vmul.f32 %v786_v1, %v203_v32  ;;  %v273_v45 = vmin.f32 %v257_v37, 127.0  ;;  %v623_v46 = vsel %vm894_vm11, %v622_v39, %v228_v53  ;;  %v653_v22 = vand.u32 2147483648, %v232_v31 }
  0x3c   : > { %v658_v47 = vcvt.f32.s32 %v233_v40  ;;  %v631_v48 = vsel %vm907_vm12, %v630_v41, %v229_v3  ;;  %v260_v49 = vmax.f32 %v623_v46, -128.0  ;;  %v651_v50 = vcvt.s32.f32 %v650_v43 }
  0x3d   : > { %v656_v51 = vand.u32 2147483647, %v233_v40  ;;  %v287_v52 = vpack.c.bf16 %v273_v45, %v272_v38  ;;  %v261_v54 = vmax.f32 %v631_v48, -128.0  ;;  %v661_v58 = vand.u32 2147483648, %v233_v40 }
  0x3e   : > { %v659_v55 = vcvt.s32.f32 %v658_v47  ;;  %v276_v56 = vmin.f32 %v260_v49, 127.0  ;;  %v652_v57 = vand.u32 2147483647, %v651_v50  ;;  %v236_v1 = vadd.f32 %v790_v4, %v219_v36 }
  0x3f   : > { %555 = vmatmul.msk.bf16.gmra.mxu0 %vm302_vm3, %v287_v52  ;;  %v277_v59 = vmin.f32 %v261_v54, 127.0  ;;  %vm920_vm13 = vcmp.lt.f32.partialorder %v648_v42, 8388608.0  ;;  %v237_v61 = vadd.f32 %v790_v4, %v220_v44  ;;  %vm657_vm14 = vcmp.lt.f32.partialorder %v656_v51, 8388608.0 }
  0x40   : > { %v660_v60 = vand.u32 2147483647, %v659_v55  ;;  %v654_v62 = vor.u32 %v653_v22, %v652_v57  ;;  %v682_v63 = vcvt.f32.s32 %v236_v1  ;;  %v680_v3 = vand.u32 2147483647, %v236_v1 }
  0x41   : > { %v289_v0 = vpack.c.bf16 %v277_v59, %v276_v56  ;;  %v690_v5 = vcvt.f32.s32 %v237_v61  ;;  %v685_v8 = vand.u32 2147483648, %v236_v1  ;;  %v688_v9 = vand.u32 2147483647, %v237_v61 }
  0x42   : > { %v662_v2 = vor.u32 %v661_v58, %v660_v60  ;;  %v655_v6 = vsel %vm920_vm13, %v654_v62, %v232_v31  ;;  %v683_v7 = vcvt.s32.f32 %v682_v63  ;;  %v693_v13 = vand.u32 2147483648, %v237_v61 }
  0x43   : > { %557 = vmatmul.msk.bf16.gmra.mxu1 %vm302_vm3, %v289_v0  ;;  %v264_v11 = vmax.f32 %v655_v6, -128.0  ;;  %v691_v12 = vcvt.s32.f32 %v690_v5  ;;  %vm681_vm15 = vcmp.lt.f32.partialorder %v680_v3, 8388608.0  ;;  %vm689_vm0 = vcmp.lt.f32.partialorder %v688_v9, 8388608.0 }
  0x44   : > { %v663_v10 = vsel %vm657_vm14, %v662_v2, %v233_v40  ;;  %v684_v14 = vand.u32 2147483647, %v683_v7  ;;  %vm376_vm1 = vcmask 261120  }
  0x45   : > { %v265_v4 = vmax.f32 %v663_v10, -128.0  ;;  %v280_v15 = vmin.f32 %v264_v11, 127.0  ;;  %v692_v16 = vand.u32 2147483647, %v691_v12 }
  0x46   : > { %v686_v18 = vor.u32 %v685_v8, %v684_v14 }
  0x47   : > { %v281_v17 = vmin.f32 %v265_v4, 127.0  ;;  %v694_v19 = vor.u32 %v693_v13, %v692_v16 }
  0x48   : > { %v687_v24 = vsel %vm681_vm15, %v686_v18, %v236_v1 }
  0x49   : > { %v291_v23 = vpack.c.bf16 %v281_v17, %v280_v15  ;;  %v695_v20 = vsel %vm689_vm0, %v694_v19, %v237_v61  ;;  %v268_v25 = vmax.f32 %v687_v24, -128.0 }
  0x4a   : > { %v269_v26 = vmax.f32 %v695_v20, -128.0 }
  0x4b   : > { %559 = vmatmul.msk.bf16.gmra.mxu2 %vm302_vm3, %v291_v23  ;;  %v284_v28 = vmin.f32 %v268_v25, 127.0 }
  0x4c   : > { %v285_v27 = vmin.f32 %v269_v26, 127.0 }
  0x4e   : > { %v293_v29 = vpack.c.bf16 %v285_v27, %v284_v28 }
  0x50   : > { %561 = vmatmul.msk.bf16.gmra.mxu3 %vm302_vm3, %v293_v29 }
  0xa6   : > { %v336_v21 = vpop.f32.mrf.mxu0 }
  0xa7   : > { %v414_v36 = vmul.f32 %v336_v21, %v336_v21  ;;  %v377_v41 = vsel %vm376_vm1, %v336_v21, 0.0 }
  0xa9   : > { %v346_v30 = vpop.f32.mrf.mxu1  ;;  %v430_v45 = vsel %vm376_vm1, %v414_v36, 0.0 }
  0xaa   : > { %v418_v50 = vmul.f32 %v346_v30, %v346_v30  ;;  %v384_v56 = vsel %vm376_vm1, %v346_v30, 0.0 }
  0xac   : > { %v437_v60 = vsel %vm376_vm1, %v418_v50, 0.0 }
  0xae   : > { %v338_v31 = vpop.f32.mrf.mxu0 }
  0xaf   : > { %v415_v35 = vmul.f32 %v338_v31, %v338_v31  ;;  %v378_v37 = vsel %vm376_vm1, %v338_v31, 0.0 }
  0xb0   : > { %v379_v44 = vadd.f32 %v378_v37, %v377_v41 }
  0xb1   : > { %v348_v32 = vpop.f32.mrf.mxu1  ;;  %v431_v42 = vsel %vm376_vm1, %v415_v35, 0.0 }
  0xb2   : > { %v432_v47 = vadd.f32 %v431_v42, %v430_v45  ;;  %v419_v57 = vmul.f32 %v348_v32, %v348_v32  ;;  %v386_v61 = vsel %vm376_vm1, %v348_v32, 0.0 }
  0xb4   : > { %v356_v33 = vpop.f32.mrf.mxu2  ;;  %v439_v3 = vsel %vm376_vm1, %v419_v57, 0.0 }
  0xb5   : > { %v422_v9 = vmul.f32 %v356_v33, %v356_v33  ;;  %v392_v14 = vsel %vm376_vm1, %v356_v33, 0.0 }
  0xb7   : > { %v445_v19 = vsel %vm376_vm1, %v422_v9, 0.0 }
  0xbb   : > { %v366_v39 = vpop.f32.mrf.mxu3 }
  0xbc   : > { %v341_v34 = vpop.f32.mrf.mxu0  ;;  %v358_v22 = vpop.f32.mrf.mxu2  ;;  %v426_v32 = vmul.f32 %v366_v39, %v366_v39  ;;  %v400_v37 = vsel %vm376_vm1, %v366_v39, 0.0 }
  0xbd   : > { %v416_v38 = vmul.f32 %v341_v34, %v341_v34  ;;  %v380_v43 = vsel %vm376_vm1, %v341_v34, 0.0  ;;  %v423_v15 = vmul.f32 %v358_v22, %v358_v22  ;;  %v394_v23 = vsel %vm376_vm1, %v358_v22, 0.0 }
  0xbe   : > { %v381_v48 = vadd.f32 %v380_v43, %v379_v44  ;;  %v453_v43 = vsel %vm376_vm1, %v426_v32, 0.0 }
  0xbf   : > { %v433_v46 = vsel %vm376_vm1, %v416_v38, 0.0  ;;  %v447_v26 = vsel %vm376_vm1, %v423_v15, 0.0 }
  0xc0   : > { %v351_v40 = vpop.f32.mrf.mxu1  ;;  %v434_v54 = vadd.f32 %v433_v46, %v432_v47 }
  0xc1   : > { %v420_v62 = vmul.f32 %v351_v40, %v351_v40  ;;  %v388_v5 = vsel %vm376_vm1, %v351_v40, 0.0 }
  0xc3   : > { %v368_v63 = vpop.f32.mrf.mxu3  ;;  %v441_v10 = vsel %vm376_vm1, %v420_v62, 0.0 }
  0xc4   : > { %v343_v49 = vpop.f32.mrf.mxu0  ;;  %v427_v38 = vmul.f32 %v368_v63, %v368_v63  ;;  %v402_v44 = vsel %vm376_vm1, %v368_v63, 0.0 }
  0xc5   : > { %v382_v51 = vsel %vm376_vm1, %v343_v49, 0.0  ;;  %v417_v52 = vmul.f32 %v343_v49, %v343_v49 }
  0xc6   : > { %v383_v55 = vadd.f32 %v382_v51, %v381_v48  ;;  %v455_v48 = vsel %vm376_vm1, %v427_v38, 0.0 }
  0xc7   : > { %v435_v58 = vsel %vm376_vm1, %v417_v52, 0.0 }
  0xc8   : > { %v385_v1 = vadd.f32 %v384_v56, %v383_v55  ;;  %v436_v59 = vadd.f32 %v435_v58, %v434_v54  ;;  %v353_v53 = vpop.f32.mrf.mxu1 }
  0xc9   : > { %v421_v6 = vmul.f32 %v353_v53, %v353_v53  ;;  %v390_v11 = vsel %vm376_vm1, %v353_v53, 0.0 }
  0xca   : > { %v438_v0 = vadd.f32 %v437_v60, %v436_v59  ;;  %v387_v2 = vadd.f32 %v386_v61, %v385_v1  ;;  %v467_v60 = vlaneseq }
  0xcb   : > { %v443_v16 = vsel %vm376_vm1, %v421_v6, 0.0 }
  0xcc   : > { %v389_v7 = vadd.f32 %v388_v5, %v387_v2  ;;  %v440_v8 = vadd.f32 %v439_v3, %v438_v0  ;;  %v468_v2 = vshrl.u32 %v467_v60, 7 }
  0xce   : > { %v361_v12 = vpop.f32.mrf.mxu2  ;;  %v391_v13 = vadd.f32 %v390_v11, %v389_v7  ;;  %v442_v4 = vadd.f32 %v441_v10, %v440_v8  ;;  %vm470_vm2 = vcmp.eq.s32.totalorder %v468_v2, 1  ;;  %vm469_vm3 = vcmp.eq.s32.totalorder %v468_v2, 0 }
  0xcf   : > { %v424_v24 = vmul.f32 %v361_v12, %v361_v12  ;;  %v396_v28 = vsel %vm376_vm1, %v361_v12, 0.0 }
  0xd0   : > { %v393_v17 = vadd.f32 %v392_v14, %v391_v13  ;;  %v444_v18 = vadd.f32 %v443_v16, %v442_v4 }
  0xd1   : > { %v449_v30 = vsel %vm376_vm1, %v424_v24, 0.0 }
  0xd2   : > { %v446_v20 = vadd.f32 %v445_v19, %v444_v18  ;;  %v395_v25 = vadd.f32 %v394_v23, %v393_v17 }
  0xd3   : > { %v371_v27 = vpop.f32.mrf.mxu3 }
  0xd4   : > { %v397_v29 = vadd.f32 %v396_v28, %v395_v25  ;;  %v448_v21 = vadd.f32 %v447_v26, %v446_v20  ;;  %v428_v45 = vmul.f32 %v371_v27, %v371_v27  ;;  %v404_v49 = vsel %vm376_vm1, %v371_v27, 0.0 }
  0xd6   : > { %v363_v31 = vpop.f32.mrf.mxu2  ;;  %v450_v33 = vadd.f32 %v449_v30, %v448_v21  ;;  %v457_v52 = vsel %vm376_vm1, %v428_v45, 0.0 }
  0xd7   : > { %v398_v34 = vsel %vm376_vm1, %v363_v31, 0.0  ;;  %v425_v35 = vmul.f32 %v363_v31, %v363_v31 }
  0xd8   : > { %v399_v36 = vadd.f32 %v398_v34, %v397_v29 }
  0xd9   : > { %v451_v40 = vsel %vm376_vm1, %v425_v35, 0.0 }
  0xda   : > { %v401_v41 = vadd.f32 %v400_v37, %v399_v36  ;;  %v452_v42 = vadd.f32 %v451_v40, %v450_v33 }
  0xdb   : > { %v373_v47 = vpop.f32.mrf.mxu3 }
  0xdc   : > { %v454_v46 = vadd.f32 %v453_v43, %v452_v42  ;;  %v403_v22 = vadd.f32 %v402_v44, %v401_v41  ;;  %v429_v50 = vmul.f32 %v373_v47, %v373_v47  ;;  %v406_v54 = vsel %vm376_vm1, %v373_v47, 0.0 }
  0xde   : > { %v405_v39 = vadd.f32 %v404_v49, %v403_v22  ;;  %v456_v51 = vadd.f32 %v455_v48, %v454_v46  ;;  %v459_v57 = vsel %vm376_vm1, %v429_v50, 0.0 }
  0xe0   : > { %v458_v55 = vadd.f32 %v457_v52, %v456_v51  ;;  %v407_v56 = vadd.f32 %v406_v54, %v405_v39 }
  0xe2   : > { %v408_v58 = vrot.slane %v407_v56, 4  ;;  %v460_v1 = vadd.f32 %v459_v57, %v458_v55 }
  0xe4   : > { %v409_v59 = vadd.f32 %v408_v58, %v407_v56  ;;  %v461_v53 = vrot.slane %v460_v1, 4 }
  0xe6   : > { %v410_v61 = vrot.slane %v409_v59, 2  ;;  %v462_v62 = vadd.f32 %v461_v53, %v460_v1 }
  0xe8   : > { %v411_v63 = vadd.f32 %v410_v61, %v409_v59  ;;  %v463_v0 = vrot.slane %v462_v62, 2 }
  0xea   : > { %v464_v3 = vadd.f32 %v463_v0, %v462_v62  ;;  %v412_v5 = vrot.slane %v411_v63, 1 }
  0xec   : > { %v465_v6 = vrot.slane %v464_v3, 1  ;;  %v413_v8 = vadd.f32 %v412_v5, %v411_v63 }
  0xee   : > { %v466_v7 = vadd.f32 %v465_v6, %v464_v3 }
  0xf0   : > { %v471_v9 = vsel %vm470_vm2, %v466_v7, 0.0 }
  0xf1   : > { %v472_v10 = vsel %vm469_vm3, %v413_v8, %v471_v9 }
  0xf2   : > { %473 = vst.msk [vmem:[%s184_s30] sm:$0xff] %vm376_vm1, %v472_v10 }
  0xf3 PF: > { %s14_s12 = sadd.s32 1, %s740_s12  }
  0xf4   : > { %p11_p8 = scmp.ge.s32.totalorder %s14_s12, 4  }
  0xf6   :  { %13 = sbr.rel (!%p11_p8) target bundleno = 1 (0x1), region = 67 }
  0xfb   :  { %493 = vsyncpa [#allocation3], 1 }
  0xfc   :  { %495 = vsyncpa [#allocation3 + $0x1], 1 }

// kernel: pointnet_sa_module_msg_forward.11
= control target key start
LH: loop header
LB: loop body
LE: loop exit
PB: predicated region body
PF: predicated region fallthrough
CT: control target
= control target key end

     0   :  { %9 = vsyncpa [#allocation3], 0  ;;  %s653_s15 = smov 0   ;;  %s764_s0 = inlined_call_operand.vmem [shape: f32[2], index: 0, kind: input, shape index: {}]   ;;  %s765_s1 = inlined_call_operand.vmem [shape: f32[128,16], index: 1, kind: input, shape index: {}]   ;;  %s766_s2 = inlined_call_operand.vmem [shape: bf16[16,32], index: 2, kind: input, shape index: {}]   ;;  %s767_s3 = inlined_call_operand.vmem [shape: f32[8,32], index: 3, kind: input, shape index: {}]   ;;  %s768_s4 = inlined_call_operand.vmem [shape: f32[16,32], index: 4, kind: output, shape index: {}]  }
   0x1 LB: > { %s659_s16 = sadd.s32 4294967295, %s625_s15   ;;  %p494_p0 = scmp.ge.s32.totalorder %s625_s15, 1  ;;  %s625_s15 = sphi %s653_s15, %s15_s15  }
   0x2   : > { %p135_p1 = scmp.lt.s32.totalorder %s625_s15, 3  ;;  %s147_s19 = sshll.u32 %s764_s0, 4  ;;  %s148_s19 = int_to_ptr.vmem [resolvable:$true] %s147_s19 }
   0x3   : > { %p589_p3 = scmp.eq.s32.totalorder %s659_s16, 0  ;;  %s627_s20 = smov [#allocation2]  }
   0x4   : > { %p136_p2 = pnand %p494_p0, %p135_p1 }
   0x6   : > { %p585_p4 = pneg %p136_p2  ;;  %175 = sbr.rel (%p136_p2) target bundleno = 216 (0xd8), region = 36 }
   0x8   : > { %p586_p5 = pnand %p589_p3, %p585_p4 }
   0xa   : > { %588 = dma.vmem_to_smem (!%p586_p5), %s148_s19, 16, %s627_s20, [#allocation3]  }
   0xb   : > { %620 = dma.done.wait (%p589_p3), [#allocation3], 16  }
   0xc   : > { %622 = vsyncadd (%p589_p3), [#allocation3], 4294967280 }
   0xd   : > { %182 = sfence }
   0xe   : > { %v513_v0 = vld [vmem:[%s766_s2] sm:$0xff]  ;;  %s499_s23 = sshll.u32 %s659_s16, 3  ;;  %s213_s24 = sld [smem:[#allocation2]]  ;;  %vm277_vm5 = vcmask 130048   ;;  %vm346_vm9 = vcmask 261120   ;;  %vm411_vm10 = vcmask 1041409  }
   0xf   : > { %p203_p6 = scmp.lt.s32.totalorder %s499_s23, 15  ;;  %s502_s25 = sld [smem:[#allocation2 + $0x1]]  ;;  %297 = vmatpush.bf16.msra.mxu0 %v513_v0  ;;  %514 = vmatpush.bf16.msra.mxu1 %v513_v0  ;;  %vm413_vm11 = vcmask 1042434   ;;  %vm415_vm12 = vcmask 1043459   ;;  %vm417_vm13 = vcmask 1044484   ;;  %vm419_vm14 = vcmask 1045509  }
  0x10   : > { %515 = vmatpush.bf16.msra.mxu2 %v513_v0  ;;  %516 = vmatpush.bf16.msra.mxu3 %v513_v0  ;;  %p208_p7 = scmp.lt.s32.totalorder %s659_s16, 1  ;;  %vm421_vm15 = vcmask 1046534  }
  0x11   : > { %s780_s23 = smov (!%p203_p6, %s499_s23), 15 }
  0x12   : > { %s500_s26 = sshll.u32 %s780_s23, 3  ;;  %s782_s16 = smov (!%p208_p7, %s659_s16), 1 }
  0x13   : > { %s206_s29 = scalar_lea.vmem %s765_s1, %s500_s26  ;;  %s501_s6 = sshll.u32 %s782_s16, 3 }
  0x14   : > { %v223_v1 = vstv %s213_s24  ;;  %v215_v2 = vld [vmem:[%s206_s29] sm:$0xff]  ;;  %v216_v3 = vld [vmem:[%s206_s29 + $0x8] sm:$0xff]  ;;  %v217_v5 = vld [vmem:[%s206_s29 + $0x10] sm:$0xff]  ;;  %s211_s9 = scalar_lea.vmem %s768_s4, %s501_s6 }
  0x15   : > { %v674_v4 = vstv %s502_s25  ;;  %v224_v6 = vmul.f32 %v223_v1, %v215_v2  ;;  %v225_v7 = vmul.f32 %v223_v1, %v216_v3  ;;  %v218_v8 = vld [vmem:[%s206_s29 + $0x18] sm:$0xff]  ;;  %v226_v9 = vmul.f32 %v223_v1, %v217_v5  ;;  %v219_v10 = vld [vmem:[%s206_s29 + $0x20] sm:$0xff]  ;;  %v220_v11 = vld [vmem:[%s206_s29 + $0x28] sm:$0xff] }
  0x16   : > { %v227_v12 = vmul.f32 %v223_v1, %v218_v8  ;;  %v228_v13 = vmul.f32 %v223_v1, %v219_v10  ;;  %v229_v14 = vmul.f32 %v223_v1, %v220_v11  ;;  %v221_v15 = vld [vmem:[%s206_s29 + $0x30] sm:$0xff]  ;;  %v222_v16 = vld [vmem:[%s206_s29 + $0x38] sm:$0xff] }
  0x17   : > { %v233_v17 = vadd.f32 %v674_v4, %v224_v6  ;;  %v234_v18 = vadd.f32 %v674_v4, %v225_v7  ;;  %v235_v19 = vadd.f32 %v674_v4, %v226_v9  ;;  %v230_v23 = vmul.f32 %v223_v1, %v221_v15 }
  0x18   : > { %v236_v20 = vadd.f32 %v674_v4, %v227_v12  ;;  %v237_v21 = vadd.f32 %v674_v4, %v228_v13  ;;  %v682_v22 = vadd.f32 %v674_v4, %v229_v14  ;;  %v231_v27 = vmul.f32 %v223_v1, %v222_v16 }
  0x19   : > { %v517_v24 = vand.u32 2147483647, %v233_v17  ;;  %v519_v25 = vcvt.f32.s32 %v233_v17  ;;  %v525_v26 = vand.u32 2147483647, %v234_v18  ;;  %v522_v28 = vand.u32 2147483648, %v233_v17 }
  0x1a   : > { %v527_v29 = vcvt.f32.s32 %v234_v18  ;;  %v533_v30 = vand.u32 2147483647, %v235_v19  ;;  %v535_v31 = vcvt.f32.s32 %v235_v19  ;;  %v530_v35 = vand.u32 2147483648, %v234_v18 }
  0x1b   : > { %vm684_vm0 = vcmp.lt.f32.partialorder %v517_v24, 8388608.0  ;;  %v520_v33 = vcvt.s32.f32 %v519_v25  ;;  %vm688_vm1 = vcmp.lt.f32.partialorder %v525_v26, 8388608.0  ;;  %v538_v38 = vand.u32 2147483648, %v235_v19 }
  0x1c   : > { %v528_v36 = vcvt.s32.f32 %v527_v29  ;;  %v536_v37 = vcvt.s32.f32 %v535_v31  ;;  %v541_v39 = vand.u32 2147483647, %v236_v20  ;;  %vm692_vm2 = vcmp.lt.f32.partialorder %v533_v30, 8388608.0 }
  0x1d   : > { %v521_v40 = vand.u32 2147483647, %v520_v33  ;;  %v543_v42 = vcvt.f32.s32 %v236_v20  ;;  %v549_v43 = vand.u32 2147483647, %v237_v21  ;;  %v546_v46 = vand.u32 2147483648, %v236_v20 }
  0x1e   : > { %v529_v44 = vand.u32 2147483647, %v528_v36  ;;  %v537_v45 = vand.u32 2147483647, %v536_v37  ;;  %v551_v47 = vcvt.f32.s32 %v237_v21  ;;  %vm696_vm3 = vcmp.lt.f32.partialorder %v541_v39, 8388608.0 }
  0x1f   : > { %v523_v48 = vor.u32 %v522_v28, %v521_v40  ;;  %v544_v50 = vcvt.s32.f32 %v543_v42  ;;  %vm700_vm4 = vcmp.lt.f32.partialorder %v549_v43, 8388608.0  ;;  %v554_v55 = vand.u32 2147483648, %v237_v21 }
  0x20   : > { %v531_v52 = vor.u32 %v530_v35, %v529_v44  ;;  %v539_v53 = vor.u32 %v538_v38, %v537_v45  ;;  %v552_v54 = vcvt.s32.f32 %v551_v47  ;;  %v557_v58 = vand.u32 2147483647, %v682_v22  ;;  %v319_v44 = vld [vmem:[%s767_s3] sm:$0xff] }
  0x21   : > { %v524_v56 = vsel %vm684_vm0, %v523_v48, %v233_v17  ;;  %v545_v57 = vand.u32 2147483647, %v544_v50  ;;  %v559_v59 = vcvt.f32.s32 %v682_v22  ;;  %v562_v3 = vand.u32 2147483648, %v682_v22 }
  0x22   : > { %v532_v60 = vsel %vm688_vm1, %v531_v52, %v234_v18  ;;  %v249_v61 = vmax.f32 %v524_v56, -128.0  ;;  %v540_v62 = vsel %vm692_vm2, %v539_v53, %v235_v19  ;;  %v553_v63 = vand.u32 2147483647, %v552_v54 }
  0x23   : > { %v250_v0 = vmax.f32 %v532_v60, -128.0  ;;  %v547_v1 = vor.u32 %v546_v46, %v545_v57  ;;  %v251_v2 = vmax.f32 %v540_v62, -128.0  ;;  %v560_v7 = vcvt.s32.f32 %v559_v59 }
  0x24   : > { %v257_v5 = vmin.f32 %v249_v61, 127.0  ;;  %v555_v6 = vor.u32 %v554_v55, %v553_v63  ;;  %v239_v8 = vadd.f32 %v674_v4, %v230_v23  ;;  %v240_v11 = vadd.f32 %v674_v4, %v231_v27 }
  0x25   : > { %v258_v9 = vmin.f32 %v250_v0, 127.0  ;;  %v548_v10 = vsel %vm696_vm3, %v547_v1, %v236_v20  ;;  %v259_v13 = vmin.f32 %v251_v2, 127.0  ;;  %v561_v15 = vand.u32 2147483647, %v560_v7 }
  0x26   : > { %v252_v12 = vmax.f32 %v548_v10, -128.0  ;;  %v556_v14 = vsel %vm700_vm4, %v555_v6, %v237_v21  ;;  %vm558_vm6 = vcmp.lt.f32.partialorder %v557_v58, 8388608.0  ;;  %v567_v18 = vcvt.f32.s32 %v239_v8 }
  0x27   : > { %v265_v16 = vpack.c.bf16 %v258_v9, %v257_v5  ;;  %v253_v17 = vmax.f32 %v556_v14, -128.0  ;;  %v563_v24 = vor.u32 %v562_v3, %v561_v15  ;;  %v565_v23 = vand.u32 2147483647, %v239_v8 }
  0x28   : > { %v260_v19 = vmin.f32 %v252_v12, 127.0  ;;  %v568_v25 = vcvt.s32.f32 %v567_v18  ;;  %v570_v26 = vand.u32 2147483648, %v239_v8  ;;  %v575_v20 = vcvt.f32.s32 %v240_v11 }
  0x29   : > { %507 = vmatmul.msk.bf16.vlgmr.msra.gmra.mxu0 %vm277_vm5, %v265_v16  ;;  %v564_v4 = vsel %vm558_vm6, %v563_v24, %v682_v22  ;;  %v261_v27 = vmin.f32 %v253_v17, 127.0  ;;  %v573_v29 = vand.u32 2147483647, %v240_v11  ;;  %v578_v32 = vand.u32 2147483648, %v240_v11 }
  0x2a   : > { %v266_v28 = vpack.c.bf16 %v260_v19, %v259_v13  ;;  %v254_v30 = vmax.f32 %v564_v4, -128.0  ;;  %v569_v21 = vand.u32 2147483647, %v568_v25  ;;  %v576_v31 = vcvt.s32.f32 %v575_v20 }
  0x2b   : > { %vm566_vm7 = vcmp.lt.f32.partialorder %v565_v23, 8388608.0  ;;  %vm574_vm8 = vcmp.lt.f32.partialorder %v573_v29, 8388608.0  ;;  %v727_v45 = vperm.slane %v319_v44, 0  ;;  %v729_v46 = vperm.slane %v319_v44, 1 }
  0x2c   : > { %508 = vmatmul.msk.bf16.vlgmr.msra.gmra.mxu1 %vm277_vm5, %v266_v28  ;;  %v262_v33 = vmin.f32 %v254_v30, 127.0  ;;  %v571_v34 = vor.u32 %v570_v26, %v569_v21  ;;  %v577_v35 = vand.u32 2147483647, %v576_v31  ;;  %vm423_vm0 = vcmask 1047559  }
  0x2e   : > { %v267_v36 = vpack.c.bf16 %v262_v33, %v261_v27  ;;  %v572_v37 = vsel %vm566_vm7, %v571_v34, %v239_v8  ;;  %v579_v38 = vor.u32 %v578_v32, %v577_v35 }
  0x2f   : > { %v255_v39 = vmax.f32 %v572_v37, -128.0 }
  0x30   : > { %509 = vmatmul.msk.bf16.vlgmr.msra.gmra.mxu2 %vm277_vm5, %v267_v36  ;;  %v580_v22 = vsel %vm574_vm8, %v579_v38, %v240_v11 }
  0x31   : > { %v256_v40 = vmax.f32 %v580_v22, -128.0  ;;  %v263_v41 = vmin.f32 %v255_v39, 127.0 }
  0x33   : > { %v264_v42 = vmin.f32 %v256_v40, 127.0 }
  0x35   : > { %v268_v43 = vpack.c.bf16 %v264_v42, %v263_v41 }
  0x37   : > { %510 = vmatmul.msk.bf16.vlgmr.msra.gmra.mxu3 %vm277_vm5, %v268_v43 }
  0xa6   : > { %v299_v47 = vpop.f32.mrf.mxu0 }
  0xa7   : > { %v321_v48 = vmul.f32 %v727_v45, %v299_v47 }
  0xa9   : > { %v330_v49 = vadd.f32 %v729_v46, %v321_v48  ;;  %v304_v50 = vpop.f32.mrf.mxu1 }
  0xaa   : > { %v323_v51 = vmul.f32 %v727_v45, %v304_v50 }
  0xab   : > { %v338_v52 = vmax.f32 %v330_v49, 0.0 }
  0xac   : > { %v332_v53 = vadd.f32 %v729_v46, %v323_v51 }
  0xad   : > { %v347_v54 = vsel %vm346_vm9, %v338_v52, -inf }
  0xae   : > { %v340_v55 = vmax.f32 %v332_v53, 0.0  ;;  %v301_v56 = vpop.f32.mrf.mxu0  ;;  %v348_v58 = vrot.slane %v347_v54, 4 }
  0xaf   : > { %v322_v57 = vmul.f32 %v727_v45, %v301_v56 }
  0xb0   : > { %v361_v59 = vsel %vm346_vm9, %v340_v55, -inf  ;;  %v349_v1 = vmax.f32 %v347_v54, %v348_v58 }
  0xb1   : > { %v331_v60 = vadd.f32 %v729_v46, %v322_v57  ;;  %v306_v61 = vpop.f32.mrf.mxu1  ;;  %v362_v63 = vrot.slane %v361_v59, 4 }
  0xb2   : > { %v324_v62 = vmul.f32 %v727_v45, %v306_v61  ;;  %v350_v11 = vrot.slane %v349_v1, 2 }
  0xb3   : > { %v339_v0 = vmax.f32 %v331_v60, 0.0  ;;  %v309_v2 = vpop.f32.mrf.mxu2  ;;  %v363_v9 = vmax.f32 %v361_v59, %v362_v63 }
  0xb4   : > { %v333_v3 = vadd.f32 %v729_v46, %v324_v62  ;;  %v325_v5 = vmul.f32 %v727_v45, %v309_v2  ;;  %v351_v23 = vmax.f32 %v349_v1, %v350_v11 }
  0xb5   : > { %v354_v6 = vsel %vm346_vm9, %v339_v0, -inf  ;;  %v364_v17 = vrot.slane %v363_v9, 2 }
  0xb6   : > { %v355_v7 = vrot.slane %v354_v6, 4  ;;  %v341_v8 = vmax.f32 %v333_v3, 0.0  ;;  %v334_v10 = vadd.f32 %v729_v46, %v325_v5  ;;  %v352_v33 = vrot.slane %v351_v23, 1 }
  0xb7   : > { %v365_v21 = vmax.f32 %v363_v9, %v364_v17 }
  0xb8   : > { %v356_v12 = vmax.f32 %v354_v6, %v355_v7  ;;  %v368_v13 = vsel %vm346_vm9, %v341_v8, -inf  ;;  %v342_v14 = vmax.f32 %v334_v10, 0.0  ;;  %v353_v43 = vmax.f32 %v351_v23, %v352_v33 }
  0xb9   : > { %v369_v15 = vrot.slane %v368_v13, 4  ;;  %v366_v39 = vrot.slane %v365_v21, 1 }
  0xba   : > { %v357_v16 = vrot.slane %v356_v12, 2  ;;  %v375_v18 = vsel %vm346_vm9, %v342_v14, -inf  ;;  %v314_v19 = vpop.f32.mrf.mxu3 }
  0xbb   : > { %v370_v24 = vmax.f32 %v368_v13, %v369_v15  ;;  %v376_v25 = vrot.slane %v375_v18, 4  ;;  %v327_v26 = vmul.f32 %v727_v45, %v314_v19  ;;  %v311_v28 = vpop.f32.mrf.mxu2  ;;  %v367_v53 = vmax.f32 %v365_v21, %v366_v39 }
  0xbc   : > { %v358_v20 = vmax.f32 %v356_v12, %v357_v16  ;;  %v326_v4 = vmul.f32 %v727_v45, %v311_v28 }
  0xbd   : > { %v377_v27 = vmax.f32 %v375_v18, %v376_v25  ;;  %v336_v29 = vadd.f32 %v729_v46, %v327_v26  ;;  %v371_v31 = vrot.slane %v370_v24, 2 }
  0xbe   : > { %v359_v30 = vrot.slane %v358_v20, 1  ;;  %v335_v32 = vadd.f32 %v729_v46, %v326_v4 }
  0xbf   : > { %v344_v34 = vmax.f32 %v336_v29, 0.0  ;;  %v378_v36 = vrot.slane %v377_v27, 2  ;;  %v372_v40 = vmax.f32 %v370_v24, %v371_v31 }
  0xc0   : > { %v343_v35 = vmax.f32 %v335_v32, 0.0  ;;  %v360_v38 = vmax.f32 %v358_v20, %v359_v30 }
  0xc1   : > { %v389_v37 = vsel %vm346_vm9, %v344_v34, -inf  ;;  %v379_v49 = vmax.f32 %v377_v27, %v378_v36  ;;  %v373_v55 = vrot.slane %v372_v40, 1 }
  0xc2   : > { %v390_v22 = vrot.slane %v389_v37, 4  ;;  %v382_v41 = vsel %vm346_vm9, %v343_v35, -inf  ;;  %v316_v42 = vpop.f32.mrf.mxu3  ;;  %v412_v50 = vsel %vm411_vm10, %v360_v38, %v353_v43 }
  0xc3   : > { %v383_v44 = vrot.slane %v382_v41, 4  ;;  %v328_v47 = vmul.f32 %v727_v45, %v316_v42  ;;  %v414_v58 = vsel %vm413_vm11, %v367_v53, %v412_v50  ;;  %v380_v59 = vrot.slane %v379_v49, 1 }
  0xc4   : > { %v391_v48 = vmax.f32 %v389_v37, %v390_v22  ;;  %v374_v62 = vmax.f32 %v372_v40, %v373_v55 }
  0xc5   : > { %v384_v51 = vmax.f32 %v382_v41, %v383_v44  ;;  %v337_v52 = vadd.f32 %v729_v46, %v328_v47  ;;  %v381_v2 = vmax.f32 %v379_v49, %v380_v59 }
  0xc6   : > { %v392_v54 = vrot.slane %v391_v48, 2  ;;  %v416_v1 = vsel %vm415_vm12, %v374_v62, %v414_v58 }
  0xc7   : > { %v385_v56 = vrot.slane %v384_v51, 2  ;;  %v345_v57 = vmax.f32 %v337_v52, 0.0  ;;  %v418_v7 = vsel %vm417_vm13, %v381_v2, %v416_v1 }
  0xc8   : > { %v393_v60 = vmax.f32 %v391_v48, %v392_v54 }
  0xc9   : > { %v386_v61 = vmax.f32 %v384_v51, %v385_v56  ;;  %v396_v45 = vsel %vm346_vm9, %v345_v57, -inf }
  0xca   : > { %v397_v63 = vrot.slane %v396_v45, 4  ;;  %v394_v3 = vrot.slane %v393_v60, 1 }
  0xcb   : > { %v387_v0 = vrot.slane %v386_v61, 1 }
  0xcc   : > { %v398_v46 = vmax.f32 %v396_v45, %v397_v63  ;;  %v395_v10 = vmax.f32 %v393_v60, %v394_v3 }
  0xcd   : > { %v388_v5 = vmax.f32 %v386_v61, %v387_v0 }
  0xce   : > { %v399_v6 = vrot.slane %v398_v46, 2 }
  0xcf   : > { %v420_v8 = vsel %vm419_vm14, %v388_v5, %v418_v7 }
  0xd0   : > { %v400_v9 = vmax.f32 %v398_v46, %v399_v6  ;;  %v422_v12 = vsel %vm421_vm15, %v395_v10, %v420_v8 }
  0xd2   : > { %v401_v11 = vrot.slane %v400_v9, 1 }
  0xd4   : > { %v402_v13 = vmax.f32 %v400_v9, %v401_v11 }
  0xd6   : > { %v424_v14 = vsel %vm423_vm0, %v402_v13, %v422_v12 }
  0xd7   : > { %426 = vst.msk [vmem:[%s211_s9] sm:$0xff] %vm346_vm9, %v424_v14 }
  0xd8 PF: > { %s15_s15 = sadd.s32 1, %s625_s15  }
  0xd9   : > { %p12_p8 = scmp.ge.s32.totalorder %s15_s15, 4  }
  0xdb   :  { %14 = sbr.rel (!%p12_p8) target bundleno = 1 (0x1), region = 71 }
  0xe0   :  { %446 = vsyncpa [#allocation3], 1 }
  0xe1   :  { %448 = vsyncpa [#allocation3 + $0x1], 1 }

// kernel: pointnet_sa_module_msg_forward.14
= control target key start
LH: loop header
LB: loop body
LE: loop exit
PB: predicated region body
PF: predicated region fallthrough
CT: control target
= control target key end

     0   :  { %8 = vsyncpa [#allocation3], 0  ;;  %s779_s12 = smov 0   ;;  %s990_s0 = inlined_call_operand.vmem [shape: f32[2], index: 0, kind: input, shape index: {}]   ;;  %s991_s1 = inlined_call_operand.vmem [shape: f32[256,32], index: 1, kind: input, shape index: {}]   ;;  %s992_s2 = inlined_call_operand.vmem [shape: bf16[32,64], index: 2, kind: input, shape index: {}]   ;;  %s993_s3 = inlined_call_operand.vmem [shape: f32[16,64], index: 3, kind: output, shape index: {}]  }
   0x1 LB: > { %s785_s13 = sadd.s32 4294967295, %s756_s12   ;;  %p549_p0 = scmp.ge.s32.totalorder %s756_s12, 1  ;;  %s756_s12 = sphi %s779_s12, %s14_s12  }
   0x2   : > { %p113_p1 = scmp.lt.s32.totalorder %s756_s12, 3  ;;  %s125_s16 = sshll.u32 %s990_s0, 4  ;;  %s126_s16 = int_to_ptr.vmem [resolvable:$true] %s125_s16 }
   0x3   : > { %p720_p3 = scmp.eq.s32.totalorder %s785_s13, 0  ;;  %s758_s17 = smov [#allocation2]  }
   0x4   : > { %p114_p2 = pnand %p549_p0, %p113_p1 }
   0x6   : > { %p716_p4 = pneg %p114_p2  ;;  %150 = sbr.rel (%p114_p2) target bundleno = 243 (0xf3), region = 32 }
   0x8   : > { %p717_p5 = pnand %p720_p3, %p716_p4 }
   0xa   : > { %719 = dma.vmem_to_smem (!%p717_p5), %s126_s16, 16, %s758_s17, [#allocation3]  }
   0xb   : > { %751 = dma.done.wait (%p720_p3), [#allocation3], 16  }
   0xc   : > { %753 = vsyncadd (%p720_p3), [#allocation3], 4294967280 }
   0xd   : > { %157 = sfence }
   0xe   : > { %v577_v0 = vld [vmem:[%s992_s2 + $0x8] sm:$0xff]  ;;  %s554_s20 = sshll.u32 %s785_s13, 4  ;;  %s186_s21 = sld [smem:[#allocation2]]  ;;  %v576_v1 = vld [vmem:[%s992_s2] sm:$0xff]  ;;  %vm310_vm3 = vcmask 261120  }
   0xf   : > { %p176_p6 = scmp.lt.s32.totalorder %s554_s20, 31  ;;  %s557_s22 = sld [smem:[#allocation2 + $0x1]]  ;;  %341 = vmatpush.bf16.msra.mxu0 %v577_v0  ;;  %578 = vmatpush.bf16.msra.mxu1 %v577_v0 }
  0x10   : > { %579 = vmatpush.bf16.msra.mxu2 %v577_v0  ;;  %580 = vmatpush.bf16.msra.mxu3 %v577_v0  ;;  %p181_p7 = scmp.lt.s32.totalorder %s785_s13, 1 }
  0x11   : > { %s1021_s20 = smov (!%p176_p6, %s554_s20), 31 }
  0x12   : > { %s555_s25 = sshll.u32 %s1021_s20, 3  ;;  %s1023_s13 = smov (!%p181_p7, %s785_s13), 1 }
  0x13   : > { %342 = vmatpush.bf16.msra.mxu0 %v576_v1  ;;  %581 = vmatpush.bf16.msra.mxu1 %v576_v1  ;;  %s803_s28 = scalar_lea.vmem %s991_s1, %s555_s25  ;;  %s556_s29 = sshll.u32 %s1023_s13, 3 }
  0x14   : > { %v805_v2 = vstv %s186_s21  ;;  %582 = vmatpush.bf16.msra.mxu2 %v576_v1  ;;  %v188_v3 = vld [vmem:[%s803_s28] sm:$0xff]  ;;  %v189_v4 = vld [vmem:[%s803_s28 + $0x8] sm:$0xff]  ;;  %583 = vmatpush.bf16.msra.mxu3 %v576_v1  ;;  %v195_v35 = vld [vmem:[%s803_s28 + $0x38] sm:$0xff]  ;;  %s184_s5 = scalar_lea.vmem %s993_s3, %s556_s29 }
  0x15   : > { %v809_v5 = vstv %s557_s22  ;;  %v192_v6 = vld [vmem:[%s803_s28 + $0x20] sm:$0xff]  ;;  %v205_v7 = vmul.f32 %v805_v2, %v188_v3  ;;  %v206_v8 = vmul.f32 %v805_v2, %v189_v4  ;;  %v193_v9 = vld [vmem:[%s803_s28 + $0x28] sm:$0xff] }
  0x16   : > { %v209_v10 = vmul.f32 %v805_v2, %v192_v6  ;;  %v196_v11 = vld [vmem:[%s803_s28 + $0x40] sm:$0xff]  ;;  %v197_v12 = vld [vmem:[%s803_s28 + $0x48] sm:$0xff]  ;;  %v210_v13 = vmul.f32 %v805_v2, %v193_v9 }
  0x17   : > { %v213_v14 = vmul.f32 %v805_v2, %v196_v11  ;;  %v214_v15 = vmul.f32 %v805_v2, %v197_v12  ;;  %v200_v16 = vld [vmem:[%s803_s28 + $0x60] sm:$0xff]  ;;  %v201_v17 = vld [vmem:[%s803_s28 + $0x68] sm:$0xff]  ;;  %v222_v18 = vadd.f32 %v809_v5, %v205_v7  ;;  %v223_v19 = vadd.f32 %v809_v5, %v206_v8 }
  0x18   : > { %v226_v20 = vadd.f32 %v809_v5, %v209_v10  ;;  %v227_v21 = vadd.f32 %v809_v5, %v210_v13  ;;  %v217_v24 = vmul.f32 %v805_v2, %v200_v16  ;;  %v218_v28 = vmul.f32 %v805_v2, %v201_v17 }
  0x19   : > { %v230_v22 = vadd.f32 %v809_v5, %v213_v14  ;;  %v829_v23 = vadd.f32 %v809_v5, %v214_v15  ;;  %v584_v25 = vand.u32 2147483647, %v222_v18  ;;  %v586_v26 = vcvt.f32.s32 %v222_v18 }
  0x1a   : > { %v592_v27 = vand.u32 2147483647, %v223_v19  ;;  %v589_v29 = vand.u32 2147483648, %v222_v18  ;;  %v594_v30 = vcvt.f32.s32 %v223_v19  ;;  %v616_v31 = vand.u32 2147483647, %v226_v20 }
  0x1b   : > { %v618_v32 = vcvt.f32.s32 %v226_v20  ;;  %vm833_vm0 = vcmp.lt.f32.partialorder %v584_v25, 8388608.0  ;;  %v587_v34 = vcvt.s32.f32 %v586_v26  ;;  %v597_v36 = vand.u32 2147483648, %v223_v19 }
  0x1c   : > { %vm837_vm1 = vcmp.lt.f32.partialorder %v592_v27, 8388608.0  ;;  %v595_v37 = vcvt.s32.f32 %v594_v30  ;;  %v621_v39 = vand.u32 2147483648, %v226_v20  ;;  %v624_v40 = vand.u32 2147483647, %v227_v21  ;;  %v191_v30 = vld [vmem:[%s803_s28 + $0x18] sm:$0xff] }
  0x1d   : > { %v619_v38 = vcvt.s32.f32 %v618_v32  ;;  %v588_v41 = vand.u32 2147483647, %v587_v34  ;;  %vm841_vm2 = vcmp.lt.f32.partialorder %v616_v31, 8388608.0  ;;  %v626_v43 = vcvt.f32.s32 %v227_v21  ;;  %v194_v34 = vld [vmem:[%s803_s28 + $0x30] sm:$0xff] }
  0x1e   : > { %v648_v44 = vand.u32 2147483647, %v230_v22  ;;  %v596_v45 = vand.u32 2147483647, %v595_v37  ;;  %v629_v47 = vand.u32 2147483648, %v227_v21  ;;  %v650_v48 = vcvt.f32.s32 %v230_v22 }
  0x1f   : > { %v620_v46 = vand.u32 2147483647, %v619_v38  ;;  %v590_v49 = vor.u32 %v589_v29, %v588_v41  ;;  %vm845_vm4 = vcmp.lt.f32.partialorder %v624_v40, 8388608.0  ;;  %v627_v51 = vcvt.s32.f32 %v626_v43 }
  0x20   : > { %vm849_vm5 = vcmp.lt.f32.partialorder %v648_v44, 8388608.0  ;;  %v598_v53 = vor.u32 %v597_v36, %v596_v45  ;;  %v651_v55 = vcvt.s32.f32 %v650_v48  ;;  %v653_v56 = vand.u32 2147483648, %v230_v22  ;;  %v198_v44 = vld [vmem:[%s803_s28 + $0x50] sm:$0xff] }
  0x21   : > { %v622_v54 = vor.u32 %v621_v39, %v620_v46  ;;  %v591_v57 = vsel %vm833_vm0, %v590_v49, %v222_v18  ;;  %v628_v58 = vand.u32 2147483647, %v627_v51  ;;  %v656_v59 = vand.u32 2147483647, %v829_v23 }
  0x22   : > { %v658_v60 = vcvt.f32.s32 %v829_v23  ;;  %v599_v61 = vsel %vm837_vm1, %v598_v53, %v223_v19  ;;  %v254_v62 = vmax.f32 %v591_v57, -128.0  ;;  %v652_v0 = vand.u32 2147483647, %v651_v55 }
  0x23   : > { %v623_v63 = vsel %vm841_vm2, %v622_v54, %v226_v20  ;;  %v255_v1 = vmax.f32 %v599_v61, -128.0  ;;  %v630_v3 = vor.u32 %v629_v47, %v628_v58  ;;  %v661_v6 = vand.u32 2147483648, %v829_v23 }
  0x24   : > { %v258_v4 = vmax.f32 %v623_v63, -128.0  ;;  %v270_v7 = vmin.f32 %v254_v62, 127.0  ;;  %v654_v8 = vor.u32 %v653_v56, %v652_v0  ;;  %v659_v9 = vcvt.s32.f32 %v658_v60 }
  0x25   : > { %v234_v10 = vadd.f32 %v809_v5, %v217_v24  ;;  %v271_v11 = vmin.f32 %v255_v1, 127.0  ;;  %v631_v12 = vsel %vm845_vm4, %v630_v3, %v227_v21  ;;  %v235_v14 = vadd.f32 %v809_v5, %v218_v28  ;;  %v190_v21 = vld [vmem:[%s803_s28 + $0x10] sm:$0xff] }
  0x26   : > { %v274_v13 = vmin.f32 %v258_v4, 127.0  ;;  %v259_v15 = vmax.f32 %v631_v12, -128.0  ;;  %v655_v16 = vsel %vm849_vm5, %v654_v8, %v230_v22  ;;  %v660_v17 = vand.u32 2147483647, %v659_v9 }
  0x27   : > { %v680_v18 = vand.u32 2147483647, %v234_v10  ;;  %v286_v19 = vpack.c.bf16 %v271_v11, %v270_v7  ;;  %vm868_vm6 = vcmp.lt.f32.partialorder %v656_v59, 8388608.0  ;;  %v262_v24 = vmax.f32 %v655_v16, -128.0 }
  0x28   : > { %v682_v25 = vcvt.f32.s32 %v234_v10  ;;  %v275_v26 = vmin.f32 %v259_v15, 127.0  ;;  %v662_v27 = vor.u32 %v661_v6, %v660_v17  ;;  %v685_v29 = vand.u32 2147483648, %v234_v10 }
  0x29   : > { %v688_v28 = vand.u32 2147483647, %v235_v14  ;;  %566 = vmatmul.msk.bf16.vlgmr.msra.gmra.mxu0 %vm310_vm3, %v286_v19  ;;  %v278_v22 = vmin.f32 %v262_v24, 127.0  ;;  %vm875_vm7 = vcmp.lt.f32.partialorder %v680_v18, 8388608.0  ;;  %v690_v33 = vcvt.f32.s32 %v235_v14  ;;  %v199_v18 = vld [vmem:[%s803_s28 + $0x58] sm:$0xff] }
  0x2a   : > { %v683_v32 = vcvt.s32.f32 %v682_v25  ;;  %v288_v36 = vpack.c.bf16 %v275_v26, %v274_v13  ;;  %v663_v37 = vsel %vm868_vm6, %v662_v27, %v829_v23  ;;  %v693_v38 = vand.u32 2147483648, %v235_v14 }
  0x2b   : > { %v207_v39 = vmul.f32 %v805_v2, %v190_v21  ;;  %v263_v40 = vmax.f32 %v663_v37, -128.0  ;;  %v691_v42 = vcvt.s32.f32 %v690_v33  ;;  %v208_v43 = vmul.f32 %v805_v2, %v191_v30  ;;  %v202_v21 = vld [vmem:[%s803_s28 + $0x70] sm:$0xff]  ;;  %v203_v33 = vld [vmem:[%s803_s28 + $0x78] sm:$0xff] }
  0x2c   : > { %v684_v41 = vand.u32 2147483647, %v683_v32  ;;  %568 = vmatmul.msk.bf16.vlgmr.msra.gmra.mxu1 %vm310_vm3, %v288_v36  ;;  %vm888_vm8 = vcmp.lt.f32.partialorder %v688_v28, 8388608.0  ;;  %v211_v47 = vmul.f32 %v805_v2, %v194_v34  ;;  %v212_v23 = vmul.f32 %v805_v2, %v195_v35 }
  0x2d   : > { %v224_v46 = vadd.f32 %v809_v5, %v207_v39  ;;  %v279_v48 = vmin.f32 %v263_v40, 127.0  ;;  %v692_v50 = vand.u32 2147483647, %v691_v42  ;;  %v225_v51 = vadd.f32 %v809_v5, %v208_v43 }
  0x2e   : > { %v686_v49 = vor.u32 %v685_v29, %v684_v41  ;;  %v228_v54 = vadd.f32 %v809_v5, %v211_v47  ;;  %v215_v55 = vmul.f32 %v805_v2, %v198_v44  ;;  %v229_v4 = vadd.f32 %v809_v5, %v212_v23 }
  0x2f   : > { %v600_v52 = vand.u32 2147483647, %v224_v46  ;;  %v602_v53 = vcvt.f32.s32 %v224_v46  ;;  %v290_v56 = vpack.c.bf16 %v279_v48, %v278_v22  ;;  %v694_v58 = vor.u32 %v693_v38, %v692_v50 }
  0x30   : > { %v687_v57 = vsel %vm875_vm7, %v686_v49, %v234_v10  ;;  %v608_v59 = vand.u32 2147483647, %v225_v51  ;;  %v605_v62 = vand.u32 2147483648, %v224_v46  ;;  %v610_v63 = vcvt.f32.s32 %v225_v51 }
  0x31   : > { %v266_v60 = vmax.f32 %v687_v57, -128.0  ;;  %v603_v61 = vcvt.s32.f32 %v602_v53  ;;  %570 = vmatmul.msk.bf16.vlgmr.msra.gmra.mxu2 %vm310_vm3, %v290_v56  ;;  %v695_v0 = vsel %vm888_vm8, %v694_v58, %v235_v14  ;;  %vm903_vm9 = vcmp.lt.f32.partialorder %v600_v52, 8388608.0 }
  0x32   : > { %v613_v3 = vand.u32 2147483648, %v225_v51  ;;  %v267_v6 = vmax.f32 %v695_v0, -128.0  ;;  %v611_v9 = vcvt.s32.f32 %v610_v63  ;;  %vm908_vm10 = vcmp.lt.f32.partialorder %v608_v59, 8388608.0 }
  0x33   : > { %v282_v7 = vmin.f32 %v266_v60, 127.0  ;;  %v604_v8 = vand.u32 2147483647, %v603_v61  ;;  %v632_v11 = vand.u32 2147483647, %v228_v54  ;;  %v634_v12 = vcvt.f32.s32 %v228_v54 }
  0x34   : > { %v640_v13 = vand.u32 2147483647, %v229_v4  ;;  %v283_v14 = vmin.f32 %v267_v6, 127.0  ;;  %v612_v16 = vand.u32 2147483647, %v611_v9  ;;  %v642_v17 = vcvt.f32.s32 %v229_v4 }
  0x35   : > { %v606_v15 = vor.u32 %v605_v62, %v604_v8  ;;  %vm913_vm11 = vcmp.lt.f32.partialorder %v632_v11, 8388608.0  ;;  %v635_v20 = vcvt.s32.f32 %v634_v12  ;;  %v637_v24 = vand.u32 2147483648, %v228_v54 }
  0x36   : > { %v645_v25 = vand.u32 2147483648, %v229_v4  ;;  %v292_v26 = vpack.c.bf16 %v283_v14, %v282_v7  ;;  %v614_v29 = vor.u32 %v613_v3, %v612_v16  ;;  %v643_v28 = vcvt.s32.f32 %v642_v17 }
  0x37   : > { %v607_v27 = vsel %vm903_vm9, %v606_v15, %v224_v46  ;;  %v636_v22 = vand.u32 2147483647, %v635_v20  ;;  %v216_v31 = vmul.f32 %v805_v2, %v199_v18  ;;  %v232_v32 = vadd.f32 %v809_v5, %v215_v55 }
  0x38   : > { %v256_v30 = vmax.f32 %v607_v27, -128.0  ;;  %572 = vmatmul.msk.bf16.vlgmr.msra.gmra.mxu3 %vm310_vm3, %v292_v26  ;;  %v615_v34 = vsel %vm908_vm10, %v614_v29, %v225_v51  ;;  %vm926_vm12 = vcmp.lt.f32.partialorder %v640_v13, 8388608.0  ;;  %v644_v36 = vand.u32 2147483647, %v643_v28 }
  0x39   : > { %v219_v37 = vmul.f32 %v805_v2, %v202_v21  ;;  %v257_v38 = vmax.f32 %v615_v34, -128.0  ;;  %v638_v40 = vor.u32 %v637_v24, %v636_v22  ;;  %v233_v41 = vadd.f32 %v809_v5, %v216_v31 }
  0x3a   : > { %v272_v39 = vmin.f32 %v256_v30, 127.0  ;;  %v646_v42 = vor.u32 %v645_v25, %v644_v36  ;;  %v664_v43 = vand.u32 2147483647, %v232_v32  ;;  %v666_v44 = vcvt.f32.s32 %v232_v32 }
  0x3b   : > { %v220_v45 = vmul.f32 %v805_v2, %v203_v33  ;;  %v273_v46 = vmin.f32 %v257_v38, 127.0  ;;  %v639_v47 = vsel %vm913_vm11, %v638_v40, %v228_v54  ;;  %v669_v23 = vand.u32 2147483648, %v232_v32 }
  0x3c   : > { %v674_v48 = vcvt.f32.s32 %v233_v41  ;;  %v647_v49 = vsel %vm926_vm12, %v646_v42, %v229_v4  ;;  %v260_v50 = vmax.f32 %v639_v47, -128.0  ;;  %v667_v51 = vcvt.s32.f32 %v666_v44 }
  0x3d   : > { %v672_v52 = vand.u32 2147483647, %v233_v41  ;;  %v287_v53 = vpack.c.bf16 %v273_v46, %v272_v39  ;;  %v261_v55 = vmax.f32 %v647_v49, -128.0  ;;  %v677_v59 = vand.u32 2147483648, %v233_v41 }
  0x3e   : > { %v675_v56 = vcvt.s32.f32 %v674_v48  ;;  %v276_v57 = vmin.f32 %v260_v50, 127.0  ;;  %v668_v58 = vand.u32 2147483647, %v667_v51  ;;  %v236_v2 = vadd.f32 %v809_v5, %v219_v37 }
  0x3f   : > { %567 = vmatmul.msk.bf16.gmra.mxu0 %vm310_vm3, %v287_v53  ;;  %v277_v60 = vmin.f32 %v261_v55, 127.0  ;;  %vm939_vm13 = vcmp.lt.f32.partialorder %v664_v43, 8388608.0  ;;  %v237_v62 = vadd.f32 %v809_v5, %v220_v45  ;;  %vm673_vm14 = vcmp.lt.f32.partialorder %v672_v52, 8388608.0 }
  0x40   : > { %v676_v61 = vand.u32 2147483647, %v675_v56  ;;  %v670_v63 = vor.u32 %v669_v23, %v668_v58  ;;  %v698_v0 = vcvt.f32.s32 %v236_v2  ;;  %v696_v4 = vand.u32 2147483647, %v236_v2 }
  0x41   : > { %v289_v1 = vpack.c.bf16 %v277_v60, %v276_v57  ;;  %v706_v6 = vcvt.f32.s32 %v237_v62  ;;  %v701_v9 = vand.u32 2147483648, %v236_v2  ;;  %v704_v10 = vand.u32 2147483647, %v237_v62 }
  0x42   : > { %v678_v3 = vor.u32 %v677_v59, %v676_v61  ;;  %v671_v7 = vsel %vm939_vm13, %v670_v63, %v232_v32  ;;  %v699_v8 = vcvt.s32.f32 %v698_v0  ;;  %v709_v14 = vand.u32 2147483648, %v237_v62 }
  0x43   : > { %569 = vmatmul.msk.bf16.gmra.mxu1 %vm310_vm3, %v289_v1  ;;  %v264_v12 = vmax.f32 %v671_v7, -128.0  ;;  %v707_v13 = vcvt.s32.f32 %v706_v6  ;;  %vm697_vm15 = vcmp.lt.f32.partialorder %v696_v4, 8388608.0  ;;  %vm705_vm0 = vcmp.lt.f32.partialorder %v704_v10, 8388608.0 }
  0x44   : > { %v679_v11 = vsel %vm673_vm14, %v678_v3, %v233_v41  ;;  %v700_v15 = vand.u32 2147483647, %v699_v8  ;;  %vm384_vm1 = vcmask 523264  }
  0x45   : > { %v265_v5 = vmax.f32 %v679_v11, -128.0  ;;  %v280_v16 = vmin.f32 %v264_v12, 127.0  ;;  %v708_v17 = vand.u32 2147483647, %v707_v13 }
  0x46   : > { %v702_v19 = vor.u32 %v701_v9, %v700_v15 }
  0x47   : > { %v281_v18 = vmin.f32 %v265_v5, 127.0  ;;  %v710_v20 = vor.u32 %v709_v14, %v708_v17 }
  0x48   : > { %v703_v25 = vsel %vm697_vm15, %v702_v19, %v236_v2 }
  0x49   : > { %v291_v24 = vpack.c.bf16 %v281_v18, %v280_v16  ;;  %v711_v21 = vsel %vm705_vm0, %v710_v20, %v237_v62  ;;  %v268_v26 = vmax.f32 %v703_v25, -128.0 }
  0x4a   : > { %v269_v27 = vmax.f32 %v711_v21, -128.0 }
  0x4b   : > { %571 = vmatmul.msk.bf16.gmra.mxu2 %vm310_vm3, %v291_v24  ;;  %v284_v29 = vmin.f32 %v268_v26, 127.0 }
  0x4c   : > { %v285_v28 = vmin.f32 %v269_v27, 127.0 }
  0x4e   : > { %v293_v30 = vpack.c.bf16 %v285_v28, %v284_v29 }
  0x50   : > { %573 = vmatmul.msk.bf16.gmra.mxu3 %vm310_vm3, %v293_v30 }
  0xa6   : > { %v344_v22 = vpop.f32.mrf.mxu0 }
  0xa7   : > { %v422_v37 = vmul.f32 %v344_v22, %v344_v22  ;;  %v385_v42 = vsel %vm384_vm1, %v344_v22, 0.0 }
  0xa9   : > { %v354_v31 = vpop.f32.mrf.mxu1  ;;  %v438_v46 = vsel %vm384_vm1, %v422_v37, 0.0 }
  0xaa   : > { %v426_v51 = vmul.f32 %v354_v31, %v354_v31  ;;  %v392_v57 = vsel %vm384_vm1, %v354_v31, 0.0 }
  0xac   : > { %v445_v61 = vsel %vm384_vm1, %v426_v51, 0.0 }
  0xae   : > { %v346_v32 = vpop.f32.mrf.mxu0 }
  0xaf   : > { %v423_v36 = vmul.f32 %v346_v32, %v346_v32  ;;  %v386_v38 = vsel %vm384_vm1, %v346_v32, 0.0 }
  0xb0   : > { %v387_v45 = vadd.f32 %v386_v38, %v385_v42 }
  0xb1   : > { %v356_v33 = vpop.f32.mrf.mxu1  ;;  %v439_v43 = vsel %vm384_vm1, %v423_v36, 0.0 }
  0xb2   : > { %v440_v48 = vadd.f32 %v439_v43, %v438_v46  ;;  %v427_v58 = vmul.f32 %v356_v33, %v356_v33  ;;  %v394_v62 = vsel %vm384_vm1, %v356_v33, 0.0 }
  0xb4   : > { %v364_v34 = vpop.f32.mrf.mxu2  ;;  %v447_v4 = vsel %vm384_vm1, %v427_v58, 0.0 }
  0xb5   : > { %v430_v10 = vmul.f32 %v364_v34, %v364_v34  ;;  %v400_v15 = vsel %vm384_vm1, %v364_v34, 0.0 }
  0xb7   : > { %v453_v20 = vsel %vm384_vm1, %v430_v10, 0.0 }
  0xbb   : > { %v374_v40 = vpop.f32.mrf.mxu3 }
  0xbc   : > { %v349_v35 = vpop.f32.mrf.mxu0  ;;  %v366_v23 = vpop.f32.mrf.mxu2  ;;  %v434_v33 = vmul.f32 %v374_v40, %v374_v40  ;;  %v408_v38 = vsel %vm384_vm1, %v374_v40, 0.0 }
  0xbd   : > { %v424_v39 = vmul.f32 %v349_v35, %v349_v35  ;;  %v388_v44 = vsel %vm384_vm1, %v349_v35, 0.0  ;;  %v431_v16 = vmul.f32 %v366_v23, %v366_v23  ;;  %v402_v24 = vsel %vm384_vm1, %v366_v23, 0.0 }
  0xbe   : > { %v389_v49 = vadd.f32 %v388_v44, %v387_v45  ;;  %v461_v44 = vsel %vm384_vm1, %v434_v33, 0.0 }
  0xbf   : > { %v441_v47 = vsel %vm384_vm1, %v424_v39, 0.0  ;;  %v455_v27 = vsel %vm384_vm1, %v431_v16, 0.0 }
  0xc0   : > { %v359_v41 = vpop.f32.mrf.mxu1  ;;  %v442_v55 = vadd.f32 %v441_v47, %v440_v48 }
  0xc1   : > { %v428_v63 = vmul.f32 %v359_v41, %v359_v41  ;;  %v396_v6 = vsel %vm384_vm1, %v359_v41, 0.0 }
  0xc3   : > { %v376_v0 = vpop.f32.mrf.mxu3  ;;  %v449_v11 = vsel %vm384_vm1, %v428_v63, 0.0 }
  0xc4   : > { %v351_v50 = vpop.f32.mrf.mxu0  ;;  %v435_v39 = vmul.f32 %v376_v0, %v376_v0  ;;  %v410_v45 = vsel %vm384_vm1, %v376_v0, 0.0 }
  0xc5   : > { %v390_v52 = vsel %vm384_vm1, %v351_v50, 0.0  ;;  %v425_v53 = vmul.f32 %v351_v50, %v351_v50 }
  0xc6   : > { %v391_v56 = vadd.f32 %v390_v52, %v389_v49  ;;  %v463_v49 = vsel %vm384_vm1, %v435_v39, 0.0 }
  0xc7   : > { %v443_v59 = vsel %vm384_vm1, %v425_v53, 0.0 }
  0xc8   : > { %v393_v2 = vadd.f32 %v392_v57, %v391_v56  ;;  %v444_v60 = vadd.f32 %v443_v59, %v442_v55  ;;  %v361_v54 = vpop.f32.mrf.mxu1 }
  0xc9   : > { %v429_v7 = vmul.f32 %v361_v54, %v361_v54  ;;  %v398_v12 = vsel %vm384_vm1, %v361_v54, 0.0 }
  0xca   : > { %v446_v1 = vadd.f32 %v445_v61, %v444_v60  ;;  %v395_v3 = vadd.f32 %v394_v62, %v393_v2  ;;  %v475_v61 = vlaneseq }
  0xcb   : > { %v451_v17 = vsel %vm384_vm1, %v429_v7, 0.0 }
  0xcc   : > { %v397_v8 = vadd.f32 %v396_v6, %v395_v3  ;;  %v448_v9 = vadd.f32 %v447_v4, %v446_v1  ;;  %v476_v3 = vshrl.u32 %v475_v61, 7 }
  0xce   : > { %v369_v13 = vpop.f32.mrf.mxu2  ;;  %v399_v14 = vadd.f32 %v398_v12, %v397_v8  ;;  %v450_v5 = vadd.f32 %v449_v11, %v448_v9  ;;  %vm478_vm2 = vcmp.eq.s32.totalorder %v476_v3, 1  ;;  %vm477_vm3 = vcmp.eq.s32.totalorder %v476_v3, 0 }
  0xcf   : > { %v432_v25 = vmul.f32 %v369_v13, %v369_v13  ;;  %v404_v29 = vsel %vm384_vm1, %v369_v13, 0.0 }
  0xd0   : > { %v401_v18 = vadd.f32 %v400_v15, %v399_v14  ;;  %v452_v19 = vadd.f32 %v451_v17, %v450_v5 }
  0xd1   : > { %v457_v31 = vsel %vm384_vm1, %v432_v25, 0.0 }
  0xd2   : > { %v454_v21 = vadd.f32 %v453_v20, %v452_v19  ;;  %v403_v26 = vadd.f32 %v402_v24, %v401_v18 }
  0xd3   : > { %v379_v28 = vpop.f32.mrf.mxu3 }
  0xd4   : > { %v405_v30 = vadd.f32 %v404_v29, %v403_v26  ;;  %v456_v22 = vadd.f32 %v455_v27, %v454_v21  ;;  %v436_v46 = vmul.f32 %v379_v28, %v379_v28  ;;  %v412_v50 = vsel %vm384_vm1, %v379_v28, 0.0 }
  0xd6   : > { %v371_v32 = vpop.f32.mrf.mxu2  ;;  %v458_v34 = vadd.f32 %v457_v31, %v456_v22  ;;  %v465_v53 = vsel %vm384_vm1, %v436_v46, 0.0 }
  0xd7   : > { %v406_v35 = vsel %vm384_vm1, %v371_v32, 0.0  ;;  %v433_v36 = vmul.f32 %v371_v32, %v371_v32 }
  0xd8   : > { %v407_v37 = vadd.f32 %v406_v35, %v405_v30 }
  0xd9   : > { %v459_v41 = vsel %vm384_vm1, %v433_v36, 0.0 }
  0xda   : > { %v409_v42 = vadd.f32 %v408_v38, %v407_v37  ;;  %v460_v43 = vadd.f32 %v459_v41, %v458_v34 }
  0xdb   : > { %v381_v48 = vpop.f32.mrf.mxu3 }
  0xdc   : > { %v462_v47 = vadd.f32 %v461_v44, %v460_v43  ;;  %v411_v23 = vadd.f32 %v410_v45, %v409_v42  ;;  %v437_v51 = vmul.f32 %v381_v48, %v381_v48  ;;  %v414_v55 = vsel %vm384_vm1, %v381_v48, 0.0 }
  0xde   : > { %v413_v40 = vadd.f32 %v412_v50, %v411_v23  ;;  %v464_v52 = vadd.f32 %v463_v49, %v462_v47  ;;  %v467_v58 = vsel %vm384_vm1, %v437_v51, 0.0 }
  0xe0   : > { %v466_v56 = vadd.f32 %v465_v53, %v464_v52  ;;  %v415_v57 = vadd.f32 %v414_v55, %v413_v40 }
  0xe2   : > { %v416_v59 = vrot.slane %v415_v57, 4  ;;  %v468_v2 = vadd.f32 %v467_v58, %v466_v56 }
  0xe4   : > { %v417_v60 = vadd.f32 %v416_v59, %v415_v57  ;;  %v469_v54 = vrot.slane %v468_v2, 4 }
  0xe6   : > { %v418_v62 = vrot.slane %v417_v60, 2  ;;  %v470_v63 = vadd.f32 %v469_v54, %v468_v2 }
  0xe8   : > { %v419_v0 = vadd.f32 %v418_v62, %v417_v60  ;;  %v471_v1 = vrot.slane %v470_v63, 2 }
  0xea   : > { %v472_v4 = vadd.f32 %v471_v1, %v470_v63  ;;  %v420_v6 = vrot.slane %v419_v0, 1 }
  0xec   : > { %v473_v7 = vrot.slane %v472_v4, 1  ;;  %v421_v9 = vadd.f32 %v420_v6, %v419_v0 }
  0xee   : > { %v474_v8 = vadd.f32 %v473_v7, %v472_v4 }
  0xf0   : > { %v479_v10 = vsel %vm478_vm2, %v474_v8, 0.0 }
  0xf1   : > { %v480_v11 = vsel %vm477_vm3, %v421_v9, %v479_v10 }
  0xf2   : > { %481 = vst.msk [vmem:[%s184_s5] sm:$0xff] %vm384_vm1, %v480_v11 }
  0xf3 PF: > { %s14_s12 = sadd.s32 1, %s756_s12  }
  0xf4   : > { %p11_p8 = scmp.ge.s32.totalorder %s14_s12, 4  }
  0xf6   :  { %13 = sbr.rel (!%p11_p8) target bundleno = 1 (0x1), region = 67 }
  0xfb   :  { %501 = vsyncpa [#allocation3], 1 }
  0xfc   :  { %503 = vsyncpa [#allocation3 + $0x1], 1 }

// kernel: pointnet_sa_module_msg_forward.13
= control target key start
LH: loop header
LB: loop body
LE: loop exit
PB: predicated region body
PF: predicated region fallthrough
CT: control target
= control target key end

     0   :  { %11 = vsyncpa [#allocation3], 0  ;;  %s940_s18 = smov 0   ;;  %s1271_s0 = inlined_call_operand.vmem [shape: f32[2], index: 0, kind: input, shape index: {}]   ;;  %s1272_s1 = inlined_call_operand.vmem [shape: f32[256,16], index: 1, kind: input, shape index: {}]   ;;  %s1273_s2 = inlined_call_operand.vmem [shape: bf16[16,32], index: 2, kind: input, shape index: {}]   ;;  %s1274_s3 = inlined_call_operand.vmem [shape: f32[8,32], index: 3, kind: input, shape index: {}]   ;;  %s1275_s4 = inlined_call_operand.vmem [shape: f32[256,32], index: 4, kind: output, shape index: {0}]   ;;  %s1276_s5 = inlined_call_operand.vmem [shape: f32[16,32], index: 5, kind: output, shape index: {1}]  }
   0x1 LB: > { %s946_s19 = sadd.s32 4294967295, %s907_s18   ;;  %p702_p0 = scmp.ge.s32.totalorder %s907_s18, 1  ;;  %s907_s18 = sphi %s940_s18, %s17_s18  }
   0x2   : > { %p163_p1 = scmp.lt.s32.totalorder %s907_s18, 3  ;;  %s175_s22 = sshll.u32 %s1271_s0, 4  ;;  %s176_s22 = int_to_ptr.vmem [resolvable:$true] %s175_s22 }
   0x3   : > { %p871_p3 = scmp.eq.s32.totalorder %s946_s19, 0  ;;  %s909_s23 = smov [#allocation2]  }
   0x4   : > { %p164_p2 = pnand %p702_p0, %p163_p1 }
   0x6   : > { %p867_p4 = pneg %p164_p2  ;;  %203 = sbr.rel (%p164_p2) target bundleno = 423 (0x1a7), region = 36 }
   0x8   : > { %p868_p5 = pnand %p871_p3, %p867_p4 }
   0xa   : > { %870 = dma.vmem_to_smem (!%p868_p5), %s176_s22, 16, %s909_s23, [#allocation3]  }
   0xb   : > { %902 = dma.done.wait (%p871_p3), [#allocation3], 16  }
   0xc   : > { %904 = vsyncadd (%p871_p3), [#allocation3], 4294967280 }
   0xd   : > { %210 = sfence }
   0xe   : > { %v727_v0 = vld [vmem:[%s1273_s2] sm:$0xff]  ;;  %s707_s26 = sshll.u32 %s946_s19, 4  ;;  %s254_s27 = sld [smem:[#allocation2]]  ;;  %vm370_vm3 = vcmask 130048  }
   0xf   : > { %p238_p6 = scmp.lt.s32.totalorder %s707_s26, 31  ;;  %s712_s28 = sld [smem:[#allocation2 + $0x1]]  ;;  %402 = vmatpush.bf16.msra.mxu0 %v727_v0  ;;  %728 = vmatpush.bf16.msra.mxu1 %v727_v0 }
  0x10   : > { %729 = vmatpush.bf16.msra.mxu2 %v727_v0  ;;  %730 = vmatpush.bf16.msra.mxu3 %v727_v0  ;;  %p249_p7 = scmp.lt.s32.totalorder %s946_s19, 1 }
  0x11   : > { %s1304_s26 = smov (!%p238_p6, %s707_s26), 31 }
  0x12   : > { %s708_s29 = sshll.u32 %s1304_s26, 3  ;;  %s1306_s19 = smov (!%p249_p7, %s946_s19), 1 }
  0x13   : > { %s966_s7 = scalar_lea.vmem %s1272_s1, %s708_s29  ;;  %s1126_s12 = scalar_lea.vmem %s1275_s4, %s708_s29 }
  0x14   : > { %v968_v1 = vstv %s254_s27  ;;  %v256_v2 = vld [vmem:[%s966_s7] sm:$0xff]  ;;  %v257_v3 = vld [vmem:[%s966_s7 + $0x8] sm:$0xff]  ;;  %v263_v34 = vld [vmem:[%s966_s7 + $0x38] sm:$0xff]  ;;  %s711_s13 = sshll.u32 %s1306_s19, 3 }
  0x15   : > { %v972_v4 = vstv %s712_s28  ;;  %v260_v5 = vld [vmem:[%s966_s7 + $0x20] sm:$0xff]  ;;  %v273_v6 = vmul.f32 %v968_v1, %v256_v2  ;;  %v274_v7 = vmul.f32 %v968_v1, %v257_v3  ;;  %v261_v8 = vld [vmem:[%s966_s7 + $0x28] sm:$0xff]  ;;  %s252_s20 = scalar_lea.vmem %s1276_s5, %s711_s13 }
  0x16   : > { %v277_v9 = vmul.f32 %v968_v1, %v260_v5  ;;  %v264_v10 = vld [vmem:[%s966_s7 + $0x40] sm:$0xff]  ;;  %v265_v11 = vld [vmem:[%s966_s7 + $0x48] sm:$0xff]  ;;  %v278_v12 = vmul.f32 %v968_v1, %v261_v8 }
  0x17   : > { %v281_v13 = vmul.f32 %v968_v1, %v264_v10  ;;  %v282_v14 = vmul.f32 %v968_v1, %v265_v11  ;;  %v268_v15 = vld [vmem:[%s966_s7 + $0x60] sm:$0xff]  ;;  %v269_v16 = vld [vmem:[%s966_s7 + $0x68] sm:$0xff]  ;;  %v290_v17 = vadd.f32 %v972_v4, %v273_v6  ;;  %v291_v18 = vadd.f32 %v972_v4, %v274_v7 }
  0x18   : > { %v294_v19 = vadd.f32 %v972_v4, %v277_v9  ;;  %v295_v20 = vadd.f32 %v972_v4, %v278_v12  ;;  %v285_v23 = vmul.f32 %v968_v1, %v268_v15  ;;  %v286_v27 = vmul.f32 %v968_v1, %v269_v16 }
  0x19   : > { %v298_v21 = vadd.f32 %v972_v4, %v281_v13  ;;  %v992_v22 = vadd.f32 %v972_v4, %v282_v14  ;;  %v731_v24 = vand.u32 2147483647, %v290_v17  ;;  %v733_v25 = vcvt.f32.s32 %v290_v17 }
  0x1a   : > { %v739_v26 = vand.u32 2147483647, %v291_v18  ;;  %v736_v28 = vand.u32 2147483648, %v290_v17  ;;  %v741_v29 = vcvt.f32.s32 %v291_v18  ;;  %v763_v30 = vand.u32 2147483647, %v294_v19 }
  0x1b   : > { %v765_v31 = vcvt.f32.s32 %v294_v19  ;;  %vm996_vm0 = vcmp.lt.f32.partialorder %v731_v24, 8388608.0  ;;  %v734_v33 = vcvt.s32.f32 %v733_v25  ;;  %v744_v35 = vand.u32 2147483648, %v291_v18 }
  0x1c   : > { %vm1000_vm1 = vcmp.lt.f32.partialorder %v739_v26, 8388608.0  ;;  %v742_v36 = vcvt.s32.f32 %v741_v29  ;;  %v768_v38 = vand.u32 2147483648, %v294_v19  ;;  %v771_v39 = vand.u32 2147483647, %v295_v20  ;;  %v259_v29 = vld [vmem:[%s966_s7 + $0x18] sm:$0xff] }
  0x1d   : > { %v766_v37 = vcvt.s32.f32 %v765_v31  ;;  %v735_v40 = vand.u32 2147483647, %v734_v33  ;;  %vm1004_vm2 = vcmp.lt.f32.partialorder %v763_v30, 8388608.0  ;;  %v773_v42 = vcvt.f32.s32 %v295_v20  ;;  %v262_v33 = vld [vmem:[%s966_s7 + $0x30] sm:$0xff] }
  0x1e   : > { %v795_v43 = vand.u32 2147483647, %v298_v21  ;;  %v743_v44 = vand.u32 2147483647, %v742_v36  ;;  %v776_v46 = vand.u32 2147483648, %v295_v20  ;;  %v797_v47 = vcvt.f32.s32 %v298_v21 }
  0x1f   : > { %v767_v45 = vand.u32 2147483647, %v766_v37  ;;  %v737_v48 = vor.u32 %v736_v28, %v735_v40  ;;  %vm1008_vm4 = vcmp.lt.f32.partialorder %v771_v39, 8388608.0  ;;  %v774_v50 = vcvt.s32.f32 %v773_v42 }
  0x20   : > { %vm1012_vm5 = vcmp.lt.f32.partialorder %v795_v43, 8388608.0  ;;  %v745_v52 = vor.u32 %v744_v35, %v743_v44  ;;  %v798_v54 = vcvt.s32.f32 %v797_v47  ;;  %v800_v55 = vand.u32 2147483648, %v298_v21  ;;  %v266_v43 = vld [vmem:[%s966_s7 + $0x50] sm:$0xff] }
  0x21   : > { %v769_v53 = vor.u32 %v768_v38, %v767_v45  ;;  %v738_v56 = vsel %vm996_vm0, %v737_v48, %v290_v17  ;;  %v775_v57 = vand.u32 2147483647, %v774_v50  ;;  %v803_v58 = vand.u32 2147483647, %v992_v22 }
  0x22   : > { %v805_v59 = vcvt.f32.s32 %v992_v22  ;;  %v746_v60 = vsel %vm1000_vm1, %v745_v52, %v291_v18  ;;  %v322_v61 = vmax.f32 %v738_v56, -128.0  ;;  %v799_v63 = vand.u32 2147483647, %v798_v54 }
  0x23   : > { %v770_v62 = vsel %vm1004_vm2, %v769_v53, %v294_v19  ;;  %v323_v0 = vmax.f32 %v746_v60, -128.0  ;;  %v777_v2 = vor.u32 %v776_v46, %v775_v57  ;;  %v808_v5 = vand.u32 2147483648, %v992_v22 }
  0x24   : > { %v326_v3 = vmax.f32 %v770_v62, -128.0  ;;  %v338_v6 = vmin.f32 %v322_v61, 127.0  ;;  %v801_v7 = vor.u32 %v800_v55, %v799_v63  ;;  %v806_v8 = vcvt.s32.f32 %v805_v59 }
  0x25   : > { %v302_v9 = vadd.f32 %v972_v4, %v285_v23  ;;  %v339_v10 = vmin.f32 %v323_v0, 127.0  ;;  %v778_v11 = vsel %vm1008_vm4, %v777_v2, %v295_v20  ;;  %v303_v13 = vadd.f32 %v972_v4, %v286_v27  ;;  %v258_v20 = vld [vmem:[%s966_s7 + $0x10] sm:$0xff] }
  0x26   : > { %v342_v12 = vmin.f32 %v326_v3, 127.0  ;;  %v327_v14 = vmax.f32 %v778_v11, -128.0  ;;  %v802_v15 = vsel %vm1012_vm5, %v801_v7, %v298_v21  ;;  %v807_v16 = vand.u32 2147483647, %v806_v8 }
  0x27   : > { %v827_v17 = vand.u32 2147483647, %v302_v9  ;;  %v354_v18 = vpack.c.bf16 %v339_v10, %v338_v6  ;;  %vm1031_vm6 = vcmp.lt.f32.partialorder %v803_v58, 8388608.0  ;;  %v330_v23 = vmax.f32 %v802_v15, -128.0 }
  0x28   : > { %v829_v24 = vcvt.f32.s32 %v302_v9  ;;  %v343_v25 = vmin.f32 %v327_v14, 127.0  ;;  %v809_v26 = vor.u32 %v808_v5, %v807_v16  ;;  %v832_v28 = vand.u32 2147483648, %v302_v9 }
  0x29   : > { %v835_v27 = vand.u32 2147483647, %v303_v13  ;;  %717 = vmatmul.msk.bf16.vlgmr.msra.gmra.mxu0 %vm370_vm3, %v354_v18  ;;  %v346_v21 = vmin.f32 %v330_v23, 127.0  ;;  %vm1038_vm7 = vcmp.lt.f32.partialorder %v827_v17, 8388608.0  ;;  %v837_v32 = vcvt.f32.s32 %v303_v13  ;;  %v267_v17 = vld [vmem:[%s966_s7 + $0x58] sm:$0xff] }
  0x2a   : > { %v830_v31 = vcvt.s32.f32 %v829_v24  ;;  %v356_v35 = vpack.c.bf16 %v343_v25, %v342_v12  ;;  %v810_v36 = vsel %vm1031_vm6, %v809_v26, %v992_v22  ;;  %v840_v37 = vand.u32 2147483648, %v303_v13 }
  0x2b   : > { %v275_v38 = vmul.f32 %v968_v1, %v258_v20  ;;  %v331_v39 = vmax.f32 %v810_v36, -128.0  ;;  %v838_v41 = vcvt.s32.f32 %v837_v32  ;;  %v276_v42 = vmul.f32 %v968_v1, %v259_v29  ;;  %v270_v20 = vld [vmem:[%s966_s7 + $0x70] sm:$0xff]  ;;  %v271_v32 = vld [vmem:[%s966_s7 + $0x78] sm:$0xff] }
  0x2c   : > { %v831_v40 = vand.u32 2147483647, %v830_v31  ;;  %719 = vmatmul.msk.bf16.vlgmr.msra.gmra.mxu1 %vm370_vm3, %v356_v35  ;;  %vm1051_vm8 = vcmp.lt.f32.partialorder %v835_v27, 8388608.0  ;;  %v279_v46 = vmul.f32 %v968_v1, %v262_v33  ;;  %v280_v22 = vmul.f32 %v968_v1, %v263_v34 }
  0x2d   : > { %v292_v45 = vadd.f32 %v972_v4, %v275_v38  ;;  %v347_v47 = vmin.f32 %v331_v39, 127.0  ;;  %v839_v49 = vand.u32 2147483647, %v838_v41  ;;  %v293_v50 = vadd.f32 %v972_v4, %v276_v42 }
  0x2e   : > { %v833_v48 = vor.u32 %v832_v28, %v831_v40  ;;  %v296_v53 = vadd.f32 %v972_v4, %v279_v46  ;;  %v283_v54 = vmul.f32 %v968_v1, %v266_v43  ;;  %v297_v3 = vadd.f32 %v972_v4, %v280_v22 }
  0x2f   : > { %v747_v51 = vand.u32 2147483647, %v292_v45  ;;  %v749_v52 = vcvt.f32.s32 %v292_v45  ;;  %v358_v55 = vpack.c.bf16 %v347_v47, %v346_v21  ;;  %v841_v57 = vor.u32 %v840_v37, %v839_v49 }
  0x30   : > { %v834_v56 = vsel %vm1038_vm7, %v833_v48, %v302_v9  ;;  %v755_v58 = vand.u32 2147483647, %v293_v50  ;;  %v752_v61 = vand.u32 2147483648, %v292_v45  ;;  %v757_v62 = vcvt.f32.s32 %v293_v50 }
  0x31   : > { %v334_v59 = vmax.f32 %v834_v56, -128.0  ;;  %v750_v60 = vcvt.s32.f32 %v749_v52  ;;  %721 = vmatmul.msk.bf16.vlgmr.msra.gmra.mxu2 %vm370_vm3, %v358_v55  ;;  %v842_v63 = vsel %vm1051_vm8, %v841_v57, %v303_v13  ;;  %vm1066_vm9 = vcmp.lt.f32.partialorder %v747_v51, 8388608.0 }
  0x32   : > { %v760_v2 = vand.u32 2147483648, %v293_v50  ;;  %v335_v5 = vmax.f32 %v842_v63, -128.0  ;;  %v758_v8 = vcvt.s32.f32 %v757_v62  ;;  %vm1071_vm10 = vcmp.lt.f32.partialorder %v755_v58, 8388608.0 }
  0x33   : > { %v350_v6 = vmin.f32 %v334_v59, 127.0  ;;  %v751_v7 = vand.u32 2147483647, %v750_v60  ;;  %v779_v10 = vand.u32 2147483647, %v296_v53  ;;  %v781_v11 = vcvt.f32.s32 %v296_v53 }
  0x34   : > { %v787_v12 = vand.u32 2147483647, %v297_v3  ;;  %v351_v13 = vmin.f32 %v335_v5, 127.0  ;;  %v759_v15 = vand.u32 2147483647, %v758_v8  ;;  %v789_v16 = vcvt.f32.s32 %v297_v3 }
  0x35   : > { %v753_v14 = vor.u32 %v752_v61, %v751_v7  ;;  %vm1076_vm11 = vcmp.lt.f32.partialorder %v779_v10, 8388608.0  ;;  %v782_v19 = vcvt.s32.f32 %v781_v11  ;;  %v784_v23 = vand.u32 2147483648, %v296_v53 }
  0x36   : > { %v792_v24 = vand.u32 2147483648, %v297_v3  ;;  %v360_v25 = vpack.c.bf16 %v351_v13, %v350_v6  ;;  %v761_v28 = vor.u32 %v760_v2, %v759_v15  ;;  %v790_v27 = vcvt.s32.f32 %v789_v16 }
  0x37   : > { %v754_v26 = vsel %vm1066_vm9, %v753_v14, %v292_v45  ;;  %v783_v21 = vand.u32 2147483647, %v782_v19  ;;  %v284_v30 = vmul.f32 %v968_v1, %v267_v17  ;;  %v300_v31 = vadd.f32 %v972_v4, %v283_v54 }
  0x38   : > { %v324_v29 = vmax.f32 %v754_v26, -128.0  ;;  %723 = vmatmul.msk.bf16.vlgmr.msra.gmra.mxu3 %vm370_vm3, %v360_v25  ;;  %v762_v33 = vsel %vm1071_vm10, %v761_v28, %v293_v50  ;;  %vm1089_vm12 = vcmp.lt.f32.partialorder %v787_v12, 8388608.0  ;;  %v791_v35 = vand.u32 2147483647, %v790_v27 }
  0x39   : > { %v287_v36 = vmul.f32 %v968_v1, %v270_v20  ;;  %v325_v37 = vmax.f32 %v762_v33, -128.0  ;;  %v785_v39 = vor.u32 %v784_v23, %v783_v21  ;;  %v301_v40 = vadd.f32 %v972_v4, %v284_v30  ;;  %v444_v21 = vld [vmem:[%s1274_s3] sm:$0xff] }
  0x3a   : > { %v340_v38 = vmin.f32 %v324_v29, 127.0  ;;  %v793_v41 = vor.u32 %v792_v24, %v791_v35  ;;  %v811_v42 = vand.u32 2147483647, %v300_v31  ;;  %v813_v43 = vcvt.f32.s32 %v300_v31 }
  0x3b   : > { %v288_v44 = vmul.f32 %v968_v1, %v271_v32  ;;  %v341_v45 = vmin.f32 %v325_v37, 127.0  ;;  %v786_v46 = vsel %vm1076_vm11, %v785_v39, %v296_v53  ;;  %v816_v22 = vand.u32 2147483648, %v300_v31 }
  0x3c   : > { %v821_v47 = vcvt.f32.s32 %v301_v40  ;;  %v794_v48 = vsel %vm1089_vm12, %v793_v41, %v297_v3  ;;  %v328_v49 = vmax.f32 %v786_v46, -128.0  ;;  %v814_v50 = vcvt.s32.f32 %v813_v43 }
  0x3d   : > { %v819_v51 = vand.u32 2147483647, %v301_v40  ;;  %v355_v52 = vpack.c.bf16 %v341_v45, %v340_v38  ;;  %v329_v54 = vmax.f32 %v794_v48, -128.0  ;;  %v824_v58 = vand.u32 2147483648, %v301_v40 }
  0x3e   : > { %v822_v55 = vcvt.s32.f32 %v821_v47  ;;  %v344_v56 = vmin.f32 %v328_v49, 127.0  ;;  %v815_v57 = vand.u32 2147483647, %v814_v50  ;;  %v304_v1 = vadd.f32 %v972_v4, %v287_v36 }
  0x3f   : > { %718 = vmatmul.msk.bf16.gmra.mxu0 %vm370_vm3, %v355_v52  ;;  %v345_v59 = vmin.f32 %v329_v54, 127.0  ;;  %vm1102_vm13 = vcmp.lt.f32.partialorder %v811_v42, 8388608.0  ;;  %v305_v61 = vadd.f32 %v972_v4, %v288_v44  ;;  %vm820_vm14 = vcmp.lt.f32.partialorder %v819_v51, 8388608.0 }
  0x40   : > { %v823_v60 = vand.u32 2147483647, %v822_v55  ;;  %v817_v62 = vor.u32 %v816_v22, %v815_v57  ;;  %v845_v63 = vcvt.f32.s32 %v304_v1  ;;  %v843_v3 = vand.u32 2147483647, %v304_v1 }
  0x41   : > { %v357_v0 = vpack.c.bf16 %v345_v59, %v344_v56  ;;  %v853_v5 = vcvt.f32.s32 %v305_v61  ;;  %v848_v8 = vand.u32 2147483648, %v304_v1  ;;  %v851_v9 = vand.u32 2147483647, %v305_v61 }
  0x42   : > { %v825_v2 = vor.u32 %v824_v58, %v823_v60  ;;  %v818_v6 = vsel %vm1102_vm13, %v817_v62, %v300_v31  ;;  %v846_v7 = vcvt.s32.f32 %v845_v63  ;;  %v856_v13 = vand.u32 2147483648, %v305_v61 }
  0x43   : > { %720 = vmatmul.msk.bf16.gmra.mxu1 %vm370_vm3, %v357_v0  ;;  %v332_v11 = vmax.f32 %v818_v6, -128.0  ;;  %v854_v12 = vcvt.s32.f32 %v853_v5  ;;  %vm844_vm15 = vcmp.lt.f32.partialorder %v843_v3, 8388608.0  ;;  %vm852_vm0 = vcmp.lt.f32.partialorder %v851_v9, 8388608.0 }
  0x44   : > { %v826_v10 = vsel %vm820_vm14, %v825_v2, %v301_v40  ;;  %v847_v14 = vand.u32 2147483647, %v846_v7  ;;  %v1115_v30 = vperm.slane %v444_v21, 0  ;;  %v1117_v31 = vperm.slane %v444_v21, 1 }
  0x45   : > { %v333_v4 = vmax.f32 %v826_v10, -128.0  ;;  %v348_v15 = vmin.f32 %v332_v11, 127.0  ;;  %v855_v16 = vand.u32 2147483647, %v854_v12  ;;  %vm495_vm1 = vcmask 261120  }
  0x46   : > { %v849_v18 = vor.u32 %v848_v8, %v847_v14 }
  0x47   : > { %v349_v17 = vmin.f32 %v333_v4, 127.0  ;;  %v857_v19 = vor.u32 %v856_v13, %v855_v16 }
  0x48   : > { %v850_v24 = vsel %vm844_vm15, %v849_v18, %v304_v1 }
  0x49   : > { %v359_v23 = vpack.c.bf16 %v349_v17, %v348_v15  ;;  %v858_v20 = vsel %vm852_vm0, %v857_v19, %v305_v61  ;;  %v336_v25 = vmax.f32 %v850_v24, -128.0 }
  0x4a   : > { %v337_v26 = vmax.f32 %v858_v20, -128.0 }
  0x4b   : > { %722 = vmatmul.msk.bf16.gmra.mxu2 %vm370_vm3, %v359_v23  ;;  %v352_v28 = vmin.f32 %v336_v25, 127.0 }
  0x4c   : > { %v353_v27 = vmin.f32 %v337_v26, 127.0 }
  0x4e   : > { %v361_v29 = vpack.c.bf16 %v353_v27, %v352_v28 }
  0x50   : > { %724 = vmatmul.msk.bf16.gmra.mxu3 %vm370_vm3, %v361_v29 }
  0xa6   : > { %v404_v32 = vpop.f32.mrf.mxu0 }
  0xa7   : > { %v446_v33 = vmul.f32 %v1115_v30, %v404_v32 }
  0xa9   : > { %v463_v34 = vadd.f32 %v1117_v31, %v446_v33  ;;  %v414_v35 = vpop.f32.mrf.mxu1 }
  0xaa   : > { %v450_v36 = vmul.f32 %v1115_v30, %v414_v35 }
  0xab   : > { %v1129_v37 = vmax.f32 %v463_v34, 0.0 }
  0xac   : > { %v467_v38 = vadd.f32 %v1117_v31, %v450_v36 }
  0xad   : > { %496 = vst.msk [vmem:[%s1126_s12] sm:$0xff] %vm495_vm1, %v1129_v37  ;;  %v515_v26 = vsel %vm495_vm1, %v1129_v37, inf  ;;  %v556_v35 = vsel %vm495_vm1, %v1129_v37, -inf }
  0xae   : > { %v1135_v39 = vmax.f32 %v467_v38, 0.0  ;;  %v406_v40 = vpop.f32.mrf.mxu0 }
  0xaf   : > { %v447_v41 = vmul.f32 %v1115_v30, %v406_v40 }
  0xb0   : > { %500 = vst.msk [vmem:[%s1126_s12 + $0x20] sm:$0xff] %vm495_vm1, %v1135_v39  ;;  %v519_v28 = vsel %vm495_vm1, %v1135_v39, inf  ;;  %v560_v36 = vsel %vm495_vm1, %v1135_v39, -inf }
  0xb1   : > { %v464_v42 = vadd.f32 %v1117_v31, %v447_v41  ;;  %v416_v43 = vpop.f32.mrf.mxu1 }
  0xb2   : > { %v451_v44 = vmul.f32 %v1115_v30, %v416_v43 }
  0xb3   : > { %v1143_v45 = vmax.f32 %v464_v42, 0.0 }
  0xb4   : > { %v424_v46 = vpop.f32.mrf.mxu2  ;;  %v468_v22 = vadd.f32 %v1117_v31, %v451_v44 }
  0xb5   : > { %v454_v47 = vmul.f32 %v1115_v30, %v424_v46  ;;  %497 = vst.msk [vmem:[%s1126_s12 + $0x8] sm:$0xff] %vm495_vm1, %v1143_v45  ;;  %v516_v27 = vsel %vm495_vm1, %v1143_v45, inf  ;;  %v557_v43 = vsel %vm495_vm1, %v1143_v45, -inf  ;;  %v520_v46 = vmin.f32 %v515_v26, %v519_v28 }
  0xb6   : > { %v1150_v48 = vmax.f32 %v468_v22, 0.0 }
  0xb7   : > { %v471_v49 = vadd.f32 %v1117_v31, %v454_v47 }
  0xb8   : > { %501 = vst.msk [vmem:[%s1126_s12 + $0x28] sm:$0xff] %vm495_vm1, %v1150_v48  ;;  %v521_v29 = vsel %vm495_vm1, %v1150_v48, inf }
  0xb9   : > { %v1156_v50 = vmax.f32 %v471_v49, 0.0  ;;  %v522_v22 = vmin.f32 %v516_v27, %v521_v29 }
  0xbb   : > { %504 = vst.msk [vmem:[%s1126_s12 + $0x40] sm:$0xff] %vm495_vm1, %v1156_v50  ;;  %v434_v51 = vpop.f32.mrf.mxu3  ;;  %v527_v47 = vsel %vm495_vm1, %v1156_v50, inf }
  0xbc   : > { %v458_v52 = vmul.f32 %v1115_v30, %v434_v51  ;;  %v426_v54 = vpop.f32.mrf.mxu2  ;;  %v409_v55 = vpop.f32.mrf.mxu0 }
  0xbd   : > { %v455_v56 = vmul.f32 %v1115_v30, %v426_v54  ;;  %v448_v57 = vmul.f32 %v1115_v30, %v409_v55 }
  0xbe   : > { %v475_v58 = vadd.f32 %v1117_v31, %v458_v52  ;;  %v562_v52 = vsel %vm495_vm1, %v1150_v48, -inf }
  0xbf   : > { %v472_v1 = vadd.f32 %v1117_v31, %v455_v56  ;;  %v465_v59 = vadd.f32 %v1117_v31, %v448_v57 }
  0xc0   : > { %v1167_v53 = vmax.f32 %v475_v58, 0.0  ;;  %v419_v60 = vpop.f32.mrf.mxu1 }
  0xc1   : > { %v1169_v61 = vmax.f32 %v472_v1, 0.0  ;;  %v481_v62 = vmax.f32 %v465_v59, 0.0  ;;  %v452_v63 = vmul.f32 %v1115_v30, %v419_v60  ;;  %v528_v1 = vmin.f32 %v520_v46, %v527_v47 }
  0xc2   : > { %508 = vst.msk [vmem:[%s1126_s12 + $0x60] sm:$0xff] %vm495_vm1, %v1167_v53  ;;  %v576_v26 = vsel %vm495_vm1, %v1167_v53, -inf }
  0xc3   : > { %505 = vst.msk [vmem:[%s1126_s12 + $0x48] sm:$0xff] %vm495_vm1, %v1169_v61  ;;  %v436_v0 = vpop.f32.mrf.mxu3  ;;  %v469_v2 = vadd.f32 %v1117_v31, %v452_v63  ;;  %v517_v21 = vsel %vm495_vm1, %v481_v62, inf  ;;  %v529_v42 = vsel %vm495_vm1, %v1169_v61, inf  ;;  %v558_v45 = vsel %vm495_vm1, %v481_v62, -inf }
  0xc4   : > { %v459_v3 = vmul.f32 %v1115_v30, %v436_v0  ;;  %498 = vst.msk [vmem:[%s1126_s12 + $0x10] sm:$0xff] %vm495_vm1, %v481_v62  ;;  %v411_v5 = vpop.f32.mrf.mxu0  ;;  %v530_v55 = vmin.f32 %v522_v22, %v529_v42  ;;  %v535_v63 = vsel %vm495_vm1, %v1167_v53, inf }
  0xc5   : > { %v485_v6 = vmax.f32 %v469_v2, 0.0  ;;  %v449_v7 = vmul.f32 %v1115_v30, %v411_v5 }
  0xc6   : > { %v476_v8 = vadd.f32 %v1117_v31, %v459_v3  ;;  %v561_v3 = vmax.f32 %v556_v35, %v560_v36 }
  0xc7   : > { %502 = vst.msk [vmem:[%s1126_s12 + $0x30] sm:$0xff] %vm495_vm1, %v485_v6  ;;  %v466_v9 = vadd.f32 %v1117_v31, %v449_v7  ;;  %v523_v32 = vsel %vm495_vm1, %v485_v6, inf  ;;  %v564_v56 = vsel %vm495_vm1, %v485_v6, -inf }
  0xc8   : > { %v1187_v10 = vmax.f32 %v476_v8, 0.0  ;;  %v421_v11 = vpop.f32.mrf.mxu1  ;;  %v524_v37 = vmin.f32 %v517_v21, %v523_v32  ;;  %v565_v5 = vmax.f32 %v558_v45, %v564_v56  ;;  %v570_v8 = vsel %vm495_vm1, %v1169_v61, -inf }
  0xc9   : > { %v482_v12 = vmax.f32 %v466_v9, 0.0  ;;  %v453_v13 = vmul.f32 %v1115_v30, %v421_v11 }
  0xca   : > { %509 = vst.msk [vmem:[%s1126_s12 + $0x68] sm:$0xff] %vm495_vm1, %v1187_v10  ;;  %v537_v0 = vsel %vm495_vm1, %v1187_v10, inf  ;;  %v578_v28 = vsel %vm495_vm1, %v1187_v10, -inf }
  0xcb   : > { %499 = vst.msk [vmem:[%s1126_s12 + $0x18] sm:$0xff] %vm495_vm1, %v482_v12  ;;  %v470_v4 = vadd.f32 %v1117_v31, %v453_v13  ;;  %v518_v38 = vsel %vm495_vm1, %v482_v12, inf  ;;  %v559_v57 = vsel %vm495_vm1, %v482_v12, -inf  ;;  %v538_v7 = vmin.f32 %v530_v55, %v537_v0 }
  0xcc   : > { %v536_v12 = vmin.f32 %v528_v1, %v535_v63 }
  0xcd   : > { %v486_v15 = vmax.f32 %v470_v4, 0.0 }
  0xce   : > { %v429_v14 = vpop.f32.mrf.mxu2 }
  0xcf   : > { %v456_v16 = vmul.f32 %v1115_v30, %v429_v14  ;;  %503 = vst.msk [vmem:[%s1126_s12 + $0x38] sm:$0xff] %vm495_vm1, %v486_v15  ;;  %v525_v40 = vsel %vm495_vm1, %v486_v15, inf }
  0xd0   : > { %v526_v54 = vmin.f32 %v518_v38, %v525_v40 }
  0xd1   : > { %v473_v17 = vadd.f32 %v1117_v31, %v456_v16  ;;  %v543_v16 = vmin.f32 %v536_v12, %v538_v7 }
  0xd3   : > { %v489_v18 = vmax.f32 %v473_v17, 0.0  ;;  %v439_v19 = vpop.f32.mrf.mxu3 }
  0xd4   : > { %v460_v23 = vmul.f32 %v1115_v30, %v439_v19 }
  0xd5   : > { %506 = vst.msk [vmem:[%s1126_s12 + $0x50] sm:$0xff] %vm495_vm1, %v489_v18  ;;  %v531_v49 = vsel %vm495_vm1, %v489_v18, inf  ;;  %v572_v9 = vsel %vm495_vm1, %v489_v18, -inf }
  0xd6   : > { %v431_v24 = vpop.f32.mrf.mxu2  ;;  %v477_v20 = vadd.f32 %v1117_v31, %v460_v23  ;;  %v532_v59 = vmin.f32 %v524_v37, %v531_v49  ;;  %v573_v23 = vmax.f32 %v565_v5, %v572_v9 }
  0xd7   : > { %v457_v25 = vmul.f32 %v1115_v30, %v431_v24 }
  0xd8   : > { %v493_v33 = vmax.f32 %v477_v20, 0.0 }
  0xd9   : > { %v474_v34 = vadd.f32 %v1117_v31, %v457_v25 }
  0xda   : > { %510 = vst.msk [vmem:[%s1126_s12 + $0x70] sm:$0xff] %vm495_vm1, %v493_v33  ;;  %v539_v2 = vsel %vm495_vm1, %v493_v33, inf  ;;  %v580_v24 = vsel %vm495_vm1, %v493_v33, -inf }
  0xdb   : > { %v490_v41 = vmax.f32 %v474_v34, 0.0  ;;  %v441_v44 = vpop.f32.mrf.mxu3  ;;  %v540_v13 = vmin.f32 %v532_v59, %v539_v2 }
  0xdc   : > { %v461_v39 = vmul.f32 %v1115_v30, %v441_v44  ;;  %v566_v30 = vsel %vm495_vm1, %v486_v15, -inf  ;;  %v568_v15 = vsel %vm495_vm1, %v1156_v50, -inf  ;;  %v581_v50 = vmax.f32 %v573_v23, %v580_v24 }
  0xdd   : > { %507 = vst.msk [vmem:[%s1126_s12 + $0x58] sm:$0xff] %vm495_vm1, %v490_v41  ;;  %v533_v51 = vsel %vm495_vm1, %v490_v41, inf  ;;  %v574_v48 = vsel %vm495_vm1, %v490_v41, -inf  ;;  %v567_v6 = vmax.f32 %v559_v57, %v566_v30  ;;  %v569_v20 = vmax.f32 %v561_v3, %v568_v15 }
  0xde   : > { %v478_v58 = vadd.f32 %v1117_v31, %v461_v39  ;;  %v534_v60 = vmin.f32 %v526_v54, %v533_v51  ;;  %v563_v31 = vmax.f32 %v557_v43, %v562_v52  ;;  %v512_v39 = vlaneseq }
  0xdf   : > { %v575_v14 = vmax.f32 %v567_v6, %v574_v48  ;;  %v577_v29 = vmax.f32 %v569_v20, %v576_v26 }
  0xe0   : > { %v494_v62 = vmax.f32 %v478_v58, 0.0  ;;  %v571_v19 = vmax.f32 %v563_v31, %v570_v8  ;;  %v513_v47 = vshrl.u32 %v512_v39, 7 }
  0xe2   : > { %511 = vst.msk [vmem:[%s1126_s12 + $0x78] sm:$0xff] %vm495_vm1, %v494_v62  ;;  %v541_v11 = vsel %vm495_vm1, %v494_v62, inf  ;;  %v582_v61 = vsel %vm495_vm1, %v494_v62, -inf  ;;  %v579_v27 = vmax.f32 %v571_v19, %v578_v28  ;;  %vm555_vm2 = vcmp.eq.s32.totalorder %v513_v47, 1 }
  0xe3   : > { %v542_v4 = vmin.f32 %v534_v60, %v541_v11  ;;  %v583_v25 = vmax.f32 %v575_v14, %v582_v61  ;;  %vm514_vm3 = vcmp.eq.s32.totalorder %v513_v47, 0 }
  0xe4   : > { %v584_v32 = vmax.f32 %v577_v29, %v579_v27 }
  0xe5   : > { %v544_v17 = vmin.f32 %v540_v13, %v542_v4  ;;  %v585_v21 = vmax.f32 %v581_v50, %v583_v25 }
  0xe7   : > { %v545_v18 = vmin.f32 %v543_v16, %v544_v17  ;;  %v586_v34 = vmax.f32 %v584_v32, %v585_v21 }
  0xe9   : > { %546 = vmin.xlane.f32.xlu0 %v545_v18 }
  0xf1   : > { %587 = vmax.xlane.f32.xlu0 %v586_v34 }
 0x15c   : > { %v547_v33 = vpop.xlane.xlu0 %546 }
 0x15d   : > { %v548_v35 = vrot.slane %v547_v33, 4 }
 0x15f   : > { %v549_v36 = vmin.f32 %v547_v33, %v548_v35 }
 0x161   : > { %v550_v38 = vrot.slane %v549_v36, 2 }
 0x163   : > { %v551_v40 = vmin.f32 %v549_v36, %v550_v38 }
 0x164   : > { %v588_v41 = vpop.xlane.xlu0 %587 }
 0x165   : > { %v589_v53 = vrot.slane %v588_v41, 4  ;;  %v552_v42 = vrot.slane %v551_v40, 1 }
 0x167   : > { %v590_v43 = vmax.f32 %v588_v41, %v589_v53  ;;  %v553_v10 = vmin.f32 %v551_v40, %v552_v42 }
 0x169   : > { %v591_v44 = vrot.slane %v590_v43, 2  ;;  %859 = vpush %v553_v10 }
 0x16b   : > { %v592_v46 = vmax.f32 %v590_v43, %v591_v44 }
 0x16d   : > { %v593_v22 = vrot.slane %v592_v46, 1 }
 0x16f   : > { %v594_v37 = vmax.f32 %v592_v46, %v593_v22 }
 0x171   : > { %861 = vpush %v594_v37 }
 0x19a   : > { %s860_s14 = spop %859 }
 0x19b   : > { %v598_v51 = vstv %s860_s14 }
 0x1a2   : > { %s862_s15 = spop %861 }
 0x1a3   : > { %v596_v49 = vstv %s862_s15 }
 0x1a4   : > { %v597_v52 = vsel %vm555_vm2, %v596_v49, 0.0 }
 0x1a5   : > { %v599_v45 = vsel %vm514_vm3, %v598_v51, %v597_v52 }
 0x1a6   : > { %600 = vst.msk [vmem:[%s252_s20] sm:$0xff] %vm495_vm1, %v599_v45 }
 0x1a7 PF: > { %s17_s18 = sadd.s32 1, %s907_s18  }
 0x1a8   : > { %p14_p8 = scmp.ge.s32.totalorder %s17_s18, 4  }
 0x1aa   :  { %16 = sbr.rel (!%p14_p8) target bundleno = 1 (0x1), region = 83 }
 0x1af   :  { %637 = vsyncpa [#allocation3], 1 }
 0x1b0   :  { %639 = vsyncpa [#allocation3 + $0x1], 1 }

// kernel: pointnet_sa_module_msg_forward.15
= control target key start
LH: loop header
LB: loop body
LE: loop exit
PB: predicated region body
PF: predicated region fallthrough
CT: control target
= control target key end

     0   :  { %9 = vsyncpa [#allocation3], 0  ;;  %s861_s15 = smov 0   ;;  %s1095_s0 = inlined_call_operand.vmem [shape: f32[2], index: 0, kind: input, shape index: {}]   ;;  %s1096_s1 = inlined_call_operand.vmem [shape: f32[256,32], index: 1, kind: input, shape index: {}]   ;;  %s1097_s2 = inlined_call_operand.vmem [shape: bf16[32,64], index: 2, kind: input, shape index: {}]   ;;  %s1098_s3 = inlined_call_operand.vmem [shape: f32[8,64], index: 3, kind: input, shape index: {}]   ;;  %s1099_s4 = inlined_call_operand.vmem [shape: f32[16,64], index: 4, kind: output, shape index: {}]  }
   0x1 LB: > { %s867_s16 = sadd.s32 4294967295, %s833_s15   ;;  %p626_p0 = scmp.ge.s32.totalorder %s833_s15, 1  ;;  %s833_s15 = sphi %s861_s15, %s15_s15  }
   0x2   : > { %p135_p1 = scmp.lt.s32.totalorder %s833_s15, 3  ;;  %s147_s19 = sshll.u32 %s1095_s0, 4  ;;  %s148_s19 = int_to_ptr.vmem [resolvable:$true] %s147_s19 }
   0x3   : > { %p797_p3 = scmp.eq.s32.totalorder %s867_s16, 0  ;;  %s835_s20 = smov [#allocation2]  }
   0x4   : > { %p136_p2 = pnand %p626_p0, %p135_p1 }
   0x6   : > { %p793_p4 = pneg %p136_p2  ;;  %175 = sbr.rel (%p136_p2) target bundleno = 243 (0xf3), region = 36 }
   0x8   : > { %p794_p5 = pnand %p797_p3, %p793_p4 }
   0xa   : > { %796 = dma.vmem_to_smem (!%p794_p5), %s148_s19, 16, %s835_s20, [#allocation3]  }
   0xb   : > { %828 = dma.done.wait (%p797_p3), [#allocation3], 16  }
   0xc   : > { %830 = vsyncadd (%p797_p3), [#allocation3], 4294967280 }
   0xd   : > { %182 = sfence }
   0xe   : > { %v654_v0 = vld [vmem:[%s1097_s2 + $0x8] sm:$0xff]  ;;  %s631_s23 = sshll.u32 %s867_s16, 4  ;;  %s213_s24 = sld [smem:[#allocation2]]  ;;  %v653_v1 = vld [vmem:[%s1097_s2] sm:$0xff]  ;;  %vm337_vm3 = vcmask 261120  }
   0xf   : > { %p203_p6 = scmp.lt.s32.totalorder %s631_s23, 31  ;;  %s634_s25 = sld [smem:[#allocation2 + $0x1]]  ;;  %368 = vmatpush.bf16.msra.mxu0 %v654_v0  ;;  %655 = vmatpush.bf16.msra.mxu1 %v654_v0 }
  0x10   : > { %656 = vmatpush.bf16.msra.mxu2 %v654_v0  ;;  %657 = vmatpush.bf16.msra.mxu3 %v654_v0  ;;  %p208_p7 = scmp.lt.s32.totalorder %s867_s16, 1 }
  0x11   : > { %s1127_s23 = smov (!%p203_p6, %s631_s23), 31 }
  0x12   : > { %s632_s28 = sshll.u32 %s1127_s23, 3  ;;  %s1129_s16 = smov (!%p208_p7, %s867_s16), 1 }
  0x13   : > { %369 = vmatpush.bf16.msra.mxu0 %v653_v1  ;;  %658 = vmatpush.bf16.msra.mxu1 %v653_v1  ;;  %s885_s5 = scalar_lea.vmem %s1096_s1, %s632_s28  ;;  %s633_s8 = sshll.u32 %s1129_s16, 3 }
  0x14   : > { %v887_v2 = vstv %s213_s24  ;;  %659 = vmatpush.bf16.msra.mxu2 %v653_v1  ;;  %660 = vmatpush.bf16.msra.mxu3 %v653_v1  ;;  %v215_v3 = vld [vmem:[%s885_s5] sm:$0xff]  ;;  %v216_v4 = vld [vmem:[%s885_s5 + $0x8] sm:$0xff]  ;;  %v222_v35 = vld [vmem:[%s885_s5 + $0x38] sm:$0xff]  ;;  %s211_s11 = scalar_lea.vmem %s1099_s4, %s633_s8 }
  0x15   : > { %v891_v5 = vstv %s634_s25  ;;  %v219_v6 = vld [vmem:[%s885_s5 + $0x20] sm:$0xff]  ;;  %v232_v7 = vmul.f32 %v887_v2, %v215_v3  ;;  %v233_v8 = vmul.f32 %v887_v2, %v216_v4  ;;  %v220_v9 = vld [vmem:[%s885_s5 + $0x28] sm:$0xff] }
  0x16   : > { %v236_v10 = vmul.f32 %v887_v2, %v219_v6  ;;  %v223_v11 = vld [vmem:[%s885_s5 + $0x40] sm:$0xff]  ;;  %v224_v12 = vld [vmem:[%s885_s5 + $0x48] sm:$0xff]  ;;  %v237_v13 = vmul.f32 %v887_v2, %v220_v9 }
  0x17   : > { %v240_v14 = vmul.f32 %v887_v2, %v223_v11  ;;  %v241_v15 = vmul.f32 %v887_v2, %v224_v12  ;;  %v227_v16 = vld [vmem:[%s885_s5 + $0x60] sm:$0xff]  ;;  %v228_v17 = vld [vmem:[%s885_s5 + $0x68] sm:$0xff]  ;;  %v249_v18 = vadd.f32 %v891_v5, %v232_v7  ;;  %v250_v19 = vadd.f32 %v891_v5, %v233_v8 }
  0x18   : > { %v253_v20 = vadd.f32 %v891_v5, %v236_v10  ;;  %v254_v21 = vadd.f32 %v891_v5, %v237_v13  ;;  %v244_v24 = vmul.f32 %v887_v2, %v227_v16  ;;  %v245_v28 = vmul.f32 %v887_v2, %v228_v17 }
  0x19   : > { %v257_v22 = vadd.f32 %v891_v5, %v240_v14  ;;  %v911_v23 = vadd.f32 %v891_v5, %v241_v15  ;;  %v661_v25 = vand.u32 2147483647, %v249_v18  ;;  %v663_v26 = vcvt.f32.s32 %v249_v18 }
  0x1a   : > { %v669_v27 = vand.u32 2147483647, %v250_v19  ;;  %v666_v29 = vand.u32 2147483648, %v249_v18  ;;  %v671_v30 = vcvt.f32.s32 %v250_v19  ;;  %v693_v31 = vand.u32 2147483647, %v253_v20 }
  0x1b   : > { %v695_v32 = vcvt.f32.s32 %v253_v20  ;;  %vm915_vm0 = vcmp.lt.f32.partialorder %v661_v25, 8388608.0  ;;  %v664_v34 = vcvt.s32.f32 %v663_v26  ;;  %v674_v36 = vand.u32 2147483648, %v250_v19 }
  0x1c   : > { %vm919_vm1 = vcmp.lt.f32.partialorder %v669_v27, 8388608.0  ;;  %v672_v37 = vcvt.s32.f32 %v671_v30  ;;  %v698_v39 = vand.u32 2147483648, %v253_v20  ;;  %v701_v40 = vand.u32 2147483647, %v254_v21  ;;  %v218_v30 = vld [vmem:[%s885_s5 + $0x18] sm:$0xff] }
  0x1d   : > { %v696_v38 = vcvt.s32.f32 %v695_v32  ;;  %v665_v41 = vand.u32 2147483647, %v664_v34  ;;  %vm923_vm2 = vcmp.lt.f32.partialorder %v693_v31, 8388608.0  ;;  %v703_v43 = vcvt.f32.s32 %v254_v21  ;;  %v221_v34 = vld [vmem:[%s885_s5 + $0x30] sm:$0xff] }
  0x1e   : > { %v725_v44 = vand.u32 2147483647, %v257_v22  ;;  %v673_v45 = vand.u32 2147483647, %v672_v37  ;;  %v706_v47 = vand.u32 2147483648, %v254_v21  ;;  %v727_v48 = vcvt.f32.s32 %v257_v22 }
  0x1f   : > { %v697_v46 = vand.u32 2147483647, %v696_v38  ;;  %v667_v49 = vor.u32 %v666_v29, %v665_v41  ;;  %vm927_vm4 = vcmp.lt.f32.partialorder %v701_v40, 8388608.0  ;;  %v704_v51 = vcvt.s32.f32 %v703_v43 }
  0x20   : > { %vm931_vm5 = vcmp.lt.f32.partialorder %v725_v44, 8388608.0  ;;  %v675_v53 = vor.u32 %v674_v36, %v673_v45  ;;  %v728_v55 = vcvt.s32.f32 %v727_v48  ;;  %v730_v56 = vand.u32 2147483648, %v257_v22  ;;  %v225_v44 = vld [vmem:[%s885_s5 + $0x50] sm:$0xff] }
  0x21   : > { %v699_v54 = vor.u32 %v698_v39, %v697_v46  ;;  %v668_v57 = vsel %vm915_vm0, %v667_v49, %v249_v18  ;;  %v705_v58 = vand.u32 2147483647, %v704_v51  ;;  %v733_v59 = vand.u32 2147483647, %v911_v23 }
  0x22   : > { %v735_v60 = vcvt.f32.s32 %v911_v23  ;;  %v676_v61 = vsel %vm919_vm1, %v675_v53, %v250_v19  ;;  %v281_v62 = vmax.f32 %v668_v57, -128.0  ;;  %v729_v0 = vand.u32 2147483647, %v728_v55 }
  0x23   : > { %v700_v63 = vsel %vm923_vm2, %v699_v54, %v253_v20  ;;  %v282_v1 = vmax.f32 %v676_v61, -128.0  ;;  %v707_v3 = vor.u32 %v706_v47, %v705_v58  ;;  %v738_v6 = vand.u32 2147483648, %v911_v23 }
  0x24   : > { %v285_v4 = vmax.f32 %v700_v63, -128.0  ;;  %v297_v7 = vmin.f32 %v281_v62, 127.0  ;;  %v731_v8 = vor.u32 %v730_v56, %v729_v0  ;;  %v736_v9 = vcvt.s32.f32 %v735_v60 }
  0x25   : > { %v261_v10 = vadd.f32 %v891_v5, %v244_v24  ;;  %v298_v11 = vmin.f32 %v282_v1, 127.0  ;;  %v708_v12 = vsel %vm927_vm4, %v707_v3, %v254_v21  ;;  %v262_v14 = vadd.f32 %v891_v5, %v245_v28  ;;  %v217_v21 = vld [vmem:[%s885_s5 + $0x10] sm:$0xff] }
  0x26   : > { %v301_v13 = vmin.f32 %v285_v4, 127.0  ;;  %v286_v15 = vmax.f32 %v708_v12, -128.0  ;;  %v732_v16 = vsel %vm931_vm5, %v731_v8, %v257_v22  ;;  %v737_v17 = vand.u32 2147483647, %v736_v9 }
  0x27   : > { %v757_v18 = vand.u32 2147483647, %v261_v10  ;;  %v313_v19 = vpack.c.bf16 %v298_v11, %v297_v7  ;;  %vm950_vm6 = vcmp.lt.f32.partialorder %v733_v59, 8388608.0  ;;  %v289_v24 = vmax.f32 %v732_v16, -128.0 }
  0x28   : > { %v759_v25 = vcvt.f32.s32 %v261_v10  ;;  %v302_v26 = vmin.f32 %v286_v15, 127.0  ;;  %v739_v27 = vor.u32 %v738_v6, %v737_v17  ;;  %v762_v29 = vand.u32 2147483648, %v261_v10 }
  0x29   : > { %v765_v28 = vand.u32 2147483647, %v262_v14  ;;  %643 = vmatmul.msk.bf16.vlgmr.msra.gmra.mxu0 %vm337_vm3, %v313_v19  ;;  %v305_v22 = vmin.f32 %v289_v24, 127.0  ;;  %vm957_vm7 = vcmp.lt.f32.partialorder %v757_v18, 8388608.0  ;;  %v767_v33 = vcvt.f32.s32 %v262_v14  ;;  %v226_v18 = vld [vmem:[%s885_s5 + $0x58] sm:$0xff] }
  0x2a   : > { %v760_v32 = vcvt.s32.f32 %v759_v25  ;;  %v315_v36 = vpack.c.bf16 %v302_v26, %v301_v13  ;;  %v740_v37 = vsel %vm950_vm6, %v739_v27, %v911_v23  ;;  %v770_v38 = vand.u32 2147483648, %v262_v14 }
  0x2b   : > { %v234_v39 = vmul.f32 %v887_v2, %v217_v21  ;;  %v290_v40 = vmax.f32 %v740_v37, -128.0  ;;  %v768_v42 = vcvt.s32.f32 %v767_v33  ;;  %v235_v43 = vmul.f32 %v887_v2, %v218_v30  ;;  %v229_v21 = vld [vmem:[%s885_s5 + $0x70] sm:$0xff]  ;;  %v230_v33 = vld [vmem:[%s885_s5 + $0x78] sm:$0xff] }
  0x2c   : > { %v761_v41 = vand.u32 2147483647, %v760_v32  ;;  %645 = vmatmul.msk.bf16.vlgmr.msra.gmra.mxu1 %vm337_vm3, %v315_v36  ;;  %vm970_vm8 = vcmp.lt.f32.partialorder %v765_v28, 8388608.0  ;;  %v238_v47 = vmul.f32 %v887_v2, %v221_v34  ;;  %v239_v23 = vmul.f32 %v887_v2, %v222_v35 }
  0x2d   : > { %v251_v46 = vadd.f32 %v891_v5, %v234_v39  ;;  %v306_v48 = vmin.f32 %v290_v40, 127.0  ;;  %v769_v50 = vand.u32 2147483647, %v768_v42  ;;  %v252_v51 = vadd.f32 %v891_v5, %v235_v43 }
  0x2e   : > { %v763_v49 = vor.u32 %v762_v29, %v761_v41  ;;  %v255_v54 = vadd.f32 %v891_v5, %v238_v47  ;;  %v242_v55 = vmul.f32 %v887_v2, %v225_v44  ;;  %v256_v4 = vadd.f32 %v891_v5, %v239_v23 }
  0x2f   : > { %v677_v52 = vand.u32 2147483647, %v251_v46  ;;  %v679_v53 = vcvt.f32.s32 %v251_v46  ;;  %v317_v56 = vpack.c.bf16 %v306_v48, %v305_v22  ;;  %v771_v58 = vor.u32 %v770_v38, %v769_v50 }
  0x30   : > { %v764_v57 = vsel %vm957_vm7, %v763_v49, %v261_v10  ;;  %v685_v59 = vand.u32 2147483647, %v252_v51  ;;  %v682_v62 = vand.u32 2147483648, %v251_v46  ;;  %v687_v63 = vcvt.f32.s32 %v252_v51 }
  0x31   : > { %v293_v60 = vmax.f32 %v764_v57, -128.0  ;;  %v680_v61 = vcvt.s32.f32 %v679_v53  ;;  %647 = vmatmul.msk.bf16.vlgmr.msra.gmra.mxu2 %vm337_vm3, %v317_v56  ;;  %v772_v0 = vsel %vm970_vm8, %v771_v58, %v262_v14  ;;  %vm985_vm9 = vcmp.lt.f32.partialorder %v677_v52, 8388608.0 }
  0x32   : > { %v690_v3 = vand.u32 2147483648, %v252_v51  ;;  %v294_v6 = vmax.f32 %v772_v0, -128.0  ;;  %v688_v9 = vcvt.s32.f32 %v687_v63  ;;  %vm990_vm10 = vcmp.lt.f32.partialorder %v685_v59, 8388608.0 }
  0x33   : > { %v309_v7 = vmin.f32 %v293_v60, 127.0  ;;  %v681_v8 = vand.u32 2147483647, %v680_v61  ;;  %v709_v11 = vand.u32 2147483647, %v255_v54  ;;  %v711_v12 = vcvt.f32.s32 %v255_v54 }
  0x34   : > { %v717_v13 = vand.u32 2147483647, %v256_v4  ;;  %v310_v14 = vmin.f32 %v294_v6, 127.0  ;;  %v689_v16 = vand.u32 2147483647, %v688_v9  ;;  %v719_v17 = vcvt.f32.s32 %v256_v4 }
  0x35   : > { %v683_v15 = vor.u32 %v682_v62, %v681_v8  ;;  %vm995_vm11 = vcmp.lt.f32.partialorder %v709_v11, 8388608.0  ;;  %v712_v20 = vcvt.s32.f32 %v711_v12  ;;  %v714_v24 = vand.u32 2147483648, %v255_v54 }
  0x36   : > { %v722_v25 = vand.u32 2147483648, %v256_v4  ;;  %v319_v26 = vpack.c.bf16 %v310_v14, %v309_v7  ;;  %v691_v29 = vor.u32 %v690_v3, %v689_v16  ;;  %v720_v28 = vcvt.s32.f32 %v719_v17 }
  0x37   : > { %v684_v27 = vsel %vm985_vm9, %v683_v15, %v251_v46  ;;  %v713_v22 = vand.u32 2147483647, %v712_v20  ;;  %v243_v31 = vmul.f32 %v887_v2, %v226_v18  ;;  %v259_v32 = vadd.f32 %v891_v5, %v242_v55 }
  0x38   : > { %v283_v30 = vmax.f32 %v684_v27, -128.0  ;;  %649 = vmatmul.msk.bf16.vlgmr.msra.gmra.mxu3 %vm337_vm3, %v319_v26  ;;  %v692_v34 = vsel %vm990_vm10, %v691_v29, %v252_v51  ;;  %vm1008_vm12 = vcmp.lt.f32.partialorder %v717_v13, 8388608.0  ;;  %v721_v36 = vand.u32 2147483647, %v720_v28 }
  0x39   : > { %v246_v37 = vmul.f32 %v887_v2, %v229_v21  ;;  %v284_v38 = vmax.f32 %v692_v34, -128.0  ;;  %v715_v40 = vor.u32 %v714_v24, %v713_v22  ;;  %v260_v41 = vadd.f32 %v891_v5, %v243_v31 }
  0x3a   : > { %v299_v39 = vmin.f32 %v283_v30, 127.0  ;;  %v723_v42 = vor.u32 %v722_v25, %v721_v36  ;;  %v741_v43 = vand.u32 2147483647, %v259_v32  ;;  %v743_v44 = vcvt.f32.s32 %v259_v32 }
  0x3b   : > { %v247_v45 = vmul.f32 %v887_v2, %v230_v33  ;;  %v300_v46 = vmin.f32 %v284_v38, 127.0  ;;  %v716_v47 = vsel %vm995_vm11, %v715_v40, %v255_v54  ;;  %v746_v23 = vand.u32 2147483648, %v259_v32 }
  0x3c   : > { %v751_v48 = vcvt.f32.s32 %v260_v41  ;;  %v724_v49 = vsel %vm1008_vm12, %v723_v42, %v256_v4  ;;  %v287_v50 = vmax.f32 %v716_v47, -128.0  ;;  %v744_v51 = vcvt.s32.f32 %v743_v44 }
  0x3d   : > { %v749_v52 = vand.u32 2147483647, %v260_v41  ;;  %v314_v53 = vpack.c.bf16 %v300_v46, %v299_v39  ;;  %v288_v55 = vmax.f32 %v724_v49, -128.0  ;;  %v754_v59 = vand.u32 2147483648, %v260_v41 }
  0x3e   : > { %v752_v56 = vcvt.s32.f32 %v751_v48  ;;  %v303_v57 = vmin.f32 %v287_v50, 127.0  ;;  %v745_v58 = vand.u32 2147483647, %v744_v51  ;;  %v263_v2 = vadd.f32 %v891_v5, %v246_v37 }
  0x3f   : > { %644 = vmatmul.msk.bf16.gmra.mxu0 %vm337_vm3, %v314_v53  ;;  %v304_v60 = vmin.f32 %v288_v55, 127.0  ;;  %vm1021_vm13 = vcmp.lt.f32.partialorder %v741_v43, 8388608.0  ;;  %v264_v62 = vadd.f32 %v891_v5, %v247_v45  ;;  %vm750_vm14 = vcmp.lt.f32.partialorder %v749_v52, 8388608.0 }
  0x40   : > { %v753_v61 = vand.u32 2147483647, %v752_v56  ;;  %v747_v63 = vor.u32 %v746_v23, %v745_v58  ;;  %v775_v0 = vcvt.f32.s32 %v263_v2  ;;  %v773_v4 = vand.u32 2147483647, %v263_v2 }
  0x41   : > { %v316_v1 = vpack.c.bf16 %v304_v60, %v303_v57  ;;  %v783_v6 = vcvt.f32.s32 %v264_v62  ;;  %v778_v9 = vand.u32 2147483648, %v263_v2  ;;  %v781_v10 = vand.u32 2147483647, %v264_v62 }
  0x42   : > { %v755_v3 = vor.u32 %v754_v59, %v753_v61  ;;  %v748_v7 = vsel %vm1021_vm13, %v747_v63, %v259_v32  ;;  %v776_v8 = vcvt.s32.f32 %v775_v0  ;;  %v786_v14 = vand.u32 2147483648, %v264_v62  ;;  %v411_v32 = vld [vmem:[%s1098_s3] sm:$0xff] }
  0x43   : > { %646 = vmatmul.msk.bf16.gmra.mxu1 %vm337_vm3, %v316_v1  ;;  %v291_v12 = vmax.f32 %v748_v7, -128.0  ;;  %v784_v13 = vcvt.s32.f32 %v783_v6  ;;  %vm774_vm15 = vcmp.lt.f32.partialorder %v773_v4, 8388608.0  ;;  %vm782_vm0 = vcmp.lt.f32.partialorder %v781_v10, 8388608.0 }
  0x44   : > { %v756_v11 = vsel %vm750_vm14, %v755_v3, %v260_v41  ;;  %v777_v15 = vand.u32 2147483647, %v776_v8  ;;  %v1034_v35 = vperm.slane %v411_v32, 0  ;;  %v1038_v39 = vperm.slane %v411_v32, 1 }
  0x45   : > { %v292_v5 = vmax.f32 %v756_v11, -128.0  ;;  %v307_v16 = vmin.f32 %v291_v12, 127.0  ;;  %v785_v17 = vand.u32 2147483647, %v784_v13  ;;  %vm462_vm1 = vcmask 523264  }
  0x46   : > { %v779_v19 = vor.u32 %v778_v9, %v777_v15  ;;  %vm543_vm2 = vcmask 1041409   ;;  %vm547_vm4 = vcmask 1043459   ;;  %vm549_vm5 = vcmask 1044484  }
  0x47   : > { %v308_v18 = vmin.f32 %v292_v5, 127.0  ;;  %v787_v20 = vor.u32 %v786_v14, %v785_v17  ;;  %vm551_vm6 = vcmask 1045509   ;;  %vm553_vm7 = vcmask 1046534  }
  0x48   : > { %v780_v25 = vsel %vm774_vm15, %v779_v19, %v263_v2  ;;  %vm555_vm8 = vcmask 1047559  }
  0x49   : > { %v318_v24 = vpack.c.bf16 %v308_v18, %v307_v16  ;;  %v788_v21 = vsel %vm782_vm0, %v787_v20, %v264_v62  ;;  %v295_v26 = vmax.f32 %v780_v25, -128.0 }
  0x4a   : > { %v296_v27 = vmax.f32 %v788_v21, -128.0 }
  0x4b   : > { %648 = vmatmul.msk.bf16.gmra.mxu2 %vm337_vm3, %v318_v24  ;;  %v311_v29 = vmin.f32 %v295_v26, 127.0 }
  0x4c   : > { %v312_v28 = vmin.f32 %v296_v27, 127.0 }
  0x4e   : > { %v320_v30 = vpack.c.bf16 %v312_v28, %v311_v29 }
  0x50   : > { %650 = vmatmul.msk.bf16.gmra.mxu3 %vm337_vm3, %v320_v30  ;;  %vm545_vm3 = vcmask 1042434  }
  0xa6   : > { %v371_v22 = vpop.f32.mrf.mxu0 }
  0xa7   : > { %v413_v38 = vmul.f32 %v1034_v35, %v371_v22 }
  0xa9   : > { %v381_v31 = vpop.f32.mrf.mxu1  ;;  %v430_v44 = vadd.f32 %v1038_v39, %v413_v38 }
  0xaa   : > { %v417_v45 = vmul.f32 %v1034_v35, %v381_v31 }
  0xab   : > { %v446_v51 = vmax.f32 %v430_v44, 0.0 }
  0xac   : > { %v434_v52 = vadd.f32 %v1038_v39, %v417_v45 }
  0xad   : > { %v463_v54 = vsel %vm462_vm1, %v446_v51, -inf }
  0xae   : > { %v373_v33 = vpop.f32.mrf.mxu0  ;;  %v450_v61 = vmax.f32 %v434_v52, 0.0 }
  0xaf   : > { %v414_v37 = vmul.f32 %v1034_v35, %v373_v33 }
  0xb0   : > { %v481_v11 = vsel %vm462_vm1, %v450_v61, -inf }
  0xb1   : > { %v383_v36 = vpop.f32.mrf.mxu1  ;;  %v431_v41 = vadd.f32 %v1038_v39, %v414_v37 }
  0xb2   : > { %v418_v42 = vmul.f32 %v1034_v35, %v383_v36 }
  0xb3   : > { %v447_v47 = vmax.f32 %v431_v41, 0.0 }
  0xb4   : > { %v391_v34 = vpop.f32.mrf.mxu2  ;;  %v435_v23 = vadd.f32 %v1038_v39, %v418_v42 }
  0xb5   : > { %v421_v53 = vmul.f32 %v1034_v35, %v391_v34  ;;  %v464_v55 = vsel %vm462_vm1, %v447_v47, -inf }
  0xb6   : > { %v451_v56 = vmax.f32 %v435_v23, 0.0  ;;  %v465_v3 = vmax.f32 %v463_v54, %v464_v55 }
  0xb7   : > { %v438_v0 = vadd.f32 %v1038_v39, %v421_v53 }
  0xb8   : > { %v482_v4 = vsel %vm462_vm1, %v451_v56, -inf  ;;  %v466_v16 = vrot.slane %v465_v3, 4 }
  0xb9   : > { %v454_v5 = vmax.f32 %v438_v0, 0.0  ;;  %v483_v17 = vmax.f32 %v481_v11, %v482_v4 }
  0xba   : > { %v467_v30 = vmax.f32 %v465_v3, %v466_v16 }
  0xbb   : > { %v401_v40 = vpop.f32.mrf.mxu3  ;;  %v499_v28 = vsel %vm462_vm1, %v454_v5, -inf  ;;  %v484_v22 = vrot.slane %v483_v17, 4 }
  0xbc   : > { %v376_v43 = vpop.f32.mrf.mxu0  ;;  %v393_v46 = vpop.f32.mrf.mxu2  ;;  %v425_v1 = vmul.f32 %v1034_v35, %v401_v40 }
  0xbd   : > { %v415_v48 = vmul.f32 %v1034_v35, %v376_v43  ;;  %v422_v49 = vmul.f32 %v1034_v35, %v393_v46  ;;  %v485_v42 = vmax.f32 %v483_v17, %v484_v22  ;;  %v468_v46 = vrot.slane %v467_v30, 2 }
  0xbe   : > { %v442_v15 = vadd.f32 %v1038_v39, %v425_v1 }
  0xbf   : > { %v432_v58 = vadd.f32 %v1038_v39, %v415_v48  ;;  %v439_v2 = vadd.f32 %v1038_v39, %v422_v49  ;;  %v486_v53 = vrot.slane %v485_v42, 2 }
  0xc0   : > { %v386_v50 = vpop.f32.mrf.mxu1  ;;  %v458_v32 = vmax.f32 %v442_v15, 0.0 }
  0xc1   : > { %v419_v59 = vmul.f32 %v1034_v35, %v386_v50  ;;  %v448_v6 = vmax.f32 %v432_v58, 0.0  ;;  %v455_v9 = vmax.f32 %v439_v2, 0.0 }
  0xc2   : > { %v517_v45 = vsel %vm462_vm1, %v458_v32, -inf }
  0xc3   : > { %v403_v57 = vpop.f32.mrf.mxu3  ;;  %v436_v7 = vadd.f32 %v1038_v39, %v419_v59  ;;  %v472_v18 = vsel %vm462_vm1, %v448_v6, -inf  ;;  %v500_v25 = vsel %vm462_vm1, %v455_v9, -inf }
  0xc4   : > { %v378_v60 = vpop.f32.mrf.mxu0  ;;  %v426_v62 = vmul.f32 %v1034_v35, %v403_v57  ;;  %v501_v33 = vmax.f32 %v499_v28, %v500_v25  ;;  %v469_v57 = vmax.f32 %v467_v30, %v468_v46 }
  0xc5   : > { %v416_v63 = vmul.f32 %v1034_v35, %v378_v60  ;;  %v452_v19 = vmax.f32 %v436_v7, 0.0 }
  0xc6   : > { %v443_v12 = vadd.f32 %v1038_v39, %v426_v62  ;;  %v502_v47 = vrot.slane %v501_v33, 4  ;;  %v487_v62 = vmax.f32 %v485_v42, %v486_v53  ;;  %v470_v1 = vrot.slane %v469_v57, 1 }
  0xc7   : > { %v433_v8 = vadd.f32 %v1038_v39, %v416_v63  ;;  %v490_v34 = vsel %vm462_vm1, %v452_v19, -inf }
  0xc8   : > { %v388_v10 = vpop.f32.mrf.mxu1  ;;  %v459_v26 = vmax.f32 %v443_v12, 0.0  ;;  %v503_v58 = vmax.f32 %v501_v33, %v502_v47  ;;  %v471_v15 = vmax.f32 %v469_v57, %v470_v1 }
  0xc9   : > { %v449_v13 = vmax.f32 %v433_v8, 0.0  ;;  %v420_v14 = vmul.f32 %v1034_v35, %v388_v10 }
  0xca   : > { %v518_v41 = vsel %vm462_vm1, %v459_v26, -inf  ;;  %v504_v3 = vrot.slane %v503_v58, 2 }
  0xcb   : > { %v473_v20 = vsel %vm462_vm1, %v449_v13, -inf  ;;  %v437_v24 = vadd.f32 %v1038_v39, %v420_v14  ;;  %v519_v48 = vmax.f32 %v517_v45, %v518_v41  ;;  %v488_v13 = vrot.slane %v487_v62, 1 }
  0xcc   : > { %v474_v21 = vmax.f32 %v472_v18, %v473_v20  ;;  %v505_v17 = vmax.f32 %v503_v58, %v504_v3 }
  0xcd   : > { %v453_v29 = vmax.f32 %v437_v24, 0.0  ;;  %v520_v59 = vrot.slane %v519_v48, 4 }
  0xce   : > { %v396_v27 = vpop.f32.mrf.mxu2  ;;  %v475_v31 = vrot.slane %v474_v21, 4  ;;  %v506_v28 = vrot.slane %v505_v17, 1 }
  0xcf   : > { %v491_v36 = vsel %vm462_vm1, %v453_v29, -inf  ;;  %v423_v37 = vmul.f32 %v1034_v35, %v396_v27  ;;  %v521_v6 = vmax.f32 %v519_v48, %v520_v59 }
  0xd0   : > { %v476_v38 = vmax.f32 %v474_v21, %v475_v31  ;;  %v492_v40 = vmax.f32 %v490_v34, %v491_v36  ;;  %v489_v21 = vmax.f32 %v487_v62, %v488_v13 }
  0xd1   : > { %v440_v49 = vadd.f32 %v1038_v39, %v423_v37  ;;  %v522_v18 = vrot.slane %v521_v6, 2  ;;  %v507_v37 = vmax.f32 %v505_v17, %v506_v28 }
  0xd2   : > { %v477_v43 = vrot.slane %v476_v38, 2  ;;  %v493_v44 = vrot.slane %v492_v40, 4 }
  0xd3   : > { %v406_v23 = vpop.f32.mrf.mxu3  ;;  %v456_v2 = vmax.f32 %v440_v49, 0.0 }
  0xd4   : > { %v478_v50 = vmax.f32 %v476_v38, %v477_v43  ;;  %v494_v51 = vmax.f32 %v492_v40, %v493_v44  ;;  %v427_v55 = vmul.f32 %v1034_v35, %v406_v23 }
  0xd5   : > { %v508_v7 = vsel %vm462_vm1, %v456_v2, -inf }
  0xd6   : > { %v398_v52 = vpop.f32.mrf.mxu2  ;;  %v479_v54 = vrot.slane %v478_v50, 1  ;;  %v495_v61 = vrot.slane %v494_v51, 2  ;;  %v444_v63 = vadd.f32 %v1038_v39, %v427_v55 }
  0xd7   : > { %v424_v56 = vmul.f32 %v1034_v35, %v398_v52 }
  0xd8   : > { %v480_v10 = vmax.f32 %v478_v50, %v479_v54  ;;  %v496_v11 = vmax.f32 %v494_v51, %v495_v61  ;;  %v460_v14 = vmax.f32 %v444_v63, 0.0 }
  0xd9   : > { %v441_v60 = vadd.f32 %v1038_v39, %v424_v56 }
  0xda   : > { %v544_v20 = vsel %vm543_vm2, %v480_v10, %v471_v15  ;;  %v497_v24 = vrot.slane %v496_v11, 1 }
  0xdb   : > { %v457_v0 = vmax.f32 %v441_v60, 0.0  ;;  %v408_v4 = vpop.f32.mrf.mxu3  ;;  %v546_v30 = vsel %vm545_vm3, %v489_v21, %v544_v20 }
  0xdc   : > { %v428_v9 = vmul.f32 %v1034_v35, %v408_v4  ;;  %v526_v35 = vsel %vm462_vm1, %v460_v14, -inf  ;;  %v498_v22 = vmax.f32 %v496_v11, %v497_v24 }
  0xdd   : > { %v509_v8 = vsel %vm462_vm1, %v457_v0, -inf }
  0xde   : > { %v510_v12 = vmax.f32 %v508_v7, %v509_v8  ;;  %v445_v5 = vadd.f32 %v1038_v39, %v428_v9  ;;  %v523_v39 = vmax.f32 %v521_v6, %v522_v18  ;;  %v548_v33 = vsel %vm547_vm4, %v498_v22, %v546_v30 }
  0xdf   : > { %v550_v42 = vsel %vm549_vm5, %v507_v37, %v548_v33 }
  0xe0   : > { %v511_v16 = vrot.slane %v510_v12, 4  ;;  %v461_v19 = vmax.f32 %v445_v5, 0.0  ;;  %v524_v38 = vrot.slane %v523_v39, 1 }
  0xe2   : > { %v512_v25 = vmax.f32 %v510_v12, %v511_v16  ;;  %v527_v26 = vsel %vm462_vm1, %v461_v19, -inf  ;;  %v525_v45 = vmax.f32 %v523_v39, %v524_v38 }
  0xe3   : > { %v528_v29 = vmax.f32 %v526_v35, %v527_v26 }
  0xe4   : > { %v513_v27 = vrot.slane %v512_v25, 2 }
  0xe5   : > { %v529_v32 = vrot.slane %v528_v29, 4 }
  0xe6   : > { %v514_v31 = vmax.f32 %v512_v25, %v513_v27 }
  0xe7   : > { %v530_v36 = vmax.f32 %v528_v29, %v529_v32 }
  0xe8   : > { %v515_v34 = vrot.slane %v514_v31, 1 }
  0xe9   : > { %v531_v41 = vrot.slane %v530_v36, 2 }
  0xea   : > { %v516_v40 = vmax.f32 %v514_v31, %v515_v34 }
  0xeb   : > { %v532_v44 = vmax.f32 %v530_v36, %v531_v41 }
  0xec   : > { %v552_v43 = vsel %vm551_vm6, %v516_v40, %v550_v42 }
  0xed   : > { %v533_v46 = vrot.slane %v532_v44, 1  ;;  %v554_v47 = vsel %vm553_vm7, %v525_v45, %v552_v43 }
  0xef   : > { %v534_v23 = vmax.f32 %v532_v44, %v533_v46 }
  0xf1   : > { %v556_v48 = vsel %vm555_vm8, %v534_v23, %v554_v47 }
  0xf2   : > { %558 = vst.msk [vmem:[%s211_s11] sm:$0xff] %vm462_vm1, %v556_v48 }
  0xf3 PF: > { %s15_s15 = sadd.s32 1, %s833_s15  }
  0xf4   : > { %p12_p8 = scmp.ge.s32.totalorder %s15_s15, 4  }
  0xf6   :  { %14 = sbr.rel (!%p12_p8) target bundleno = 1 (0x1), region = 71 }
  0xfb   :  { %578 = vsyncpa [#allocation3], 1 }
  0xfc   :  { %580 = vsyncpa [#allocation3 + $0x1], 1 }

</bundles_post_ra>
